<compile_context>
chip_gen: v7x
topology: tpu7x:2x2x1
jax: 0.10.0
libtpu: 0.0.40
codegen_flags: <defaults>
</compile_context>

<pallas_src>
import jax
import jax.numpy as jnp
from jax import lax
from jax.experimental import pallas as pl
from jax.experimental.pallas import tpu as pltpu

_BF16 = jnp.bfloat16


def _in_kernel(obj_ref, srt_ref, rat_ref,
               rw1s_ref, rw1r_ref, rw1a_ref, rb1_ref,
               rw2_ref, rb2_ref, rw3_ref, rb3_ref, rw4_ref, rb4_ref,
               ow1o_ref, ow1e_ref, ob1_ref, ow2_ref, ob2_ref, ow3_ref, ob3_ref,
               out_ref):
    f32 = jnp.float32
    G, No, Do = obj_ref.shape
    Nr = srt_ref.shape[1] // 2
    Dr = rat_ref.shape[2]
    De = out_ref.shape[2]

    obj = obj_ref[...]            # [G, No, Do]   bf16
    srt = srt_ref[...]            # [G, 2Nr, No]  bf16  ([Rs^T ; Rr^T] stacked)
    rat = rat_ref[...]            # [G, Nr, Dr]   bf16  (relation_info^T)

    def mm(a, b):                 # [M,K] @ [K,N] -> f32 [M,N]  (last-dim contraction)
        return lax.dot_general(a, b, (((1,), (0,)), ((), ())),
                               preferred_element_type=f32)

    def bmm(a, b):                # [G,M,K] @ [G,K,N] -> f32 [G,M,N]
        return lax.dot_general(a, b, (((2,), (1,)), ((0,), (0,))),
                               preferred_element_type=f32)

    def relational_mlp(xs, xr, xa):
        # == ReLU-MLP on concat([xs, xr, xa], -1); split-W1 realises the concat.
        h = (mm(xs, rw1s_ref[...]) + mm(xr, rw1r_ref[...])
             + mm(xa, rw1a_ref[...]) + rb1_ref[...])
        h = jnp.maximum(h, 0.0).astype(_BF16)
        h = jnp.maximum(mm(h, rw2_ref[...]) + rb2_ref[...], 0.0).astype(_BF16)
        h = jnp.maximum(mm(h, rw3_ref[...]) + rb3_ref[...], 0.0).astype(_BF16)
        return mm(h, rw4_ref[...]) + rb4_ref[...]           # f32 [M, De]

    # ---- marshalling: [senders^T ; receivers^T] = [Rs^T ; Rr^T] @ O (one bmm) --
    sr_t = bmm(srt, obj).astype(_BF16)                      # [G, 2Nr, Do]
    s_flat = sr_t[:, :Nr, :].reshape(G * Nr, Do)
    r_flat = sr_t[:, Nr:, :].reshape(G * Nr, Do)
    a_flat = rat.reshape(G * Nr, Dr)

    effects = relational_mlp(s_flat, r_flat, a_flat)        # [G*Nr, De] f32

    # ---- aggregation: e_recv = Rr @ E  (Rr recovered via tiny per-graph 2-D
    #      transposes on the XLU instead of streaming Rr in a second layout) ----
    rrt_f = srt[:, Nr:, :].astype(f32)                      # [G, Nr, No]
    rows = []
    for g in range(G):                                      # static unroll, G small
        rows.append(mm(rrt_f[g].T, effects[g * Nr:(g + 1) * Nr, :]))   # [No, De]
    e_flat = jnp.concatenate(rows, axis=0).astype(_BF16)    # [G*No, De]
    o_flat = obj.reshape(G * No, Do)                        # bf16

    # ---- object model on concat([O, e_recv], -1)  (split-W1) -------------------
    g1 = jnp.maximum(mm(o_flat, ow1o_ref[...]) + mm(e_flat, ow1e_ref[...])
                     + ob1_ref[...], 0.0).astype(_BF16)
    g1 = jnp.maximum(mm(g1, ow2_ref[...]) + ob2_ref[...], 0.0).astype(_BF16)
    pred = mm(g1, ow3_ref[...]) + ob3_ref[...]              # [G*No, Do] f32

    # ---- second marshalling with predicted objects ------------------------------
    pred_b = pred.reshape(G, No, Do).astype(_BF16)
    sr2 = bmm(srt, pred_b).astype(_BF16)                    # [G, 2Nr, Do]
    s2 = sr2[:, :Nr, :].reshape(G * Nr, Do)
    r2 = sr2[:, Nr:, :].reshape(G * Nr, Do)

    out = relational_mlp(s2, r2, a_flat)                    # [G*Nr, De] f32
    # TODO(synk): De=16 (<128 lanes) keeps output stores masked; the lane-dense
    # (G, Nr*De) layout would need a minor-dim reshape that Mosaic may reject,
    # so the (G, Nr, De) block is kept (output is a small fraction of traffic).
    out_ref[...] = out.reshape(G, Nr, De)


def _pad_to(x, axis, target):
    cur = x.shape[axis]
    if cur >= target:
        return x
    pads = [(0, 0)] * x.ndim
    pads[axis] = (0, target - cur)
    return jnp.pad(x, pads)


def _round_up(x, m):
    return ((x + m - 1) // m) * m


def _cdiv(a, b):
    return -(-a // b)


def _choose_graphs_per_step(N, No, Nr, Do, Dr, De, h_pad):
    """Graphs per grid step: MXU M-target, VMEM cap, >=2 grid steps if possible."""
    # (a) MXU M-target: G*Nr (and G*No) around >= 256 rows for the flattened MLPs.
    g = max(_cdiv(256, max(Nr, 1)), _cdiv(256, max(No, 1)))
    # (b) VMEM working-set cap: double-buffered bf16 input blocks + f32 output
    #     block + a handful of [G*max(Nr,No), h_pad] f32 activations.  12 MiB
    #     budget keeps the kernel inside v5e's 16 MiB scoped-VMEM default and
    #     v7x's 64 MiB VMEM without needing a vmem_limit_bytes override.
    per_graph = (2 * 2 * (No * Do + 2 * Nr * No + Nr * Dr)   # bf16 inputs x2 buffers
                 + 2 * 4 * Nr * De                           # f32 output x2 buffers
                 + 8 * 4 * max(Nr, No) * h_pad)              # live f32 activations
    g = min(g, max(1, (12 * 1024 * 1024) // per_graph))
    g = max(1, min(g, N))
    # (c) keep at least 2 grid steps whenever N allows it so the pipeline
    #     overlaps DMA with compute and v7x can shard steps across its two TCs.
    if N >= 2 and _cdiv(N, g) < 2:
        g = _cdiv(N, 2)
    return g


def interaction_network_pallas(objects, sender_rel, receiver_rel,
                               relation_info, params, graphs_per_step=None):
    N, No, Do = objects.shape
    Nr = sender_rel.shape[-1]
    Dr = relation_info.shape[1]
    De = params["rel_w4"].shape[1]

    h_rel = params["rel_w2"].shape[0]
    h_obj = params["obj_w2"].shape[0]
    ph_rel = _round_up(h_rel, 128)
    ph_obj = _round_up(h_obj, 128)

    if graphs_per_step is None:
        G = _choose_graphs_per_step(N, No, Nr, Do, Dr, De, max(ph_rel, ph_obj))
    else:
        G = max(1, int(graphs_per_step))
    num_steps = _cdiv(N, G)
    n_pad = num_steps * G

    # --- HBM-side prep: transpose/stack the relation tensors and cast everything
    #     the MXU touches to bf16.  The transposes/concat fuse with the bf16
    #     convert into one XLA pass per input, so the kernel streams half the
    #     bytes and performs only last-dim contractions.  Receiver relations are
    #     streamed once; the kernel rebuilds the untransposed copy itself.
    obj = objects.astype(_BF16)                                        # [N, No, Do]
    srt = jnp.concatenate([jnp.swapaxes(sender_rel, 1, 2),
                           jnp.swapaxes(receiver_rel, 1, 2)],
                          axis=1).astype(_BF16)                        # [N, 2Nr, No]
    rat = jnp.swapaxes(relation_info, 1, 2).astype(_BF16)              # [N, Nr, Dr]

    if n_pad > N:   # pad with dummy graphs instead of requiring divisibility
        p = n_pad - N
        obj = jnp.pad(obj, ((0, p), (0, 0), (0, 0)))
        srt = jnp.pad(srt, ((0, p), (0, 0), (0, 0)))
        rat = jnp.pad(rat, ((0, p), (0, 0), (0, 0)))

    # --- weights: zero-pad hidden dims to lane-dense multiples of 128 and cast
    #     to bf16 (padded zeros provably contribute zero); biases stay f32 and
    #     are added to the f32 accumulators.  Split first-layer weight matrices
    #     realise the PyTorch dim-0 concats.
    def wpad(w, pad_in=None, pad_out=None):
        if pad_in is not None:
            w = _pad_to(w, 0, pad_in)
        if pad_out is not None:
            w = _pad_to(w, 1, pad_out)
        return w.astype(_BF16)

    def brow(b, target=None):
        b = b.reshape(1, -1).astype(jnp.float32)
        return _pad_to(b, 1, target) if target is not None else b

    rw1 = params["rel_w1"]
    ow1 = params["obj_w1"]
    weight_args = (
        wpad(rw1[:Do], None, ph_rel),                       # W1 (senders part)
        wpad(rw1[Do:2 * Do], None, ph_rel),                 # W1 (receivers part)
        wpad(rw1[2 * Do:], None, ph_rel),                   # W1 (relation part)
        brow(params["rel_b1"], ph_rel),
        wpad(params["rel_w2"], ph_rel, ph_rel), brow(params["rel_b2"], ph_rel),
        wpad(params["rel_w3"], ph_rel, ph_rel), brow(params["rel_b3"], ph_rel),
        wpad(params["rel_w4"], ph_rel, None), brow(params["rel_b4"]),
        wpad(ow1[:Do], None, ph_obj),                       # W1 (objects part)
        wpad(ow1[Do:], None, ph_obj),                       # W1 (effects part)
        brow(params["obj_b1"], ph_obj),
        wpad(params["obj_w2"], ph_obj, ph_obj), brow(params["obj_b2"], ph_obj),
        wpad(params["obj_w3"], ph_obj, None), brow(params["obj_b3"]),
    )

    def full_spec(a):
        nd = a.ndim
        # Constant index_map -> block is DMA'd once and reused on every step.
        return pl.BlockSpec(a.shape, lambda i, _nd=nd: (0,) * _nd)

    in_specs = [
        pl.BlockSpec((G, No, Do), lambda i: (i, 0, 0)),      # objects
        pl.BlockSpec((G, 2 * Nr, No), lambda i: (i, 0, 0)),  # [Rs^T ; Rr^T]
        pl.BlockSpec((G, Nr, Dr), lambda i: (i, 0, 0)),      # relation_info^T
    ] + [full_spec(w) for w in weight_args]

    out = pl.pallas_call(
        _in_kernel,
        out_shape=jax.ShapeDtypeStruct((n_pad, Nr, De), jnp.float32),
        grid=(num_steps,),
        in_specs=in_specs,
        out_specs=pl.BlockSpec((G, Nr, De), lambda i: (i, 0, 0)),
        compiler_params=pltpu.CompilerParams(
            dimension_semantics=("parallel",)),
    )(obj, srt, rat, *weight_args)
    return out[:N]


def init_params(key, object_dim, relation_dim, effect_dim,
                rel_hidden=250, obj_hidden=200):
    """Deterministic PyTorch-Linear-style init; weights stored [in, out]."""
    def linear(k, fan_in, fan_out):
        k1, k2 = jax.random.split(k)
        bound = 1.0 / float(fan_in) ** 0.5
        w = jax.random.uniform(k1, (fan_in, fan_out), jnp.float32, -bound, bound)
        b = jax.random.uniform(k2, (fan_out,), jnp.float32, -bound, bound)
        return w, b

    keys = jax.random.split(key, 7)
    rel_in = 2 * object_dim + relation_dim
    obj_in = object_dim + effect_dim
    p = {}
    p["rel_w1"], p["rel_b1"] = linear(keys[0], rel_in, rel_hidden)
    p["rel_w2"], p["rel_b2"] = linear(keys[1], rel_hidden, rel_hidden)
    p["rel_w3"], p["rel_b3"] = linear(keys[2], rel_hidden, rel_hidden)
    p["rel_w4"], p["rel_b4"] = linear(keys[3], rel_hidden, effect_dim)
    p["obj_w1"], p["obj_b1"] = linear(keys[4], obj_in, obj_hidden)
    p["obj_w2"], p["obj_b2"] = linear(keys[5], obj_hidden, obj_hidden)
    p["obj_w3"], p["obj_b3"] = linear(keys[6], obj_hidden, object_dim)
    return p


def interaction_network_ref(objects, sender_rel, receiver_rel,
                            relation_info, params):
    """Pure-JAX reference following the PyTorch forward literally (f32 HIGHEST)."""
    hp = jax.lax.Precision.HIGHEST

    def rel_mlp(x):
        h = jnp.maximum(jnp.dot(x, params["rel_w1"], precision=hp) + params["rel_b1"], 0.0)
        h = jnp.maximum(jnp.dot(h, params["rel_w2"], precision=hp) + params["rel_b2"], 0.0)
        h = jnp.maximum(jnp.dot(h, params["rel_w3"], precision=hp) + params["rel_b3"], 0.0)
        return jnp.dot(h, params["rel_w4"], precision=hp) + params["rel_b4"]

    def obj_mlp(x):
        h = jnp.maximum(jnp.dot(x, params["obj_w1"], precision=hp) + params["obj_b1"], 0.0)
        h = jnp.maximum(jnp.dot(h, params["obj_w2"], precision=hp) + params["obj_b2"], 0.0)
        return jnp.dot(h, params["obj_w3"], precision=hp) + params["obj_b3"]

    outs = []
    for i in range(objects.shape[0]):
        O, S, R, A = objects[i], sender_rel[i], receiver_rel[i], relation_info[i]
        senders = jnp.dot(O.T, S, precision=hp)
        receivers = jnp.dot(O.T, R, precision=hp)
        B = jnp.concatenate([senders, receivers, A], axis=0)      # [2Do+Dr, Nr]
        E = rel_mlp(B.T)                                          # [Nr, De]
        e_recv = jnp.dot(R, E, precision=hp).T                    # [De, No]
        C = jnp.concatenate([O.T, e_recv], axis=0)                # [Do+De, No]
        P = obj_mlp(C.T).T                                        # [Do, No]
        s2 = jnp.dot(P, S, precision=hp)
        r2 = jnp.dot(P, R, precision=hp)
        B2 = jnp.concatenate([s2, r2, A], axis=0)
        outs.append(rel_mlp(B2.T))
    return jnp.stack(outs)


if __name__ == "__main__":
    # N=5 deliberately not a multiple of graphs_per_step -> exercises the
    # pad-with-dummy-graphs path and a 2-step "parallel" grid.
    N, No, Nr = 5, 16, 32        # graphs, objects per graph, relations per graph
    Do, Dr, De = 8, 8, 16        # object_dim, relation_dim, effect_dim

    key = jax.random.PRNGKey(0)
    kp, ko, ks, kr, ka = jax.random.split(key, 5)
    params = init_params(kp, Do, Dr, De)

    objects = jax.random.uniform(ko, (N, No, Do), jnp.float32, -1.0, 1.0)
    send_idx = jax.random.randint(ks, (N, Nr), 0, No)
    recv_idx = jax.random.randint(kr, (N, Nr), 0, No)
    sender_rel = jax.nn.one_hot(send_idx, No, axis=1, dtype=jnp.float32)    # [N, No, Nr]
    receiver_rel = jax.nn.one_hot(recv_idx, No, axis=1, dtype=jnp.float32)  # [N, No, Nr]
    relation_info = jax.random.uniform(ka, (N, Dr, Nr), jnp.float32, -1.0, 1.0)

    out = jax.block_until_ready(
        interaction_network_pallas(objects, sender_rel, receiver_rel,
                                   relation_info, params))
    ref = jax.block_until_ready(
        interaction_network_ref(objects, sender_rel, receiver_rel,
                                relation_info, params))

    assert out.shape == (N, Nr, De), out.shape
    # NOTE: kernel uses bf16 MXU operands with f32 accumulation; reference uses
    # f32 HIGHEST precision, hence the loose (abs + rel) tolerance.
    max_err = float(jnp.max(jnp.abs(out - ref)))
    scale = float(jnp.max(jnp.abs(ref)))
    tol = 5e-2 * max(1.0, scale)
    if max_err > tol:
        raise AssertionError(f"mismatch vs reference: max |err| = {max_err} "
                             f"(tol = {tol})")
    print("KERNEL_OK")
</pallas_src>

<mosaic_0001>
module attributes {stable_mosaic.version = 11 : i64} {
  func.func @_in_kernel(%arg0: i32, %arg1: memref<3x16x8xbf16, #tpu.memory_space<vmem>>, %arg2: memref<3x64x16xbf16, #tpu.memory_space<vmem>>, %arg3: memref<3x32x8xbf16, #tpu.memory_space<vmem>>, %arg4: memref<8x256xbf16, #tpu.memory_space<vmem>>, %arg5: memref<8x256xbf16, #tpu.memory_space<vmem>>, %arg6: memref<8x256xbf16, #tpu.memory_space<vmem>>, %arg7: memref<1x256xf32, #tpu.memory_space<vmem>>, %arg8: memref<256x256xbf16, #tpu.memory_space<vmem>>, %arg9: memref<1x256xf32, #tpu.memory_space<vmem>>, %arg10: memref<256x256xbf16, #tpu.memory_space<vmem>>, %arg11: memref<1x256xf32, #tpu.memory_space<vmem>>, %arg12: memref<256x16xbf16, #tpu.memory_space<vmem>>, %arg13: memref<1x16xf32, #tpu.memory_space<vmem>>, %arg14: memref<8x256xbf16, #tpu.memory_space<vmem>>, %arg15: memref<16x256xbf16, #tpu.memory_space<vmem>>, %arg16: memref<1x256xf32, #tpu.memory_space<vmem>>, %arg17: memref<256x256xbf16, #tpu.memory_space<vmem>>, %arg18: memref<1x256xf32, #tpu.memory_space<vmem>>, %arg19: memref<256x8xbf16, #tpu.memory_space<vmem>>, %arg20: memref<1x8xf32, #tpu.memory_space<vmem>>, %arg21: memref<3x32x16xf32, #tpu.memory_space<vmem>>) attributes {dimension_semantics = [#tpu.dimension_semantics<parallel>], iteration_bounds = array<i64: 2>, scalar_prefetch = 0 : i64, scratch_operands = 0 : i64, tpu.core_type = #tpu.core_type<tc>, window_params = [{transform_indices = @transform_0, window_bounds = array<i64: 3, 16, 8>}, {transform_indices = @transform_1, window_bounds = array<i64: 3, 64, 16>}, {transform_indices = @transform_2, window_bounds = array<i64: 3, 32, 8>}, {pipeline_mode = #tpu.pipeline_mode<synchronous>, transform_indices = @transform_3, window_bounds = array<i64: 8, 256>}, {pipeline_mode = #tpu.pipeline_mode<synchronous>, transform_indices = @transform_4, window_bounds = array<i64: 8, 256>}, {pipeline_mode = #tpu.pipeline_mode<synchronous>, transform_indices = @transform_5, window_bounds = array<i64: 8, 256>}, {pipeline_mode = #tpu.pipeline_mode<synchronous>, transform_indices = @transform_6, window_bounds = array<i64: 1, 256>}, {pipeline_mode = #tpu.pipeline_mode<synchronous>, transform_indices = @transform_7, window_bounds = array<i64: 256, 256>}, {pipeline_mode = #tpu.pipeline_mode<synchronous>, transform_indices = @transform_8, window_bounds = array<i64: 1, 256>}, {pipeline_mode = #tpu.pipeline_mode<synchronous>, transform_indices = @transform_9, window_bounds = array<i64: 256, 256>}, {pipeline_mode = #tpu.pipeline_mode<synchronous>, transform_indices = @transform_10, window_bounds = array<i64: 1, 256>}, {pipeline_mode = #tpu.pipeline_mode<synchronous>, transform_indices = @transform_11, window_bounds = array<i64: 256, 16>}, {pipeline_mode = #tpu.pipeline_mode<synchronous>, transform_indices = @transform_12, window_bounds = array<i64: 1, 16>}, {pipeline_mode = #tpu.pipeline_mode<synchronous>, transform_indices = @transform_13, window_bounds = array<i64: 8, 256>}, {pipeline_mode = #tpu.pipeline_mode<synchronous>, transform_indices = @transform_14, window_bounds = array<i64: 16, 256>}, {pipeline_mode = #tpu.pipeline_mode<synchronous>, transform_indices = @transform_15, window_bounds = array<i64: 1, 256>}, {pipeline_mode = #tpu.pipeline_mode<synchronous>, transform_indices = @transform_16, window_bounds = array<i64: 256, 256>}, {pipeline_mode = #tpu.pipeline_mode<synchronous>, transform_indices = @transform_17, window_bounds = array<i64: 1, 256>}, {pipeline_mode = #tpu.pipeline_mode<synchronous>, transform_indices = @transform_18, window_bounds = array<i64: 256, 8>}, {pipeline_mode = #tpu.pipeline_mode<synchronous>, transform_indices = @transform_19, window_bounds = array<i64: 1, 8>}, {transform_indices = @transform_20, window_bounds = array<i64: 3, 32, 16>}]} {
    %c0 = arith.constant 0 : index
    %c0_0 = arith.constant 0 : index
    %c0_1 = arith.constant 0 : index
    %0 = vector.load %arg1[%c0, %c0_0, %c0_1] : memref<3x16x8xbf16, #tpu.memory_space<vmem>>, vector<3x16x8xbf16>
    %c0_2 = arith.constant 0 : index
    %c0_3 = arith.constant 0 : index
    %c0_4 = arith.constant 0 : index
    %1 = vector.load %arg2[%c0_2, %c0_3, %c0_4] : memref<3x64x16xbf16, #tpu.memory_space<vmem>>, vector<3x64x16xbf16>
    %c0_5 = arith.constant 0 : index
    %c0_6 = arith.constant 0 : index
    %c0_7 = arith.constant 0 : index
    %2 = vector.load %arg3[%c0_5, %c0_6, %c0_7] : memref<3x32x8xbf16, #tpu.memory_space<vmem>>, vector<3x32x8xbf16>
    %cst = arith.constant dense<0.000000e+00> : vector<3x64x8xf32>
    %3 = tpu.matmul %1, %0, %cst {dimension_numbers = #tpu.dot_dimension_numbers<[2], [1], [1], [2], [0, 0, 0, 1, 1, 2], [0], [0]>} : vector<3x64x16xbf16>, vector<3x16x8xbf16>, vector<3x64x8xf32> -> vector<3x64x8xf32>
    %4 = arith.truncf %3 : vector<3x64x8xf32> to vector<3x64x8xbf16>
    %5 = vector.extract_strided_slice %4 {offsets = [0, 0, 0], sizes = [3, 32, 8], strides = [1, 1, 1]} : vector<3x64x8xbf16> to vector<3x32x8xbf16>
    %6 = vector.shape_cast %5 : vector<3x32x8xbf16> to vector<96x8xbf16>
    %7 = vector.extract_strided_slice %4 {offsets = [0, 32, 0], sizes = [3, 32, 8], strides = [1, 1, 1]} : vector<3x64x8xbf16> to vector<3x32x8xbf16>
    %8 = vector.shape_cast %7 : vector<3x32x8xbf16> to vector<96x8xbf16>
    %9 = vector.shape_cast %2 : vector<3x32x8xbf16> to vector<96x8xbf16>
    %c0_8 = arith.constant 0 : index
    %c0_9 = arith.constant 0 : index
    %10 = vector.load %arg4[%c0_8, %c0_9] : memref<8x256xbf16, #tpu.memory_space<vmem>>, vector<8x256xbf16>
    %cst_10 = arith.constant dense<0.000000e+00> : vector<96x256xf32>
    %11 = tpu.matmul %6, %10, %cst_10 {dimension_numbers = #tpu.dot_dimension_numbers<[1], [0], [0], [1], [0, 0, 1, 1], [], []>} : vector<96x8xbf16>, vector<8x256xbf16>, vector<96x256xf32> -> vector<96x256xf32>
    %c0_11 = arith.constant 0 : index
    %c0_12 = arith.constant 0 : index
    %12 = vector.load %arg5[%c0_11, %c0_12] : memref<8x256xbf16, #tpu.memory_space<vmem>>, vector<8x256xbf16>
    %cst_13 = arith.constant dense<0.000000e+00> : vector<96x256xf32>
    %13 = tpu.matmul %8, %12, %cst_13 {dimension_numbers = #tpu.dot_dimension_numbers<[1], [0], [0], [1], [0, 0, 1, 1], [], []>} : vector<96x8xbf16>, vector<8x256xbf16>, vector<96x256xf32> -> vector<96x256xf32>
    %14 = arith.addf %11, %13 : vector<96x256xf32>
    %c0_14 = arith.constant 0 : index
    %c0_15 = arith.constant 0 : index
    %15 = vector.load %arg6[%c0_14, %c0_15] : memref<8x256xbf16, #tpu.memory_space<vmem>>, vector<8x256xbf16>
    %cst_16 = arith.constant dense<0.000000e+00> : vector<96x256xf32>
    %16 = tpu.matmul %9, %15, %cst_16 {dimension_numbers = #tpu.dot_dimension_numbers<[1], [0], [0], [1], [0, 0, 1, 1], [], []>} : vector<96x8xbf16>, vector<8x256xbf16>, vector<96x256xf32> -> vector<96x256xf32>
    %17 = arith.addf %14, %16 : vector<96x256xf32>
    %c0_17 = arith.constant 0 : index
    %c0_18 = arith.constant 0 : index
    %18 = vector.load %arg7[%c0_17, %c0_18] : memref<1x256xf32, #tpu.memory_space<vmem>>, vector<1x256xf32>
    %19 = vector.broadcast %18 : vector<1x256xf32> to vector<96x256xf32>
    %20 = arith.addf %17, %19 : vector<96x256xf32>
    %cst_19 = arith.constant 0.000000e+00 : f32
    %21 = vector.broadcast %cst_19 : f32 to vector<96x256xf32>
    %22 = arith.maximumf %20, %21 : vector<96x256xf32>
    %23 = arith.truncf %22 : vector<96x256xf32> to vector<96x256xbf16>
    %c0_20 = arith.constant 0 : index
    %c0_21 = arith.constant 0 : index
    %24 = vector.load %arg8[%c0_20, %c0_21] : memref<256x256xbf16, #tpu.memory_space<vmem>>, vector<256x256xbf16>
    %cst_22 = arith.constant dense<0.000000e+00> : vector<96x256xf32>
    %25 = tpu.matmul %23, %24, %cst_22 {dimension_numbers = #tpu.dot_dimension_numbers<[1], [0], [0], [1], [0, 0, 1, 1], [], []>} : vector<96x256xbf16>, vector<256x256xbf16>, vector<96x256xf32> -> vector<96x256xf32>
    %c0_23 = arith.constant 0 : index
    %c0_24 = arith.constant 0 : index
    %26 = vector.load %arg9[%c0_23, %c0_24] : memref<1x256xf32, #tpu.memory_space<vmem>>, vector<1x256xf32>
    %27 = vector.broadcast %26 : vector<1x256xf32> to vector<96x256xf32>
    %28 = arith.addf %25, %27 : vector<96x256xf32>
    %cst_25 = arith.constant 0.000000e+00 : f32
    %29 = vector.broadcast %cst_25 : f32 to vector<96x256xf32>
    %30 = arith.maximumf %28, %29 : vector<96x256xf32>
    %31 = arith.truncf %30 : vector<96x256xf32> to vector<96x256xbf16>
    %c0_26 = arith.constant 0 : index
    %c0_27 = arith.constant 0 : index
    %32 = vector.load %arg10[%c0_26, %c0_27] : memref<256x256xbf16, #tpu.memory_space<vmem>>, vector<256x256xbf16>
    %cst_28 = arith.constant dense<0.000000e+00> : vector<96x256xf32>
    %33 = tpu.matmul %31, %32, %cst_28 {dimension_numbers = #tpu.dot_dimension_numbers<[1], [0], [0], [1], [0, 0, 1, 1], [], []>} : vector<96x256xbf16>, vector<256x256xbf16>, vector<96x256xf32> -> vector<96x256xf32>
    %c0_29 = arith.constant 0 : index
    %c0_30 = arith.constant 0 : index
    %34 = vector.load %arg11[%c0_29, %c0_30] : memref<1x256xf32, #tpu.memory_space<vmem>>, vector<1x256xf32>
    %35 = vector.broadcast %34 : vector<1x256xf32> to vector<96x256xf32>
    %36 = arith.addf %33, %35 : vector<96x256xf32>
    %cst_31 = arith.constant 0.000000e+00 : f32
    %37 = vector.broadcast %cst_31 : f32 to vector<96x256xf32>
    %38 = arith.maximumf %36, %37 : vector<96x256xf32>
    %39 = arith.truncf %38 : vector<96x256xf32> to vector<96x256xbf16>
    %c0_32 = arith.constant 0 : index
    %c0_33 = arith.constant 0 : index
    %40 = vector.load %arg12[%c0_32, %c0_33] : memref<256x16xbf16, #tpu.memory_space<vmem>>, vector<256x16xbf16>
    %cst_34 = arith.constant dense<0.000000e+00> : vector<96x16xf32>
    %41 = tpu.matmul %39, %40, %cst_34 {dimension_numbers = #tpu.dot_dimension_numbers<[1], [0], [0], [1], [0, 0, 1, 1], [], []>} : vector<96x256xbf16>, vector<256x16xbf16>, vector<96x16xf32> -> vector<96x16xf32>
    %c0_35 = arith.constant 0 : index
    %c0_36 = arith.constant 0 : index
    %42 = vector.load %arg13[%c0_35, %c0_36] : memref<1x16xf32, #tpu.memory_space<vmem>>, vector<1x16xf32>
    %43 = vector.broadcast %42 : vector<1x16xf32> to vector<96x16xf32>
    %44 = arith.addf %41, %43 : vector<96x16xf32>
    %45 = vector.extract_strided_slice %1 {offsets = [0, 32, 0], sizes = [3, 32, 16], strides = [1, 1, 1]} : vector<3x64x16xbf16> to vector<3x32x16xbf16>
    %46 = arith.extf %45 : vector<3x32x16xbf16> to vector<3x32x16xf32>
    %47 = vector.extract_strided_slice %46 {offsets = [0, 0, 0], sizes = [1, 32, 16], strides = [1, 1, 1]} : vector<3x32x16xf32> to vector<1x32x16xf32>
    %48 = vector.shape_cast %47 : vector<1x32x16xf32> to vector<32x16xf32>
    %49 = tpu.transpose %48, [1, 0] : vector<32x16xf32> -> vector<16x32xf32>
    %50 = vector.extract_strided_slice %44 {offsets = [0, 0], sizes = [32, 16], strides = [1, 1]} : vector<96x16xf32> to vector<32x16xf32>
    %cst_37 = arith.constant dense<0.000000e+00> : vector<16x16xf32>
    %51 = tpu.matmul %49, %50, %cst_37 {dimension_numbers = #tpu.dot_dimension_numbers<[1], [0], [0], [1], [0, 0, 1, 1], [], []>} : vector<16x32xf32>, vector<32x16xf32>, vector<16x16xf32> -> vector<16x16xf32>
    %52 = vector.extract_strided_slice %46 {offsets = [1, 0, 0], sizes = [1, 32, 16], strides = [1, 1, 1]} : vector<3x32x16xf32> to vector<1x32x16xf32>
    %53 = vector.shape_cast %52 : vector<1x32x16xf32> to vector<32x16xf32>
    %54 = tpu.transpose %53, [1, 0] : vector<32x16xf32> -> vector<16x32xf32>
    %55 = vector.extract_strided_slice %44 {offsets = [32, 0], sizes = [32, 16], strides = [1, 1]} : vector<96x16xf32> to vector<32x16xf32>
    %cst_38 = arith.constant dense<0.000000e+00> : vector<16x16xf32>
    %56 = tpu.matmul %54, %55, %cst_38 {dimension_numbers = #tpu.dot_dimension_numbers<[1], [0], [0], [1], [0, 0, 1, 1], [], []>} : vector<16x32xf32>, vector<32x16xf32>, vector<16x16xf32> -> vector<16x16xf32>
    %57 = vector.extract_strided_slice %46 {offsets = [2, 0, 0], sizes = [1, 32, 16], strides = [1, 1, 1]} : vector<3x32x16xf32> to vector<1x32x16xf32>
    %58 = vector.shape_cast %57 : vector<1x32x16xf32> to vector<32x16xf32>
    %59 = tpu.transpose %58, [1, 0] : vector<32x16xf32> -> vector<16x32xf32>
    %60 = vector.extract_strided_slice %44 {offsets = [64, 0], sizes = [32, 16], strides = [1, 1]} : vector<96x16xf32> to vector<32x16xf32>
    %cst_39 = arith.constant dense<0.000000e+00> : vector<16x16xf32>
    %61 = tpu.matmul %59, %60, %cst_39 {dimension_numbers = #tpu.dot_dimension_numbers<[1], [0], [0], [1], [0, 0, 1, 1], [], []>} : vector<16x32xf32>, vector<32x16xf32>, vector<16x16xf32> -> vector<16x16xf32>
    %62 = tpu.concatenate %51, %56, %61 in 0 : vector<16x16xf32>, vector<16x16xf32>, vector<16x16xf32> -> vector<48x16xf32>
    %63 = arith.truncf %62 : vector<48x16xf32> to vector<48x16xbf16>
    %64 = vector.shape_cast %0 : vector<3x16x8xbf16> to vector<48x8xbf16>
    %c0_40 = arith.constant 0 : index
    %c0_41 = arith.constant 0 : index
    %65 = vector.load %arg14[%c0_40, %c0_41] : memref<8x256xbf16, #tpu.memory_space<vmem>>, vector<8x256xbf16>
    %cst_42 = arith.constant dense<0.000000e+00> : vector<48x256xf32>
    %66 = tpu.matmul %64, %65, %cst_42 {dimension_numbers = #tpu.dot_dimension_numbers<[1], [0], [0], [1], [0, 0, 1, 1], [], []>} : vector<48x8xbf16>, vector<8x256xbf16>, vector<48x256xf32> -> vector<48x256xf32>
    %c0_43 = arith.constant 0 : index
    %c0_44 = arith.constant 0 : index
    %67 = vector.load %arg15[%c0_43, %c0_44] : memref<16x256xbf16, #tpu.memory_space<vmem>>, vector<16x256xbf16>
    %cst_45 = arith.constant dense<0.000000e+00> : vector<48x256xf32>
    %68 = tpu.matmul %63, %67, %cst_45 {dimension_numbers = #tpu.dot_dimension_numbers<[1], [0], [0], [1], [0, 0, 1, 1], [], []>} : vector<48x16xbf16>, vector<16x256xbf16>, vector<48x256xf32> -> vector<48x256xf32>
    %69 = arith.addf %66, %68 : vector<48x256xf32>
    %c0_46 = arith.constant 0 : index
    %c0_47 = arith.constant 0 : index
    %70 = vector.load %arg16[%c0_46, %c0_47] : memref<1x256xf32, #tpu.memory_space<vmem>>, vector<1x256xf32>
    %71 = vector.broadcast %70 : vector<1x256xf32> to vector<48x256xf32>
    %72 = arith.addf %69, %71 : vector<48x256xf32>
    %cst_48 = arith.constant 0.000000e+00 : f32
    %73 = vector.broadcast %cst_48 : f32 to vector<48x256xf32>
    %74 = arith.maximumf %72, %73 : vector<48x256xf32>
    %75 = arith.truncf %74 : vector<48x256xf32> to vector<48x256xbf16>
    %c0_49 = arith.constant 0 : index
    %c0_50 = arith.constant 0 : index
    %76 = vector.load %arg17[%c0_49, %c0_50] : memref<256x256xbf16, #tpu.memory_space<vmem>>, vector<256x256xbf16>
    %cst_51 = arith.constant dense<0.000000e+00> : vector<48x256xf32>
    %77 = tpu.matmul %75, %76, %cst_51 {dimension_numbers = #tpu.dot_dimension_numbers<[1], [0], [0], [1], [0, 0, 1, 1], [], []>} : vector<48x256xbf16>, vector<256x256xbf16>, vector<48x256xf32> -> vector<48x256xf32>
    %c0_52 = arith.constant 0 : index
    %c0_53 = arith.constant 0 : index
    %78 = vector.load %arg18[%c0_52, %c0_53] : memref<1x256xf32, #tpu.memory_space<vmem>>, vector<1x256xf32>
    %79 = vector.broadcast %78 : vector<1x256xf32> to vector<48x256xf32>
    %80 = arith.addf %77, %79 : vector<48x256xf32>
    %cst_54 = arith.constant 0.000000e+00 : f32
    %81 = vector.broadcast %cst_54 : f32 to vector<48x256xf32>
    %82 = arith.maximumf %80, %81 : vector<48x256xf32>
    %83 = arith.truncf %82 : vector<48x256xf32> to vector<48x256xbf16>
    %c0_55 = arith.constant 0 : index
    %c0_56 = arith.constant 0 : index
    %84 = vector.load %arg19[%c0_55, %c0_56] : memref<256x8xbf16, #tpu.memory_space<vmem>>, vector<256x8xbf16>
    %cst_57 = arith.constant dense<0.000000e+00> : vector<48x8xf32>
    %85 = tpu.matmul %83, %84, %cst_57 {dimension_numbers = #tpu.dot_dimension_numbers<[1], [0], [0], [1], [0, 0, 1, 1], [], []>} : vector<48x256xbf16>, vector<256x8xbf16>, vector<48x8xf32> -> vector<48x8xf32>
    %c0_58 = arith.constant 0 : index
    %c0_59 = arith.constant 0 : index
    %86 = vector.load %arg20[%c0_58, %c0_59] : memref<1x8xf32, #tpu.memory_space<vmem>>, vector<1x8xf32>
    %87 = vector.broadcast %86 : vector<1x8xf32> to vector<48x8xf32>
    %88 = arith.addf %85, %87 : vector<48x8xf32>
    %89 = vector.shape_cast %88 : vector<48x8xf32> to vector<3x16x8xf32>
    %90 = arith.truncf %89 : vector<3x16x8xf32> to vector<3x16x8xbf16>
    %cst_60 = arith.constant dense<0.000000e+00> : vector<3x64x8xf32>
    %91 = tpu.matmul %1, %90, %cst_60 {dimension_numbers = #tpu.dot_dimension_numbers<[2], [1], [1], [2], [0, 0, 0, 1, 1, 2], [0], [0]>} : vector<3x64x16xbf16>, vector<3x16x8xbf16>, vector<3x64x8xf32> -> vector<3x64x8xf32>
    %92 = arith.truncf %91 : vector<3x64x8xf32> to vector<3x64x8xbf16>
    %93 = vector.extract_strided_slice %92 {offsets = [0, 0, 0], sizes = [3, 32, 8], strides = [1, 1, 1]} : vector<3x64x8xbf16> to vector<3x32x8xbf16>
    %94 = vector.shape_cast %93 : vector<3x32x8xbf16> to vector<96x8xbf16>
    %95 = vector.extract_strided_slice %92 {offsets = [0, 32, 0], sizes = [3, 32, 8], strides = [1, 1, 1]} : vector<3x64x8xbf16> to vector<3x32x8xbf16>
    %96 = vector.shape_cast %95 : vector<3x32x8xbf16> to vector<96x8xbf16>
    %c0_61 = arith.constant 0 : index
    %c0_62 = arith.constant 0 : index
    %97 = vector.load %arg4[%c0_61, %c0_62] : memref<8x256xbf16, #tpu.memory_space<vmem>>, vector<8x256xbf16>
    %cst_63 = arith.constant dense<0.000000e+00> : vector<96x256xf32>
    %98 = tpu.matmul %94, %97, %cst_63 {dimension_numbers = #tpu.dot_dimension_numbers<[1], [0], [0], [1], [0, 0, 1, 1], [], []>} : vector<96x8xbf16>, vector<8x256xbf16>, vector<96x256xf32> -> vector<96x256xf32>
    %c0_64 = arith.constant 0 : index
    %c0_65 = arith.constant 0 : index
    %99 = vector.load %arg5[%c0_64, %c0_65] : memref<8x256xbf16, #tpu.memory_space<vmem>>, vector<8x256xbf16>
    %cst_66 = arith.constant dense<0.000000e+00> : vector<96x256xf32>
    %100 = tpu.matmul %96, %99, %cst_66 {dimension_numbers = #tpu.dot_dimension_numbers<[1], [0], [0], [1], [0, 0, 1, 1], [], []>} : vector<96x8xbf16>, vector<8x256xbf16>, vector<96x256xf32> -> vector<96x256xf32>
    %101 = arith.addf %98, %100 : vector<96x256xf32>
    %c0_67 = arith.constant 0 : index
    %c0_68 = arith.constant 0 : index
    %102 = vector.load %arg6[%c0_67, %c0_68] : memref<8x256xbf16, #tpu.memory_space<vmem>>, vector<8x256xbf16>
    %cst_69 = arith.constant dense<0.000000e+00> : vector<96x256xf32>
    %103 = tpu.matmul %9, %102, %cst_69 {dimension_numbers = #tpu.dot_dimension_numbers<[1], [0], [0], [1], [0, 0, 1, 1], [], []>} : vector<96x8xbf16>, vector<8x256xbf16>, vector<96x256xf32> -> vector<96x256xf32>
    %104 = arith.addf %101, %103 : vector<96x256xf32>
    %c0_70 = arith.constant 0 : index
    %c0_71 = arith.constant 0 : index
    %105 = vector.load %arg7[%c0_70, %c0_71] : memref<1x256xf32, #tpu.memory_space<vmem>>, vector<1x256xf32>
    %106 = vector.broadcast %105 : vector<1x256xf32> to vector<96x256xf32>
    %107 = arith.addf %104, %106 : vector<96x256xf32>
    %cst_72 = arith.constant 0.000000e+00 : f32
    %108 = vector.broadcast %cst_72 : f32 to vector<96x256xf32>
    %109 = arith.maximumf %107, %108 : vector<96x256xf32>
    %110 = arith.truncf %109 : vector<96x256xf32> to vector<96x256xbf16>
    %c0_73 = arith.constant 0 : index
    %c0_74 = arith.constant 0 : index
    %111 = vector.load %arg8[%c0_73, %c0_74] : memref<256x256xbf16, #tpu.memory_space<vmem>>, vector<256x256xbf16>
    %cst_75 = arith.constant dense<0.000000e+00> : vector<96x256xf32>
    %112 = tpu.matmul %110, %111, %cst_75 {dimension_numbers = #tpu.dot_dimension_numbers<[1], [0], [0], [1], [0, 0, 1, 1], [], []>} : vector<96x256xbf16>, vector<256x256xbf16>, vector<96x256xf32> -> vector<96x256xf32>
    %c0_76 = arith.constant 0 : index
    %c0_77 = arith.constant 0 : index
    %113 = vector.load %arg9[%c0_76, %c0_77] : memref<1x256xf32, #tpu.memory_space<vmem>>, vector<1x256xf32>
    %114 = vector.broadcast %113 : vector<1x256xf32> to vector<96x256xf32>
    %115 = arith.addf %112, %114 : vector<96x256xf32>
    %cst_78 = arith.constant 0.000000e+00 : f32
    %116 = vector.broadcast %cst_78 : f32 to vector<96x256xf32>
    %117 = arith.maximumf %115, %116 : vector<96x256xf32>
    %118 = arith.truncf %117 : vector<96x256xf32> to vector<96x256xbf16>
    %c0_79 = arith.constant 0 : index
    %c0_80 = arith.constant 0 : index
    %119 = vector.load %arg10[%c0_79, %c0_80] : memref<256x256xbf16, #tpu.memory_space<vmem>>, vector<256x256xbf16>
    %cst_81 = arith.constant dense<0.000000e+00> : vector<96x256xf32>
    %120 = tpu.matmul %118, %119, %cst_81 {dimension_numbers = #tpu.dot_dimension_numbers<[1], [0], [0], [1], [0, 0, 1, 1], [], []>} : vector<96x256xbf16>, vector<256x256xbf16>, vector<96x256xf32> -> vector<96x256xf32>
    %c0_82 = arith.constant 0 : index
    %c0_83 = arith.constant 0 : index
    %121 = vector.load %arg11[%c0_82, %c0_83] : memref<1x256xf32, #tpu.memory_space<vmem>>, vector<1x256xf32>
    %122 = vector.broadcast %121 : vector<1x256xf32> to vector<96x256xf32>
    %123 = arith.addf %120, %122 : vector<96x256xf32>
    %cst_84 = arith.constant 0.000000e+00 : f32
    %124 = vector.broadcast %cst_84 : f32 to vector<96x256xf32>
    %125 = arith.maximumf %123, %124 : vector<96x256xf32>
    %126 = arith.truncf %125 : vector<96x256xf32> to vector<96x256xbf16>
    %c0_85 = arith.constant 0 : index
    %c0_86 = arith.constant 0 : index
    %127 = vector.load %arg12[%c0_85, %c0_86] : memref<256x16xbf16, #tpu.memory_space<vmem>>, vector<256x16xbf16>
    %cst_87 = arith.constant dense<0.000000e+00> : vector<96x16xf32>
    %128 = tpu.matmul %126, %127, %cst_87 {dimension_numbers = #tpu.dot_dimension_numbers<[1], [0], [0], [1], [0, 0, 1, 1], [], []>} : vector<96x256xbf16>, vector<256x16xbf16>, vector<96x16xf32> -> vector<96x16xf32>
    %c0_88 = arith.constant 0 : index
    %c0_89 = arith.constant 0 : index
    %129 = vector.load %arg13[%c0_88, %c0_89] : memref<1x16xf32, #tpu.memory_space<vmem>>, vector<1x16xf32>
    %130 = vector.broadcast %129 : vector<1x16xf32> to vector<96x16xf32>
    %131 = arith.addf %128, %130 : vector<96x16xf32>
    %132 = vector.shape_cast %131 : vector<96x16xf32> to vector<3x32x16xf32>
    %c0_90 = arith.constant 0 : index
    %c0_91 = arith.constant 0 : index
    %c0_92 = arith.constant 0 : index
    %133 = vector.load %arg21[%c0_90, %c0_91, %c0_92] : memref<3x32x16xf32, #tpu.memory_space<vmem>>, vector<3x32x16xf32>
    tpu.vector_store %arg21[%c0_90, %c0_91, %c0_92], %132 {strides = array<i32>} : memref<3x32x16xf32, #tpu.memory_space<vmem>>, vector<3x32x16xf32>,
    return
  }
  func.func @transform_0(%arg0: i32) -> (i32, i32, i32) {
    %c0_i32 = arith.constant 0 : i32
    %c0_i32_0 = arith.constant 0 : i32
    %c0_i32_1 = arith.constant 0 : i32
    return %arg0, %c0_i32, %c0_i32_0 : i32, i32, i32
  }
  func.func @transform_1(%arg0: i32) -> (i32, i32, i32) {
    %c0_i32 = arith.constant 0 : i32
    %c0_i32_0 = arith.constant 0 : i32
    %c0_i32_1 = arith.constant 0 : i32
    return %arg0, %c0_i32, %c0_i32_0 : i32, i32, i32
  }
  func.func @transform_2(%arg0: i32) -> (i32, i32, i32) {
    %c0_i32 = arith.constant 0 : i32
    %c0_i32_0 = arith.constant 0 : i32
    %c0_i32_1 = arith.constant 0 : i32
    return %arg0, %c0_i32, %c0_i32_0 : i32, i32, i32
  }
  func.func @transform_3(%arg0: i32) -> (i32, i32) {
    %c0_i32 = arith.constant 0 : i32
    %c0_i32_0 = arith.constant 0 : i32
    %c0_i32_1 = arith.constant 0 : i32
    return %c0_i32, %c0_i32_0 : i32, i32
  }
  func.func @transform_4(%arg0: i32) -> (i32, i32) {
    %c0_i32 = arith.constant 0 : i32
    %c0_i32_0 = arith.constant 0 : i32
    %c0_i32_1 = arith.constant 0 : i32
    return %c0_i32, %c0_i32_0 : i32, i32
  }
  func.func @transform_5(%arg0: i32) -> (i32, i32) {
    %c0_i32 = arith.constant 0 : i32
    %c0_i32_0 = arith.constant 0 : i32
    %c0_i32_1 = arith.constant 0 : i32
    return %c0_i32, %c0_i32_0 : i32, i32
  }
  func.func @transform_6(%arg0: i32) -> (i32, i32) {
    %c0_i32 = arith.constant 0 : i32
    %c0_i32_0 = arith.constant 0 : i32
    %c0_i32_1 = arith.constant 0 : i32
    return %c0_i32, %c0_i32_0 : i32, i32
  }
  func.func @transform_7(%arg0: i32) -> (i32, i32) {
    %c0_i32 = arith.constant 0 : i32
    %c0_i32_0 = arith.constant 0 : i32
    %c0_i32_1 = arith.constant 0 : i32
    return %c0_i32, %c0_i32_0 : i32, i32
  }
  func.func @transform_8(%arg0: i32) -> (i32, i32) {
    %c0_i32 = arith.constant 0 : i32
    %c0_i32_0 = arith.constant 0 : i32
    %c0_i32_1 = arith.constant 0 : i32
    return %c0_i32, %c0_i32_0 : i32, i32
  }
  func.func @transform_9(%arg0: i32) -> (i32, i32) {
    %c0_i32 = arith.constant 0 : i32
    %c0_i32_0 = arith.constant 0 : i32
    %c0_i32_1 = arith.constant 0 : i32
    return %c0_i32, %c0_i32_0 : i32, i32
  }
  func.func @transform_10(%arg0: i32) -> (i32, i32) {
    %c0_i32 = arith.constant 0 : i32
    %c0_i32_0 = arith.constant 0 : i32
    %c0_i32_1 = arith.constant 0 : i32
    return %c0_i32, %c0_i32_0 : i32, i32
  }
  func.func @transform_11(%arg0: i32) -> (i32, i32) {
    %c0_i32 = arith.constant 0 : i32
    %c0_i32_0 = arith.constant 0 : i32
    %c0_i32_1 = arith.constant 0 : i32
    return %c0_i32, %c0_i32_0 : i32, i32
  }
  func.func @transform_12(%arg0: i32) -> (i32, i32) {
    %c0_i32 = arith.constant 0 : i32
    %c0_i32_0 = arith.constant 0 : i32
    %c0_i32_1 = arith.constant 0 : i32
    return %c0_i32, %c0_i32_0 : i32, i32
  }
  func.func @transform_13(%arg0: i32) -> (i32, i32) {
    %c0_i32 = arith.constant 0 : i32
    %c0_i32_0 = arith.constant 0 : i32
    %c0_i32_1 = arith.constant 0 : i32
    return %c0_i32, %c0_i32_0 : i32, i32
  }
  func.func @transform_14(%arg0: i32) -> (i32, i32) {
    %c0_i32 = arith.constant 0 : i32
    %c0_i32_0 = arith.constant 0 : i32
    %c0_i32_1 = arith.constant 0 : i32
    return %c0_i32, %c0_i32_0 : i32, i32
  }
  func.func @transform_15(%arg0: i32) -> (i32, i32) {
    %c0_i32 = arith.constant 0 : i32
    %c0_i32_0 = arith.constant 0 : i32
    %c0_i32_1 = arith.constant 0 : i32
    return %c0_i32, %c0_i32_0 : i32, i32
  }
  func.func @transform_16(%arg0: i32) -> (i32, i32) {
    %c0_i32 = arith.constant 0 : i32
    %c0_i32_0 = arith.constant 0 : i32
    %c0_i32_1 = arith.constant 0 : i32
    return %c0_i32, %c0_i32_0 : i32, i32
  }
  func.func @transform_17(%arg0: i32) -> (i32, i32) {
    %c0_i32 = arith.constant 0 : i32
    %c0_i32_0 = arith.constant 0 : i32
    %c0_i32_1 = arith.constant 0 : i32
    return %c0_i32, %c0_i32_0 : i32, i32
  }
  func.func @transform_18(%arg0: i32) -> (i32, i32) {
    %c0_i32 = arith.constant 0 : i32
    %c0_i32_0 = arith.constant 0 : i32
    %c0_i32_1 = arith.constant 0 : i32
    return %c0_i32, %c0_i32_0 : i32, i32
  }
  func.func @transform_19(%arg0: i32) -> (i32, i32) {
    %c0_i32 = arith.constant 0 : i32
    %c0_i32_0 = arith.constant 0 : i32
    %c0_i32_1 = arith.constant 0 : i32
    return %c0_i32, %c0_i32_0 : i32, i32
  }
  func.func @transform_20(%arg0: i32) -> (i32, i32, i32) {
    %c0_i32 = arith.constant 0 : i32
    %c0_i32_0 = arith.constant 0 : i32
    %c0_i32_1 = arith.constant 0 : i32
    return %arg0, %c0_i32, %c0_i32_0 : i32, i32, i32
  }
}

</mosaic_0001>

<bundles_post_ra>
// kernel: tpu_custom_call.1
= control target key start
LH: loop header
LB: loop body
LE: loop exit
PB: predicated region body
PF: predicated region fallthrough
CT: control target
= control target key end

     0   :  { %s7674_s0 = inlined_call_operand.vmem [shape: bf16[6,16,8], index: 0, kind: input, shape index: {}]   ;;  %s7675_s1 = inlined_call_operand.vmem [shape: bf16[6,64,16], index: 1, kind: input, shape index: {}]   ;;  %s7676_s2 = inlined_call_operand.vmem [shape: bf16[6,32,8], index: 2, kind: input, shape index: {}]   ;;  %s7677_s3 = inlined_call_operand.hbm [shape: bf16[8,256], index: 3, kind: input, shape index: {}]   ;;  %s7678_s4 = inlined_call_operand.hbm [shape: bf16[8,256], index: 4, kind: input, shape index: {}]   ;;  %s7679_s5 = inlined_call_operand.hbm [shape: bf16[8,256], index: 5, kind: input, shape index: {}]   ;;  %s7680_s6 = inlined_call_operand.hbm [shape: f32[1,256], index: 6, kind: input, shape index: {}]   ;;  %s7681_s7 = inlined_call_operand.vmem [shape: bf16[256,256], index: 7, kind: input, shape index: {}]   ;;  %s7682_s8 = inlined_call_operand.hbm [shape: f32[1,256], index: 8, kind: input, shape index: {}]   ;;  %s7683_s9 = inlined_call_operand.vmem [shape: bf16[256,256], index: 9, kind: input, shape index: {}]   ;;  %s7684_s10 = inlined_call_operand.hbm [shape: f32[1,256], index: 10, kind: input, shape index: {}]   ;;  %s7685_s11 = inlined_call_operand.vmem [shape: bf16[256,16], index: 11, kind: input, shape index: {}]   ;;  %s7686_s12 = inlined_call_operand.hbm [shape: f32[1,16], index: 12, kind: input, shape index: {}]   ;;  %s7687_s13 = inlined_call_operand.hbm [shape: bf16[8,256], index: 13, kind: input, shape index: {}]   ;;  %s7688_s14 = inlined_call_operand.hbm [shape: bf16[16,256], index: 14, kind: input, shape index: {}]   ;;  %s7689_s15 = inlined_call_operand.hbm [shape: f32[1,256], index: 15, kind: input, shape index: {}]   ;;  %s7690_s16 = inlined_call_operand.vmem [shape: bf16[256,256], index: 16, kind: input, shape index: {}]   ;;  %s7691_s17 = inlined_call_operand.hbm [shape: f32[1,256], index: 17, kind: input, shape index: {}]   ;;  %s7692_s18 = inlined_call_operand.vmem [shape: bf16[256,8], index: 18, kind: input, shape index: {}]   ;;  %s7693_s19 = inlined_call_operand.vmem [shape: f32[1,8], index: 19, kind: input, shape index: {}]   ;;  %s7694_s20 = inlined_call_operand.vmem [shape: f32[6,32,16], index: 20, kind: output, shape index: {}]  }
   0x1   :  { %7710 = sst [smem:[#allocation27_spill]] %s7674_s0 }
   0x2   :  { %7711 = sst [smem:[#allocation28_spill]] %s7675_s1 }
   0x3   :  { %7712 = sst [smem:[#allocation29_spill]] %s7676_s2 }
   0x4   :  { %7713 = sst [smem:[#allocation30_spill]] %s7677_s3 }
   0x5   :  { %7714 = sst [smem:[#allocation31_spill]] %s7678_s4 }
   0x6   :  { %7715 = sst [smem:[#allocation32_spill]] %s7680_s6 }
   0x7   :  { %7716 = sst [smem:[#allocation33_spill]] %s7690_s16 }
   0x8   :  { %7717 = sst [smem:[#allocation34_spill]] %s7692_s18 }
   0x9   :  { %7718 = sst [smem:[#allocation35_spill]] %s7693_s19 }
   0xa   :  { %7719 = sst [smem:[#allocation36_spill]] %s7694_s20 }
   0xb   :  { %25 = vsyncpa [#allocation3], 0 }
   0xc   :  { %26 = vsyncpa [#allocation5], 0 }
   0xd   :  { %27 = vsyncpa [#allocation8], 0 }
   0xe   :  { %28 = vsyncpa [#allocation11], 0 }
   0xf   :  { %29 = vsyncpa [#allocation14], 0 }
  0x10   :  { %30 = vsyncpa [#allocation17], 0  ;;  %s6201_s1 = smov 0  }
  0x11 LB: > { %s6082_s22 = smov [#allocation4]   ;;  %s7697_s24 = sadd.s32 4294967295, %s6080_s1   ;;  %s6080_s1 = sphi %s6201_s1, %s36_s1  }
  0x12   : > { %s526_s23 = sshll.u32 %s6082_s22, 4  ;;  %p4672_p0 = scmp.ge.s32.totalorder %s6080_s1, 1  ;;  %s6215_s23 = int_to_ptr.vmem [resolvable:$true] %s526_s23 }
  0x13   : > { %p502_p1 = scmp.lt.s32.totalorder %s6080_s1, 3  ;;  %p6211_p2 = scmp.eq.s32.totalorder %s7697_s24, 0 }
  0x14   : > { %s6083_s3 = smov [#allocation7]   ;;  %s6084_s27 = smov [#allocation10]  }
  0x15   : > { %s7720_s2 = scalar_select %p6211_p2, 1, 0 }
  0x16   : > { %p6217_p3 = pnand %p4672_p0, %p502_p1  ;;  %s548_s26 = sshll.u32 %s6083_s3, 4  ;;  %s6223_s26 = int_to_ptr.vmem [resolvable:$true] %s548_s26 }
  0x17   : > { %s576_s28 = sshll.u32 %s6084_s27, 4  ;;  %s6085_s29 = smov [#allocation13]   ;;  %s6231_s28 = int_to_ptr.vmem [resolvable:$true] %s576_s28 }
  0x18   : > { %s7721_s25 = scalar_select %p6217_p3, 1, 0 }
  0x19   : > { %p5353_p4 = pneg %p6217_p3  ;;  %s601_s30 = sshll.u32 %s6085_s29, 4  ;;  %s6233_s30 = int_to_ptr.vmem [resolvable:$true] %s601_s30 }
  0x1a   : > { %s7723_s22 = sld [smem:[#allocation31_spill]] }
  0x1b   : > { %p6227_p5 = pnand %p6211_p2, %p5353_p4 }
  0x1d   : > { %p6243_p7 = pneg %p6227_p5 }
  0x20   : > { %s5742_s3 = scalar_lea.hbm %s7723_s22, 128 }
  0x21   : > { %p5743_p6 = scmp.ne.s32.totalorder %s7723_s22, %s5742_s3  ;;  %p5749_p10 = scmp.lt.u32.totalorder %s5742_s3, %s7723_s22 }
  0x23   : > { %p5745_p8 = pnand %p6243_p7, %p5743_p6 }
  0x25   : > { %p5746_p9 = pneg %p5745_p8 }
  0x27   : > { %p5751_p11 = pnand %p5749_p10, %p5746_p9 }
  0x29   : > { %5754 = shalt.err (!%p5751_p11)
}
  0x2a   : > { %s5755_s20 = scalar_lea.vmem %s6215_s23, 128  ;;  %p5763_p1 = scmp.lt.s32.totalorder %s6215_s23, %s6215_s23 }
  0x2b   : > { %p5756_p12 = scmp.ne.s32.totalorder %s6215_s23, %s5755_s20  ;;  %p5764_p4 = scmp.lt.s32.totalorder %s5755_s20, %s5755_s20 }
  0x2d   : > { %p5758_p13 = pnand %p5756_p12, %p6243_p7  ;;  %p5765_p6 = por %p5764_p4, %p5763_p1 }
  0x2f   : > { %p5759_p0 = pneg %p5758_p13 }
  0x31   : > { %p5766_p8 = pnand %p5765_p6, %p5759_p0 }
  0x33   : > { %5769 = shalt.err (!%p5766_p8)
}
  0x34   : > { %5359 = dma.hbm_to_vmem [thread:$0]  (!%p6227_p5), %s7723_s22, 128, %s6215_s23, [#allocation5]  }
  0x35   : > { %s7725_s6 = sld [smem:[#allocation32_spill]] }
  0x3b   : > { %s5770_s3 = scalar_lea.hbm %s7725_s6, 32 }
  0x3c   : > { %p5771_p9 = scmp.ne.s32.totalorder %s7725_s6, %s5770_s3  ;;  %p5777_p12 = scmp.lt.u32.totalorder %s5770_s3, %s7725_s6 }
  0x3e   : > { %p5773_p10 = pnand %p5771_p9, %p6243_p7 }
  0x40   : > { %p5774_p11 = pneg %p5773_p10 }
  0x42   : > { %p5779_p13 = pnand %p5777_p12, %p5774_p11 }
  0x44   : > { %5782 = shalt.err (!%p5779_p13)
}
  0x45   : > { %s5783_s23 = scalar_lea.vmem %s6223_s26, 32  ;;  %p5791_p6 = scmp.lt.s32.totalorder %s6223_s26, %s6223_s26 }
  0x46   : > { %p5784_p0 = scmp.ne.s32.totalorder %s6223_s26, %s5783_s23  ;;  %p5792_p8 = scmp.lt.s32.totalorder %s5783_s23, %s5783_s23 }
  0x48   : > { %p5786_p1 = pnand %p5784_p0, %p6243_p7  ;;  %p5793_p9 = por %p5792_p8, %p5791_p6 }
  0x4a   : > { %p5787_p4 = pneg %p5786_p1 }
  0x4c   : > { %p5794_p10 = pnand %p5793_p9, %p5787_p4 }
  0x4e   : > { %5797 = shalt.err (!%p5794_p10)
}
  0x4f   : > { %5365 = dma.hbm_to_vmem [thread:$0]  (!%p6227_p5), %s7725_s6, 32, %s6223_s26, [#allocation8]  }
  0x50   : > { %s5798_s0 = scalar_lea.hbm %s7684_s10, 32 }
  0x51   : > { %p5799_p11 = scmp.ne.s32.totalorder %s7684_s10, %s5798_s0  ;;  %p5805_p0 = scmp.lt.u32.totalorder %s5798_s0, %s7684_s10 }
  0x53   : > { %p5801_p12 = pnand %p5799_p11, %p6243_p7 }
  0x55   : > { %p5802_p13 = pneg %p5801_p12 }
  0x57   : > { %p5807_p1 = pnand %p5805_p0, %p5802_p13 }
  0x59   : > { %5810 = shalt.err (!%p5807_p1)
}
  0x5a   : > { %s5811_s26 = scalar_lea.vmem %s6231_s28, 32  ;;  %p5819_p9 = scmp.lt.s32.totalorder %s6231_s28, %s6231_s28 }
  0x5b   : > { %p5812_p4 = scmp.ne.s32.totalorder %s6231_s28, %s5811_s26  ;;  %p5820_p10 = scmp.lt.s32.totalorder %s5811_s26, %s5811_s26 }
  0x5d   : > { %p5814_p6 = pnand %p5812_p4, %p6243_p7  ;;  %p5821_p11 = por %p5820_p10, %p5819_p9 }
  0x5f   : > { %p5815_p8 = pneg %p5814_p6 }
  0x61   : > { %p5822_p12 = pnand %p5821_p11, %p5815_p8 }
  0x63   : > { %5825 = shalt.err (!%p5822_p12)
}
  0x64   : > { %5371 = dma.hbm_to_vmem [thread:$0]  (!%p6227_p5), %s7684_s10, 32, %s6231_s28, [#allocation11]  }
  0x65   : > { %s5826_s24 = scalar_lea.hbm %s7687_s13, 128 }
  0x66   : > { %p5827_p13 = scmp.ne.s32.totalorder %s7687_s13, %s5826_s24  ;;  %p5833_p4 = scmp.lt.u32.totalorder %s5826_s24, %s7687_s13 }
  0x68   : > { %p5829_p0 = pnand %p5827_p13, %p6243_p7 }
  0x6a   : > { %p5830_p1 = pneg %p5829_p0 }
  0x6c   : > { %p5835_p6 = pnand %p5833_p4, %p5830_p1 }
  0x6e   : > { %5838 = shalt.err (!%p5835_p6)
}
  0x6f   : > { %s5839_s28 = scalar_lea.vmem %s6233_s30, 128  ;;  %p5847_p11 = scmp.lt.s32.totalorder %s6233_s30, %s6233_s30 }
  0x70   : > { %p5840_p8 = scmp.ne.s32.totalorder %s6233_s30, %s5839_s28  ;;  %p5848_p12 = scmp.lt.s32.totalorder %s5839_s28, %s5839_s28 }
  0x72   : > { %p5842_p9 = pnand %p5840_p8, %p6243_p7  ;;  %p5849_p13 = por %p5848_p12, %p5847_p11 }
  0x74   : > { %p5843_p10 = pneg %p5842_p9 }
  0x76   : > { %p5850_p0 = pnand %p5849_p13, %p5843_p10 }
  0x78   : > { %5853 = shalt.err (!%p5850_p0)
}
  0x79   : > { %5377 = dma.hbm_to_vmem [thread:$0]  (!%p6227_p5), %s7687_s13, 128, %s6233_s30, [#allocation14]  }
  0x7a   : > { %s6086_s23 = smov [#allocation16]   ;;  %s6087_s18 = smov [#allocation2]  }
  0x7b   : > { %s625_s16 = sshll.u32 %s6086_s23, 4  ;;  %s515_s19 = sshll.u32 %s6087_s18, 4  ;;  %s626_s16 = int_to_ptr.vmem [resolvable:$true] %s625_s16  ;;  %s516_s19 = int_to_ptr.vmem [resolvable:$true] %s515_s19 }
  0x7c   : > { %s5854_s21 = scalar_lea.hbm %s7689_s15, 32 }
  0x7d   : > { %p5855_p1 = scmp.ne.s32.totalorder %s7689_s15, %s5854_s21  ;;  %p5861_p8 = scmp.lt.u32.totalorder %s5854_s21, %s7689_s15 }
  0x7f   : > { %p5857_p4 = pnand %p5855_p1, %p6243_p7 }
  0x81   : > { %p5858_p6 = pneg %p5857_p4 }
  0x83   : > { %p5863_p9 = pnand %p5861_p8, %p5858_p6 }
  0x85   : > { %5866 = shalt.err (!%p5863_p9)
}
  0x86   : > { %s5867_s30 = scalar_lea.vmem %s626_s16, 32  ;;  %p5875_p13 = scmp.lt.s32.totalorder %s626_s16, %s626_s16 }
  0x87   : > { %p5868_p10 = scmp.ne.s32.totalorder %s626_s16, %s5867_s30  ;;  %p5876_p0 = scmp.lt.s32.totalorder %s5867_s30, %s5867_s30 }
  0x89   : > { %p5870_p11 = pnand %p5868_p10, %p6243_p7  ;;  %p5877_p2 = por %p5876_p0, %p5875_p13 }
  0x8b   : > { %p5871_p12 = pneg %p5870_p11 }
  0x8d   : > { %p5878_p3 = pnand %p5877_p2, %p5871_p12 }
  0x8f   : > { %5881 = shalt.err (!%p5878_p3)
}
  0x90   : > { %5383 = dma.hbm_to_vmem [thread:$0]  (!%p6227_p5), %s7689_s15, 32, %s626_s16, [#allocation17]  }
  0x91   : > { %s7726_s0 = sld [smem:[#allocation30_spill]] }
  0x97   : > { %s5882_s21 = scalar_lea.hbm %s7726_s0, 128 }
  0x98   : > { %p5883_p1 = scmp.ne.s32.totalorder %s7726_s0, %s5882_s21  ;;  %p5889_p3 = scmp.lt.u32.totalorder %s5882_s21, %s7726_s0 }
  0x9a   : > { %p5885_p4 = pnand %p5883_p1, %p6243_p7 }
  0x9c   : > { %p5886_p2 = pneg %p5885_p4 }
  0x9e   : > { %p5891_p6 = pnand %p5889_p3, %p5886_p2 }
  0xa0   : > { %5894 = shalt.err (!%p5891_p6)
}
  0xa1   : > { %s5895_s30 = scalar_lea.vmem %s516_s19, 128  ;;  %p5903_p11 = scmp.lt.s32.totalorder %s516_s19, %s516_s19 }
  0xa2   : > { %p5896_p8 = scmp.ne.s32.totalorder %s516_s19, %s5895_s30  ;;  %p5904_p12 = scmp.lt.s32.totalorder %s5895_s30, %s5895_s30 }
  0xa4   : > { %p5898_p9 = pnand %p5896_p8, %p6243_p7  ;;  %p5905_p13 = por %p5904_p12, %p5903_p11 }
  0xa6   : > { %p5899_p10 = pneg %p5898_p9 }
  0xa8   : > { %p5906_p0 = pnand %p5905_p13, %p5899_p10 }
  0xaa   : > { %5909 = shalt.err (!%p5906_p0)
}
  0xab   : > { %5356 = dma.hbm_to_vmem [thread:$0]  (!%p6227_p5), %s7726_s0, 128, %s516_s19, [#allocation3]  }
  0xac   : > { %s6088_s23 = smov [#allocation6]   ;;  %s6089_s24 = smov [#allocation9]  }
  0xad   : > { %s537_s18 = sshll.u32 %s6088_s23, 4  ;;  %s562_s21 = sshll.u32 %s6089_s24, 4  ;;  %s538_s18 = int_to_ptr.vmem [resolvable:$true] %s537_s18  ;;  %s563_s21 = int_to_ptr.vmem [resolvable:$true] %s562_s21 }
  0xae   : > { %s5910_s28 = scalar_lea.hbm %s7679_s5, 128 }
  0xaf   : > { %p5911_p1 = scmp.ne.s32.totalorder %s7679_s5, %s5910_s28  ;;  %p5917_p3 = scmp.lt.u32.totalorder %s5910_s28, %s7679_s5 }
  0xb1   : > { %p5913_p4 = pnand %p5911_p1, %p6243_p7 }
  0xb3   : > { %p5914_p2 = pneg %p5913_p4 }
  0xb5   : > { %p5919_p6 = pnand %p5917_p3, %p5914_p2 }
  0xb7   : > { %5922 = shalt.err (!%p5919_p6)
}
  0xb8   : > { %s5923_s19 = scalar_lea.vmem %s538_s18, 128  ;;  %p5931_p11 = scmp.lt.s32.totalorder %s538_s18, %s538_s18 }
  0xb9   : > { %p5924_p8 = scmp.ne.s32.totalorder %s538_s18, %s5923_s19  ;;  %p5932_p12 = scmp.lt.s32.totalorder %s5923_s19, %s5923_s19 }
  0xbb   : > { %p5926_p9 = pnand %p5924_p8, %p6243_p7  ;;  %p5933_p13 = por %p5932_p12, %p5931_p11 }
  0xbd   : > { %p5927_p10 = pneg %p5926_p9 }
  0xbf   : > { %p5934_p0 = pnand %p5933_p13, %p5927_p10 }
  0xc1   : > { %5937 = shalt.err (!%p5934_p0)
}
  0xc2   : > { %5362 = dma.hbm_to_vmem [thread:$0]  (!%p6227_p5), %s7679_s5, 128, %s538_s18, [#allocation5]  }
  0xc3   : > { %s5938_s3 = scalar_lea.hbm %s7682_s8, 32 }
  0xc4   : > { %p5939_p1 = scmp.ne.s32.totalorder %s7682_s8, %s5938_s3  ;;  %p5945_p3 = scmp.lt.u32.totalorder %s5938_s3, %s7682_s8 }
  0xc6   : > { %p5941_p4 = pnand %p5939_p1, %p6243_p7 }
  0xc8   : > { %p5942_p2 = pneg %p5941_p4 }
  0xca   : > { %p5947_p6 = pnand %p5945_p3, %p5942_p2 }
  0xcc   : > { %5950 = shalt.err (!%p5947_p6)
}
  0xcd   : > { %s5951_s16 = scalar_lea.vmem %s563_s21, 32  ;;  %p5959_p11 = scmp.lt.s32.totalorder %s563_s21, %s563_s21 }
  0xce   : > { %p5952_p8 = scmp.ne.s32.totalorder %s563_s21, %s5951_s16  ;;  %p5960_p12 = scmp.lt.s32.totalorder %s5951_s16, %s5951_s16 }
  0xd0   : > { %p5954_p9 = pnand %p5952_p8, %p6243_p7  ;;  %p5961_p13 = por %p5960_p12, %p5959_p11 }
  0xd2   : > { %p5955_p10 = pneg %p5954_p9 }
  0xd4   : > { %p5962_p0 = pnand %p5961_p13, %p5955_p10 }
  0xd6   : > { %5965 = shalt.err (!%p5962_p0)
}
  0xd7   : > { %5368 = dma.hbm_to_vmem [thread:$0]  (!%p6227_p5), %s7682_s8, 32, %s563_s21, [#allocation8]  }
  0xd8   : > { %s6090_s26 = smov [#allocation12]   ;;  %s6091_s6 = smov [#allocation15]  }
  0xd9   : > { %s590_s23 = sshll.u32 %s6090_s26, 4  ;;  %s611_s24 = sshll.u32 %s6091_s6, 4  ;;  %s591_s23 = int_to_ptr.vmem [resolvable:$true] %s590_s23  ;;  %s612_s24 = int_to_ptr.vmem [resolvable:$true] %s611_s24 }
  0xda   : > { %s5966_s28 = scalar_lea.hbm %s7686_s12, 16 }
  0xdb   : > { %p5967_p1 = scmp.ne.s32.totalorder %s7686_s12, %s5966_s28  ;;  %p5973_p3 = scmp.lt.u32.totalorder %s5966_s28, %s7686_s12 }
  0xdd   : > { %p5969_p4 = pnand %p5967_p1, %p6243_p7 }
  0xdf   : > { %p5970_p2 = pneg %p5969_p4 }
  0xe1   : > { %p5975_p6 = pnand %p5973_p3, %p5970_p2 }
  0xe3   : > { %5978 = shalt.err (!%p5975_p6)
}
  0xe4   : > { %s5979_s21 = scalar_lea.vmem %s591_s23, 16  ;;  %s5986_s19 = scalar_lea.vmem %s591_s23, 32 }
  0xe5   : > { %p5980_p8 = scmp.ne.s32.totalorder %s591_s23, %s5979_s21  ;;  %p5987_p11 = scmp.lt.s32.totalorder %s591_s23, %s591_s23 }
  0xe6   : > { %p5988_p12 = scmp.lt.s32.totalorder %s5986_s19, %s5979_s21 }
  0xe7   : > { %p5982_p9 = pnand %p5980_p8, %p6243_p7 }
  0xe8   : > { %p5989_p13 = por %p5988_p12, %p5987_p11 }
  0xe9   : > { %p5983_p10 = pneg %p5982_p9 }
  0xeb   : > { %p5990_p0 = pnand %p5989_p13, %p5983_p10 }
  0xed   : > { %5993 = shalt.err (!%p5990_p0)
}
  0xee   : > { %5374 = dma.hbm_to_vmem [thread:$0]  (!%p6227_p5), %s7686_s12, 16, %s591_s23, [#allocation11]  }
  0xef   : > { %s5994_s28 = scalar_lea.hbm %s7688_s14, 256 }
  0xf0   : > { %p5995_p1 = scmp.ne.s32.totalorder %s7688_s14, %s5994_s28  ;;  %p6001_p3 = scmp.lt.u32.totalorder %s5994_s28, %s7688_s14 }
  0xf2   : > { %p5997_p4 = pnand %p5995_p1, %p6243_p7 }
  0xf4   : > { %p5998_p2 = pneg %p5997_p4 }
  0xf6   : > { %p6003_p6 = pnand %p6001_p3, %p5998_p2 }
  0xf8   : > { %6006 = shalt.err (!%p6003_p6)
}
  0xf9   : > { %s6007_s21 = scalar_lea.vmem %s612_s24, 256  ;;  %p6015_p11 = scmp.lt.s32.totalorder %s612_s24, %s612_s24 }
  0xfa   : > { %p6008_p8 = scmp.ne.s32.totalorder %s612_s24, %s6007_s21  ;;  %p6016_p12 = scmp.lt.s32.totalorder %s6007_s21, %s6007_s21 }
  0xfc   : > { %p6010_p9 = pnand %p6008_p8, %p6243_p7  ;;  %p6017_p13 = por %p6016_p12, %p6015_p11 }
  0xfe   : > { %p6011_p10 = pneg %p6010_p9 }
 0x100   : > { %p6018_p0 = pnand %p6017_p13, %p6011_p10 }
 0x102   : > { %6021 = shalt.err (!%p6018_p0)
}
 0x103   : > { %s6092_s23 = smov 128   ;;  %s6093_s19 = smov 8  }
 0x104   : > { %5380 = dma.hbm_to_vmem [thread:$0]  (!%p6227_p5), %s7688_s14, 256, %s612_s24, [#allocation14], %s6092_s23, %s6092_s23, %s6093_s19  }
 0x105   : > { %s6094_s3 = smov [#allocation18]   ;;  %s6022_s30 = scalar_lea.hbm %s7691_s17, 32 }
 0x106   : > { %s639_s29 = sshll.u32 %s6094_s3, 4  ;;  %p6023_p1 = scmp.ne.s32.totalorder %s7691_s17, %s6022_s30  ;;  %s640_s29 = int_to_ptr.vmem [resolvable:$true] %s639_s29 }
 0x107   : > { %p6029_p3 = scmp.lt.u32.totalorder %s6022_s30, %s7691_s17 }
 0x108   : > { %p6025_p4 = pnand %p6023_p1, %p6243_p7 }
 0x10a   : > { %p6026_p2 = pneg %p6025_p4 }
 0x10c   : > { %p6031_p6 = pnand %p6029_p3, %p6026_p2 }
 0x10e   : > { %6034 = shalt.err (!%p6031_p6)
}
 0x10f   : > { %s6035_s24 = scalar_lea.vmem %s640_s29, 32  ;;  %p6043_p11 = scmp.lt.s32.totalorder %s640_s29, %s640_s29 }
 0x110   : > { %p6036_p8 = scmp.ne.s32.totalorder %s640_s29, %s6035_s24  ;;  %p6044_p12 = scmp.lt.s32.totalorder %s6035_s24, %s6035_s24 }
 0x112   : > { %p6038_p9 = pnand %p6036_p8, %p6243_p7  ;;  %p6045_p13 = por %p6044_p12, %p6043_p11 }
 0x114   : > { %p6039_p10 = pneg %p6038_p9 }
 0x116   : > { %p6046_p0 = pnand %p6045_p13, %p6039_p10 }
 0x118   : > { %6049 = shalt.err (!%p6046_p0)
}
 0x119   : > { %5386 = dma.hbm_to_vmem [thread:$0]  (!%p6227_p5), %s7691_s17, 32, %s640_s29, [#allocation17]  }
 0x11a   : > { %p7727_p1 = scmp.ne.s32.totalorder %s7721_s25, 0 }
 0x11c   : > { %688 = sbr.rel (%p7727_p1) target bundleno = 3608 (0xe18), region = 100 }
 0x123   : > { %p7728_p4 = scmp.ne.s32.totalorder %s7720_s2, 0 }
 0x125   : > { %6055 = dma.done.wait (%p7728_p4), [#allocation3], 128  }
 0x126   : > { %6057 = vsyncadd (%p7728_p4), [#allocation3], 4294967168 }
 0x127   : > { %6059 = dma.done.wait (%p7728_p4), [#allocation5], 256  }
 0x128   : > { %6061 = vsyncadd (%p7728_p4), [#allocation5], 4294967040 }
 0x129   : > { %6063 = dma.done.wait (%p7728_p4), [#allocation8], 64  }
 0x12a   : > { %6065 = vsyncadd (%p7728_p4), [#allocation8], 4294967232 }
 0x12b   : > { %6067 = dma.done.wait (%p7728_p4), [#allocation11], 48  }
 0x12c   : > { %6069 = vsyncadd (%p7728_p4), [#allocation11], 4294967248 }
 0x12d   : > { %6071 = dma.done.wait (%p7728_p4), [#allocation14], 384  }
 0x12e   : > { %6073 = vsyncadd (%p7728_p4), [#allocation14], 4294966912 }
 0x12f   : > { %6075 = dma.done.wait (%p7728_p4), [#allocation17], 64  }
 0x130   : > { %6077 = vsyncadd (%p7728_p4), [#allocation17], 4294967232  ;;  %s7729_s25 = sadd.s32 4294967295, %s6080_s1   ;;  %s7730_s3 = sld [smem:[#allocation27_spill]]  ;;  %vm897_vm0 = vcmask 130048   ;;  %v1194_v15 = vld [vmem:[#allocation4] sm:$0xff] }
 0x131   : > { %s800_s4 = smul.u32 3, %s7729_s25  ;;  %s7731_s20 = sld [smem:[#allocation28_spill]]  ;;  %v6554_v16 = vcombine.high %v1194_v15, %v1194_v15  ;;  %v4732_v17 = vcombine.low %v1194_v15, %v1194_v15  ;;  %vm1219_vm1 = vcmask 1043456   ;;  %v7704_v19 = vmov 0   ;;  %v6564_v20 = vld [vmem:[#allocation2] sm:$0xff]  ;;  %v1441_v22 = vld [vmem:[#allocation6] sm:$0xff] }
 0x132   : > { %s7732_s24 = sld [smem:[#allocation29_spill]]  ;;  %v6568_v21 = vcombine.high %v6564_v20, %v6564_v20  ;;  %v4757_v23 = vcombine.high %v1441_v22, %v1441_v22  ;;  %v4756_v24 = vcombine.low %v1441_v22, %v1441_v22  ;;  %vm1200_vm2 = vcmask 64512   ;;  %v5459_v32 = vld [vmem:[%s7681_s7] ss:$8 sps:$4 sm:$0xff]   ;;  %v5461_v33 = vld [vmem:[%s7681_s7 + $0x4] ss:$8 sps:$4 sm:$0xff]  }
 0x133   : > { %p801_p5 = scmp.lt.s32.totalorder %s800_s4, 5  ;;  %v6559_v18 = vsel %vm1219_vm1, %v4732_v17, 0  ;;  %v5464_v34 = vld [vmem:[%s7681_s7 + $0x14] ss:$8 sps:$4 sm:$0xff]   ;;  %v5462_v35 = vld [vmem:[%s7681_s7 + $0x10] ss:$8 sps:$4 sm:$0xff]   ;;  %v4741_v52 = vcombine.low %v6564_v20, %v6564_v20 }
 0x134   : > { %v1496_v25 = vsel %vm1219_vm1, %v4756_v24, 0  ;;  %v5467_v36 = vld [vmem:[%s7681_s7 + $0x24] ss:$8 sps:$4 sm:$0xff]   ;;  %v5465_v37 = vld [vmem:[%s7681_s7 + $0x20] ss:$8 sps:$4 sm:$0xff]   ;;  %vm2616_vm3 = vcmask 261120  }
 0x135   : > { %s7743_s4 = smov (!%p801_p5, %s800_s4), 5  ;;  %v5470_v38 = vld [vmem:[%s7681_s7 + $0x34] ss:$8 sps:$4 sm:$0xff]   ;;  %v5468_v39 = vld [vmem:[%s7681_s7 + $0x30] ss:$8 sps:$4 sm:$0xff]   ;;  %v6657_v62 = vsel %vm1219_vm1, %v4741_v52, 0 }
 0x136   : > { %s4940_s27 = sshll.u32 %s7743_s4, 3  ;;  %s4941_s0 = sshll.u32 %s7743_s4, 5  ;;  %v5473_v40 = vld [vmem:[%s7681_s7 + $0x44] ss:$8 sps:$4 sm:$0xff]   ;;  %v5471_v41 = vld [vmem:[%s7681_s7 + $0x40] ss:$8 sps:$4 sm:$0xff]  }
 0x137   : > { %s6494_s29 = scalar_lea.vmem %s7730_s3, %s4940_s27  ;;  %s6501_s30 = scalar_lea.vmem %s7731_s20, %s4941_s0  ;;  %v5476_v42 = vld [vmem:[%s7681_s7 + $0x54] ss:$8 sps:$4 sm:$0xff]   ;;  %v5474_v43 = vld [vmem:[%s7681_s7 + $0x50] ss:$8 sps:$4 sm:$0xff]   ;;  %v5479_v44 = vld [vmem:[%s7681_s7 + $0x64] ss:$8 sps:$4 sm:$0xff]  }
 0x138   : > { %v5432_v0 = vld [vmem:[%s6494_s29] sm:$0xff]   ;;  %v6505_v1 = vld [vmem:[%s6501_s30 + $0x10] sm:$0xff]   ;;  %v6508_v2 = vld [vmem:[%s6501_s30 + $0x18] sm:$0xff]   ;;  %s4942_s16 = sshll.u32 %s7743_s4, 4  ;;  %s7735_s20 = sld [smem:[#allocation33_spill]] }
 0x139   : > { %5247 = vmatprep.subr.bf16.mxu1 %v5432_v0  ;;  %v5435_v3 = vld [vmem:[%s6494_s29 + $0x8] sm:$0xff]   ;;  %5130 = vmatprep.subr.bf16.mxu0 %v5432_v0  ;;  %v5436_v4 = vld [vmem:[%s6501_s30 + $0x20] sm:$0xff]   ;;  %v6521_v7 = vld [vmem:[%s6501_s30 + $0x30] sm:$0xff]   ;;  %s6530_s23 = scalar_lea.vmem %s7732_s24, %s4942_s16  ;;  %s7736_s28 = sld [smem:[#allocation34_spill]] }
 0x13a   : > { %5248 = vmatpush3.bf16.msra.mxu1 %v5432_v0  ;;  %5131 = vmatpush3.bf16.msra.mxu0 %v5432_v0  ;;  %v5438_v5 = vld [vmem:[%s6501_s30] sm:$0xff]   ;;  %v5439_v6 = vld [vmem:[%s6501_s30 + $0x8] sm:$0xff]   ;;  %v5442_v8 = vld [vmem:[%s6494_s29 + $0x10] sm:$0xff]   ;;  %s7737_s19 = sld [smem:[#allocation35_spill]] }
 0x13b   : > { %5136 = vmatprep.mubr.msk.bf16.mxu1 %vm897_vm0, %v6505_v1  ;;  %5140 = vmatprep.subr.bf16.mxu1 %v5435_v3  ;;  %v5443_v9 = vld [vmem:[%s6501_s30 + $0x40] sm:$0xff]   ;;  %v5437_v10 = vld [vmem:[%s6501_s30 + $0x28] sm:$0xff]   ;;  %v6534_v11 = vld [vmem:[%s6501_s30 + $0x50] sm:$0xff]  }
 0x13c   : > { %5132 = vmatprep.mubr.msk.bf16.mxu0 %vm897_vm0, %v5438_v5  ;;  %5150 = vmatprep.subr.bf16.mxu0 %v5442_v8  ;;  %v5444_v12 = vld [vmem:[%s6501_s30 + $0x48] sm:$0xff]   ;;  %v6539_v13 = vld [vmem:[%s6501_s30 + $0x38] sm:$0xff]   ;;  %v5453_v26 = vld [vmem:[%s6530_s23] sm:$0xff]  }
 0x13d   : > { %5137 = vmatmul.mubr.msk.bf16.vlgmr.msra.gmra.mrb[0].mxu1 %vm897_vm0, %v6508_v2  ;;  %5133 = vmatmul.mubr.msk.bf16.vlgmr.msra.gmra.mrb[0].mxu0 %vm897_vm0, %v5439_v6  ;;  %v6545_v14 = vld [vmem:[%s6501_s30 + $0x58] sm:$0xff]   ;;  %v5454_v27 = vld [vmem:[%s6530_s23 + $0x8] sm:$0xff]   ;;  %v5455_v28 = vld [vmem:[%s6530_s23 + $0x10] sm:$0xff]  }
 0x13e   : > { %5141 = vmatpush3.bf16.msra.mxu1 %v5435_v3  ;;  %5142 = vmatprep.mubr.msk.bf16.mxu1 %vm897_vm0, %v5436_v4  ;;  %v5456_v29 = vld [vmem:[%s6530_s23 + $0x18] sm:$0xff]   ;;  %v5457_v30 = vld [vmem:[%s6530_s23 + $0x20] sm:$0xff]   ;;  %v5458_v31 = vld [vmem:[%s6530_s23 + $0x28] sm:$0xff]  }
 0x13f   : > { %5151 = vmatpush3.bf16.msra.mxu0 %v5442_v8  ;;  %5152 = vmatprep.mubr.msk.bf16.mxu0 %vm897_vm0, %v5443_v9  ;;  %v5477_v45 = vld [vmem:[%s7681_s7 + $0x60] ss:$8 sps:$4 sm:$0xff]   ;;  %v5482_v46 = vld [vmem:[%s7681_s7 + $0x74] ss:$8 sps:$4 sm:$0xff]   ;;  %v5480_v47 = vld [vmem:[%s7681_s7 + $0x70] ss:$8 sps:$4 sm:$0xff]  }
 0x140   : > { %4734 = vmatprep.subr.msk.bf16.mxu1 %vm1219_vm1, %v6554_v16  ;;  %4758 = vmatprep.subr.msk.bf16.mxu0 %vm1219_vm1, %v4757_v23  ;;  %v5485_v48 = vld [vmem:[%s7681_s7 + $0x84] ss:$8 sps:$4 sm:$0xff]   ;;  %v5483_v49 = vld [vmem:[%s7681_s7 + $0x80] ss:$8 sps:$4 sm:$0xff]   ;;  %v5488_v50 = vld [vmem:[%s7681_s7 + $0x94] ss:$8 sps:$4 sm:$0xff]  }
 0x141   : > { %v5486_v54 = vld [vmem:[%s7681_s7 + $0x90] ss:$8 sps:$4 sm:$0xff]   ;;  %v5491_v56 = vld [vmem:[%s7681_s7 + $0xa4] ss:$8 sps:$4 sm:$0xff]   ;;  %v5489_v0 = vld [vmem:[%s7681_s7 + $0xa0] ss:$8 sps:$4 sm:$0xff]  }
 0x142   : > { %v5494_v5 = vld [vmem:[%s7681_s7 + $0xb4] ss:$8 sps:$4 sm:$0xff]   ;;  %v5497_v15 = vld [vmem:[%s7681_s7 + $0xc4] ss:$8 sps:$4 sm:$0xff]  }
 0x145   : > { %5143 = vmatmul.mubr.msk.bf16.vlgmr.msra.gmra.mrb[4].mxu1 %vm897_vm0, %v5437_v10  ;;  %5153 = vmatmul.mubr.msk.bf16.vlgmr.msra.gmra.mrb[4].mxu0 %vm897_vm0, %v5444_v12  ;;  %v5492_v10 = vld [vmem:[%s7681_s7 + $0xb0] ss:$8 sps:$4 sm:$0xff]  }
 0x146   : > { %5146 = vmatprep.mubr.msk.bf16.mxu1 %vm897_vm0, %v6521_v7  ;;  %5156 = vmatprep.mubr.msk.bf16.mxu0 %vm897_vm0, %v6534_v11 }
 0x147   : > { %1227 = vmatpush1.bf16.msra.mxu1 %v6559_v18  ;;  %1502 = vmatpush1.bf16.msra.mxu0 %v1496_v25 }
 0x148   : > { %4743 = vmatprep.subr.msk.bf16.mxu1 %vm1219_vm1, %v6568_v21  ;;  %1894 = vmatprep.subr.bf16.mxu0 %v5461_v33 }
 0x14d   : > { %5147 = vmatmul.mubr.msk.bf16.gmra.mrb[8].mxu1 %vm897_vm0, %v6539_v13  ;;  %5157 = vmatmul.mubr.msk.bf16.gmra.mrb[8].mxu0 %vm897_vm0, %v6545_v14 }
 0x14e   : > { %1258 = vmatprep.mubr.bf16.mxu1 %v7704_v19  ;;  %1533 = vmatprep.mubr.bf16.mxu0 %v7704_v19 }
 0x155   : > { %4759 = vmatmul.mubr.msk.bf16.vlgmr.msra.gmra.mrb[12].mxu0 %vm1200_vm2, %v5453_v26  ;;  %v5495_v26 = vld [vmem:[%s7681_s7 + $0xc0] ss:$8 sps:$4 sm:$0xff]  }
 0x156   : > { %1543 = vmatprep.mubr.bf16.mxu0 %v7704_v19  ;;  %1895 = vmatpush1.bf16.msra.mxu0 %v5459_v32 }
 0x157   : > { %1896 = vmatprep.subr.bf16.mxu0 %v5464_v34 }
 0x15a   : > { %1897 = vmatpush1.bf16.msra.mxu0 %v5462_v35 }
 0x15b   : > { %1898 = vmatprep.subr.bf16.mxu0 %v5467_v36 }
 0x15d   : > { %4760 = vmatmul.mubr.msk.bf16.gmra.mrb[16].mxu0 %vm1200_vm2, %v5454_v27 }
 0x15e   : > { %1553 = vmatprep.mubr.bf16.mxu0 %v7704_v19  ;;  %1899 = vmatpush1.bf16.msra.mxu0 %v5465_v37 }
 0x15f   : > { %1900 = vmatprep.subr.bf16.mxu0 %v5470_v38 }
 0x162   : > { %1901 = vmatpush1.bf16.msra.mxu0 %v5468_v39 }
 0x163   : > { %1902 = vmatprep.subr.bf16.mxu0 %v5473_v40 }
 0x165   : > { %4761 = vmatmul.mubr.msk.bf16.gmra.mrb[20].mxu0 %vm1200_vm2, %v5455_v28 }
 0x166   : > { %1563 = vmatprep.mubr.bf16.mxu0 %v7704_v19  ;;  %1903 = vmatpush1.bf16.msra.mxu0 %v5471_v41 }
 0x167   : > { %1904 = vmatprep.subr.bf16.mxu0 %v5476_v42 }
 0x16a   : > { %1905 = vmatpush1.bf16.msra.mxu0 %v5474_v43 }
 0x16b   : > { %1906 = vmatprep.subr.bf16.mxu0 %v5479_v44 }
 0x16d   : > { %4762 = vmatmul.mubr.msk.bf16.gmra.mrb[24].mxu0 %vm1200_vm2, %v5456_v29 }
 0x16e   : > { %1573 = vmatprep.mubr.bf16.mxu0 %v7704_v19  ;;  %1907 = vmatpush1.bf16.msra.mxu0 %v5477_v45  ;;  %v5500_v45 = vld [vmem:[%s7681_s7 + $0xd4] ss:$8 sps:$4 sm:$0xff]  }
 0x16f   : > { %1908 = vmatprep.subr.bf16.mxu0 %v5482_v46 }
 0x172   : > { %1909 = vmatpush1.bf16.msra.mxu0 %v5480_v47  ;;  %v5498_v47 = vld [vmem:[%s7681_s7 + $0xd0] ss:$8 sps:$4 sm:$0xff]  }
 0x173   : > { %1910 = vmatprep.subr.bf16.mxu0 %v5485_v48  ;;  %v5503_v48 = vld [vmem:[%s7681_s7 + $0xe4] ss:$8 sps:$4 sm:$0xff]  }
 0x175   : > { %4763 = vmatmul.mubr.msk.bf16.gmra.mrb[28].mxu0 %vm1200_vm2, %v5457_v30 }
 0x176   : > { %1583 = vmatprep.mubr.bf16.mxu0 %v7704_v19  ;;  %1911 = vmatpush1.bf16.msra.mxu0 %v5483_v49  ;;  %v5501_v49 = vld [vmem:[%s7681_s7 + $0xe0] ss:$8 sps:$4 sm:$0xff]  }
 0x177   : > { %1912 = vmatprep.subr.bf16.mxu0 %v5488_v50 }
 0x17a   : > { %1913 = vmatpush1.bf16.msra.mxu0 %v5486_v54 }
 0x17b   : > { %1914 = vmatprep.subr.bf16.mxu0 %v5491_v56 }
 0x17d   : > { %4764 = vmatmul.mubr.msk.bf16.gmra.mrb[32].mxu0 %vm1200_vm2, %v5458_v31 }
 0x17e   : > { %1915 = vmatpush1.bf16.msra.mxu0 %v5489_v0 }
 0x17f   : > { %1916 = vmatprep.subr.bf16.mxu0 %v5494_v5 }
 0x182   : > { %1917 = vmatpush1.bf16.msra.mxu0 %v5492_v10 }
 0x183   : > { %1918 = vmatprep.subr.bf16.mxu0 %v5497_v15  ;;  %v5507_v15 = vld [vmem:[%s7683_s9] ss:$8 sps:$4 sm:$0xff]  }
 0x186   : > { %1919 = vmatpush1.bf16.msra.mxu0 %v5495_v26  ;;  %v5516_v26 = vld [vmem:[%s7683_s9 + $0x30] ss:$8 sps:$4 sm:$0xff]  }
 0x187   : > { %1920 = vmatprep.subr.bf16.mxu0 %v5500_v45  ;;  %v5540_v45 = vld [vmem:[%s7683_s9 + $0xb0] ss:$8 sps:$4 sm:$0xff]  }
 0x18a   : > { %1921 = vmatpush1.bf16.msra.mxu0 %v5498_v47  ;;  %v5545_v47 = vld [vmem:[%s7683_s9 + $0xc4] ss:$8 sps:$4 sm:$0xff]  }
 0x18b   : > { %1922 = vmatprep.subr.bf16.mxu0 %v5503_v48  ;;  %v5543_v48 = vld [vmem:[%s7683_s9 + $0xc0] ss:$8 sps:$4 sm:$0xff]  }
 0x18e   : > { %1923 = vmatpush1.bf16.msra.mxu0 %v5501_v49  ;;  %v5548_v49 = vld [vmem:[%s7683_s9 + $0xd4] ss:$8 sps:$4 sm:$0xff]  }
 0x210   : > { %v5138_v51 = vpop.f32.mrb[0].mxu1  ;;  %v5134_v59 = vpop.f32.mrb[0].mxu0 }
 0x211   : > { %v960_v53 = vpop.f32.mrb[1].mxu1  ;;  %v944_v61 = vpop.f32.mrb[1].mxu0 }
 0x212   : > { %v5139_v55 = vpop.f32.mrb[2].mxu1  ;;  %v5135_v63 = vpop.f32.mrb[2].mxu0 }
 0x213   : > { %v1184_v57 = vpack.c.bf16 %v5139_v55, %v5138_v51  ;;  %v963_v58 = vpop.f32.mrb[3].mxu1  ;;  %v1182_v3 = vpack.c.bf16 %v5135_v63, %v5134_v59  ;;  %v947_v4 = vpop.f32.mrb[3].mxu0  ;;  %v5504_v55 = vld [vmem:[%s7681_s7 + $0xf0] ss:$8 sps:$4 sm:$0xff]  }
 0x214   : > { %v1183_v60 = vpack.c.bf16 %v963_v58, %v960_v53  ;;  %v1181_v6 = vpack.c.bf16 %v947_v4, %v944_v61  ;;  %v5506_v53 = vld [vmem:[%s7681_s7 + $0xf4] ss:$8 sps:$4 sm:$0xff]  }
 0x215   : > { %1924 = vmatprep.subr.bf16.mxu0 %v5506_v53  ;;  %v5546_v53 = vld [vmem:[%s7683_s9 + $0xd0] ss:$8 sps:$4 sm:$0xff]  }
 0x216   : > { %4735 = vmatmul.mubr.msk.bf16.vlgmr.msra.gmra.mrb[12].mxu1 %vm1200_vm2, %v1183_v60  ;;  %1925 = vmatpush1.bf16.msra.mxu0 %v5504_v55  ;;  %v1620_v55 = vlaneseq }
 0x217   : > { %1268 = vmatprep.mubr.bf16.mxu1 %v7704_v19  ;;  %1349 = vmatpush1.bf16.msra.mxu1 %v6657_v62 }
 0x218   : > { %v5144_v8 = vpop.f32.mrb[4].mxu1  ;;  %v5154_v22 = vpop.f32.mrb[4].mxu0 }
 0x219   : > { %v1047_v9 = vpop.f32.mrb[5].mxu1  ;;  %v1150_v24 = vpop.f32.mrb[5].mxu0 }
 0x21a   : > { %v5145_v12 = vpop.f32.mrb[6].mxu1  ;;  %v5155_v25 = vpop.f32.mrb[6].mxu0 }
 0x21b   : > { %v1186_v17 = vpack.c.bf16 %v5145_v12, %v5144_v8  ;;  %v1050_v20 = vpop.f32.mrb[7].mxu1  ;;  %v1190_v27 = vpack.c.bf16 %v5155_v25, %v5154_v22  ;;  %v1153_v28 = vpop.f32.mrb[7].mxu0  ;;  %v5510_v22 = vld [vmem:[%s7683_s9 + $0x10] ss:$8 sps:$4 sm:$0xff]   ;;  %v5518_v25 = vld [vmem:[%s7683_s9 + $0x34] ss:$8 sps:$4 sm:$0xff]  }
 0x21c   : > { %v1185_v23 = vpack.c.bf16 %v1050_v20, %v1047_v9  ;;  %v1189_v29 = vpack.c.bf16 %v1153_v28, %v1150_v24  ;;  %v5512_v20 = vld [vmem:[%s7683_s9 + $0x14] ss:$8 sps:$4 sm:$0xff]   ;;  %v5513_v24 = vld [vmem:[%s7683_s9 + $0x20] ss:$8 sps:$4 sm:$0xff]  }
 0x21d   : > { %v5519_v28 = vld [vmem:[%s7683_s9 + $0x40] ss:$8 sps:$4 sm:$0xff]  }
 0x21e   : > { %4736 = vmatmul.mubr.msk.bf16.gmra.mrb[16].mxu1 %vm1200_vm2, %v1184_v57 }
 0x21f   : > { %1278 = vmatprep.mubr.bf16.mxu1 %v7704_v19 }
 0x220   : > { %v5148_v30 = vpop.f32.mrb[8].mxu1  ;;  %v5158_v35 = vpop.f32.mrb[8].mxu0 }
 0x221   : > { %v1063_v31 = vpop.f32.mrb[9].mxu1  ;;  %v1166_v37 = vpop.f32.mrb[9].mxu0 }
 0x222   : > { %v5149_v32 = vpop.f32.mrb[10].mxu1  ;;  %v5159_v38 = vpop.f32.mrb[10].mxu0 }
 0x223   : > { %v1188_v33 = vpack.c.bf16 %v5149_v32, %v5148_v30  ;;  %v1066_v34 = vpop.f32.mrb[11].mxu1  ;;  %v1192_v39 = vpack.c.bf16 %v5159_v38, %v5158_v35  ;;  %v1169_v40 = vpop.f32.mrb[11].mxu0  ;;  %v5522_v30 = vld [vmem:[%s7683_s9 + $0x50] ss:$8 sps:$4 sm:$0xff]   ;;  %v5525_v32 = vld [vmem:[%s7683_s9 + $0x60] ss:$8 sps:$4 sm:$0xff]  }
 0x224   : > { %v1187_v36 = vpack.c.bf16 %v1066_v34, %v1063_v31  ;;  %v1191_v41 = vpack.c.bf16 %v1169_v40, %v1166_v37  ;;  %v5527_v31 = vld [vmem:[%s7683_s9 + $0x64] ss:$8 sps:$4 sm:$0xff]   ;;  %v5528_v34 = vld [vmem:[%s7683_s9 + $0x70] ss:$8 sps:$4 sm:$0xff]   ;;  %v5536_v37 = vld [vmem:[%s7683_s9 + $0x94] ss:$8 sps:$4 sm:$0xff]  }
 0x225   : > { %v5533_v35 = vld [vmem:[%s7683_s9 + $0x84] ss:$8 sps:$4 sm:$0xff]   ;;  %v5534_v38 = vld [vmem:[%s7683_s9 + $0x90] ss:$8 sps:$4 sm:$0xff]   ;;  %v5537_v40 = vld [vmem:[%s7683_s9 + $0xa0] ss:$8 sps:$4 sm:$0xff]  }
 0x226   : > { %4737 = vmatmul.mubr.msk.bf16.gmra.mrb[20].mxu1 %vm1200_vm2, %v1187_v36  ;;  %v5531_v36 = vld [vmem:[%s7683_s9 + $0x80] ss:$8 sps:$4 sm:$0xff]  }
 0x227   : > { %1288 = vmatprep.mubr.bf16.mxu1 %v7704_v19 }
 0x228   : > { %v6698_v42 = vpop.f32.mrb[12].mxu0 }
 0x229   : > { %v6700_v43 = vpop.f32.mrb[13].mxu0 }
 0x22a   : > { %v6702_v44 = vpop.f32.mrb[14].mxu0 }
 0x22b   : > { %v6707_v46 = vpop.f32.mrb[15].mxu0 }
 0x22e   : > { %4738 = vmatmul.mubr.msk.bf16.gmra.mrb[24].mxu1 %vm1200_vm2, %v1188_v33  ;;  %v5530_v33 = vld [vmem:[%s7683_s9 + $0x74] ss:$8 sps:$4 sm:$0xff]  }
 0x22f   : > { %1298 = vmatprep.mubr.bf16.mxu1 %v7704_v19 }
 0x230   : > { %v6718_v50 = vpop.f32.mrb[16].mxu0 }
 0x231   : > { %v6720_v51 = vpop.f32.mrb[17].mxu0 }
 0x232   : > { %v6722_v52 = vpop.f32.mrb[18].mxu0 }
 0x233   : > { %v6727_v54 = vpop.f32.mrb[19].mxu0 }
 0x236   : > { %4739 = vmatmul.mubr.msk.bf16.gmra.mrb[28].mxu1 %vm1200_vm2, %v1191_v41  ;;  %v5542_v41 = vld [vmem:[%s7683_s9 + $0xb4] ss:$8 sps:$4 sm:$0xff]  }
 0x237   : > { %1308 = vmatprep.mubr.bf16.mxu1 %v7704_v19 }
 0x238   : > { %v6732_v56 = vpop.f32.mrb[20].mxu0 }
 0x239   : > { %v6734_v57 = vpop.f32.mrb[21].mxu0 }
 0x23a   : > { %v6736_v58 = vpop.f32.mrb[22].mxu0 }
 0x23b   : > { %v6738_v59 = vpop.f32.mrb[23].mxu0 }
 0x23e   : > { %4740 = vmatmul.mubr.msk.bf16.gmra.mrb[32].mxu1 %vm1200_vm2, %v1192_v39  ;;  %v5539_v39 = vld [vmem:[%s7683_s9 + $0xa4] ss:$8 sps:$4 sm:$0xff]  }
 0x23f   : > { %1380 = vmatprep.mubr.bf16.mxu1 %v7704_v19 }
 0x240   : > { %v6740_v60 = vpop.f32.mrb[24].mxu0 }
 0x241   : > { %v6742_v61 = vpop.f32.mrb[25].mxu0 }
 0x242   : > { %v6744_v63 = vpop.f32.mrb[26].mxu0 }
 0x243   : > { %v6746_v0 = vpop.f32.mrb[27].mxu0 }
 0x246   : > { %4744 = vmatmul.mubr.msk.bf16.vlgmr.msra.gmra.mrb[12].mxu1 %vm1200_vm2, %v1181_v6 }
 0x247   : > { %1390 = vmatprep.mubr.bf16.mxu1 %v7704_v19 }
 0x24e   : > { %4745 = vmatmul.mubr.msk.bf16.gmra.mrb[16].mxu1 %vm1200_vm2, %v1182_v3  ;;  %v6748_v3 = vpop.f32.mrb[28].mxu0 }
 0x24f   : > { %1400 = vmatprep.mubr.bf16.mxu1 %v7704_v19  ;;  %v6750_v4 = vpop.f32.mrb[29].mxu0 }
 0x250   : > { %v6752_v5 = vpop.f32.mrb[30].mxu0 }
 0x251   : > { %v6754_v6 = vpop.f32.mrb[31].mxu0 }
 0x252   : > { %v6756_v8 = vpop.f32.mrb[32].mxu0 }
 0x253   : > { %v6758_v9 = vpop.f32.mrb[33].mxu0 }
 0x254   : > { %v6760_v10 = vpop.f32.mrb[34].mxu0 }
 0x255   : > { %v6762_v12 = vpop.f32.mrb[35].mxu0 }
 0x256   : > { %4746 = vmatmul.mubr.msk.bf16.gmra.mrb[20].mxu1 %vm1200_vm2, %v1185_v23  ;;  %v5515_v23 = vld [vmem:[%s7683_s9 + $0x24] ss:$8 sps:$4 sm:$0xff]  }
 0x257   : > { %1410 = vmatprep.mubr.bf16.mxu1 %v7704_v19 }
 0x25e   : > { %4747 = vmatmul.mubr.msk.bf16.gmra.mrb[24].mxu1 %vm1200_vm2, %v1186_v17  ;;  %v5509_v17 = vld [vmem:[%s7683_s9 + $0x4] ss:$8 sps:$4 sm:$0xff]  }
 0x25f   : > { %1420 = vmatprep.mubr.bf16.mxu1 %v7704_v19  ;;  %2227 = vmatprep.subr.bf16.mxu1 %v5509_v17 }
 0x260   : > { %2228 = vmatpush1.bf16.msra.mxu1 %v5507_v15  ;;  %v1621_v15 = vshrl.u32 %v1620_v55, 7 }
 0x261   : > { %2229 = vmatprep.subr.bf16.mxu1 %v5512_v20  ;;  %v1618_v20 = vld [vmem:[#allocation7] sm:$0x3] }
 0x262   : > { %v6848_v17 = vsub.s32 0, %v1621_v15 }
 0x264   : > { %2230 = vmatpush1.bf16.msra.mxu1 %v5510_v22  ;;  %v6850_v22 = vsub.s32 1, %v1621_v15 }
 0x265   : > { %2231 = vmatprep.subr.bf16.mxu1 %v5515_v23  ;;  %v6853_v23 = vrot.slane %v1618_v20, %v6848_v17 }
 0x266   : > { %4748 = vmatmul.mubr.msk.bf16.gmra.mrb[28].mxu1 %vm1200_vm2, %v1189_v29  ;;  %v5524_v29 = vld [vmem:[%s7683_s9 + $0x54] ss:$8 sps:$4 sm:$0xff]  }
 0x267   : > { %1430 = vmatprep.mubr.bf16.mxu1 %v7704_v19 }
 0x268   : > { %2232 = vmatpush1.bf16.msra.mxu1 %v5513_v24 }
 0x269   : > { %2233 = vmatprep.subr.bf16.mxu1 %v5518_v25  ;;  %v6856_v25 = vrot.slane %v1618_v20, %v6850_v22 }
 0x26c   : > { %2234 = vmatpush1.bf16.msra.mxu1 %v5516_v26 }
 0x26e   : > { %4749 = vmatmul.mubr.msk.bf16.gmra.mrb[32].mxu1 %vm1200_vm2, %v1190_v27  ;;  %v5521_v27 = vld [vmem:[%s7683_s9 + $0x44] ss:$8 sps:$4 sm:$0xff]  }
 0x26f   : > { %2235 = vmatprep.subr.bf16.mxu1 %v5521_v27 }
 0x270   : > { %2236 = vmatpush1.bf16.msra.mxu1 %v5519_v28 }
 0x271   : > { %2237 = vmatprep.subr.bf16.mxu1 %v5524_v29 }
 0x274   : > { %2238 = vmatpush1.bf16.msra.mxu1 %v5522_v30 }
 0x275   : > { %2239 = vmatprep.subr.bf16.mxu1 %v5527_v31 }
 0x278   : > { %2240 = vmatpush1.bf16.msra.mxu1 %v5525_v32 }
 0x279   : > { %2241 = vmatprep.subr.bf16.mxu1 %v5530_v33 }
 0x27c   : > { %2242 = vmatpush1.bf16.msra.mxu1 %v5528_v34 }
 0x27d   : > { %2243 = vmatprep.subr.bf16.mxu1 %v5533_v35 }
 0x280   : > { %2244 = vmatpush1.bf16.msra.mxu1 %v5531_v36 }
 0x281   : > { %2245 = vmatprep.subr.bf16.mxu1 %v5536_v37 }
 0x284   : > { %2246 = vmatpush1.bf16.msra.mxu1 %v5534_v38 }
 0x285   : > { %2247 = vmatprep.subr.bf16.mxu1 %v5539_v39 }
 0x288   : > { %2248 = vmatpush1.bf16.msra.mxu1 %v5537_v40 }
 0x289   : > { %2249 = vmatprep.subr.bf16.mxu1 %v5542_v41 }
 0x28c   : > { %2250 = vmatpush1.bf16.msra.mxu1 %v5540_v45 }
 0x28d   : > { %2251 = vmatprep.subr.bf16.mxu1 %v5545_v47 }
 0x290   : > { %2252 = vmatpush1.bf16.msra.mxu1 %v5543_v48 }
 0x291   : > { %2253 = vmatprep.subr.bf16.mxu1 %v5548_v49 }
 0x294   : > { %2254 = vmatpush1.bf16.msra.mxu1 %v5546_v53 }
 0x319   : > { %v1382_v24 = vpop.f32.mrb[12].mxu1 }
 0x31a   : > { %v1594_v26 = vadd.f32 %v6698_v42, %v1382_v24  ;;  %v1384_v27 = vpop.f32.mrb[13].mxu1 }
 0x31b   : > { %v1595_v28 = vadd.f32 %v6700_v43, %v1384_v27  ;;  %v1386_v29 = vpop.f32.mrb[14].mxu1 }
 0x31c   : > { %v1630_v30 = vadd.f32 %v6853_v23, %v1594_v26  ;;  %v1596_v31 = vadd.f32 %v6702_v44, %v1386_v29  ;;  %v1388_v32 = vpop.f32.mrb[15].mxu1 }
 0x31d   : > { %v1631_v33 = vadd.f32 %v6856_v25, %v1595_v28  ;;  %v1597_v34 = vadd.f32 %v6707_v46, %v1388_v32 }
 0x31e   : > { %v1632_v35 = vadd.f32 %v6853_v23, %v1596_v31  ;;  %v1654_v37 = vmax.f32 %v1630_v30, 0.0 }
 0x31f   : > { %v1633_v36 = vadd.f32 %v6856_v25, %v1597_v34  ;;  %v1655_v39 = vmax.f32 %v1631_v33, 0.0 }
 0x320   : > { %v1656_v38 = vmax.f32 %v1632_v35, 0.0 }
 0x321   : > { %v1657_v40 = vmax.f32 %v1633_v36, 0.0  ;;  %v1392_v41 = vpop.f32.mrb[16].mxu1 }
 0x322   : > { %v1678_v45 = vpack.c.bf16 %v1656_v38, %v1654_v37  ;;  %v1598_v47 = vadd.f32 %v6718_v50, %v1392_v41  ;;  %v1394_v48 = vpop.f32.mrb[17].mxu1 }
 0x323   : > { %v1599_v49 = vadd.f32 %v6720_v51, %v1394_v48  ;;  %v1396_v53 = vpop.f32.mrb[18].mxu1  ;;  %v1679_v55 = vpack.c.bf16 %v1657_v40, %v1655_v39 }
 0x324   : > { %v1634_v15 = vadd.f32 %v6853_v23, %v1598_v47  ;;  %v1600_v20 = vadd.f32 %v6722_v52, %v1396_v53  ;;  %v1398_v24 = vpop.f32.mrb[19].mxu1 }
 0x325   : > { %v1635_v26 = vadd.f32 %v6856_v25, %v1599_v49  ;;  %v1601_v27 = vadd.f32 %v6727_v54, %v1398_v24  ;;  %1926 = vmatprep.mubr.bf16.mxu0 %v1679_v55 }
 0x326   : > { %v1636_v28 = vadd.f32 %v6853_v23, %v1600_v20  ;;  %1927 = vmatmul.mubr.bf16.vlgmr.msra.gmra.mrb[36].mxu0 %v1678_v45  ;;  %v1658_v30 = vmax.f32 %v1634_v15, 0.0 }
 0x327   : > { %v1637_v29 = vadd.f32 %v6856_v25, %v1601_v27  ;;  %v1659_v32 = vmax.f32 %v1635_v26, 0.0 }
 0x328   : > { %v1660_v31 = vmax.f32 %v1636_v28, 0.0 }
 0x329   : > { %v1661_v33 = vmax.f32 %v1637_v29, 0.0  ;;  %v1402_v34 = vpop.f32.mrb[20].mxu1 }
 0x32a   : > { %v1602_v35 = vadd.f32 %v6732_v56, %v1402_v34  ;;  %v1404_v36 = vpop.f32.mrb[21].mxu1  ;;  %v1680_v37 = vpack.c.bf16 %v1660_v31, %v1658_v30 }
 0x32b   : > { %v1603_v38 = vadd.f32 %v6734_v57, %v1404_v36  ;;  %v1406_v39 = vpop.f32.mrb[22].mxu1  ;;  %v1681_v40 = vpack.c.bf16 %v1661_v33, %v1659_v32 }
 0x32c   : > { %v1638_v41 = vadd.f32 %v6853_v23, %v1602_v35  ;;  %v1604_v47 = vadd.f32 %v6736_v58, %v1406_v39  ;;  %v1408_v45 = vpop.f32.mrb[23].mxu1 }
 0x32d   : > { %v1639_v48 = vadd.f32 %v6856_v25, %v1603_v38  ;;  %v1605_v49 = vadd.f32 %v6738_v59, %v1408_v45  ;;  %1936 = vmatprep.mubr.bf16.mxu0 %v1681_v40 }
 0x32e   : > { %v1640_v53 = vadd.f32 %v6853_v23, %v1604_v47  ;;  %1937 = vmatmul.mubr.bf16.gmra.mrb[40].mxu0 %v1680_v37  ;;  %v1662_v15 = vmax.f32 %v1638_v41, 0.0 }
 0x32f   : > { %v1641_v55 = vadd.f32 %v6856_v25, %v1605_v49  ;;  %v1663_v24 = vmax.f32 %v1639_v48, 0.0 }
 0x330   : > { %v1664_v20 = vmax.f32 %v1640_v53, 0.0 }
 0x331   : > { %v1665_v26 = vmax.f32 %v1641_v55, 0.0  ;;  %v1412_v27 = vpop.f32.mrb[24].mxu1 }
 0x332   : > { %v1606_v28 = vadd.f32 %v6740_v60, %v1412_v27  ;;  %v1414_v29 = vpop.f32.mrb[25].mxu1  ;;  %v1682_v30 = vpack.c.bf16 %v1664_v20, %v1662_v15 }
 0x333   : > { %v1607_v31 = vadd.f32 %v6742_v61, %v1414_v29  ;;  %v1416_v32 = vpop.f32.mrb[26].mxu1  ;;  %v1683_v33 = vpack.c.bf16 %v1665_v26, %v1663_v24 }
 0x334   : > { %v1642_v34 = vadd.f32 %v6853_v23, %v1606_v28  ;;  %v1608_v35 = vadd.f32 %v6744_v63, %v1416_v32  ;;  %v1418_v36 = vpop.f32.mrb[27].mxu1 }
 0x335   : > { %v1643_v37 = vadd.f32 %v6856_v25, %v1607_v31  ;;  %v1609_v38 = vadd.f32 %v6746_v0, %v1418_v36  ;;  %1946 = vmatprep.mubr.bf16.mxu0 %v1683_v33 }
 0x336   : > { %v1644_v39 = vadd.f32 %v6853_v23, %v1608_v35  ;;  %1947 = vmatmul.mubr.bf16.gmra.mrb[44].mxu0 %v1682_v30  ;;  %v1666_v41 = vmax.f32 %v1642_v34, 0.0 }
 0x337   : > { %v1645_v40 = vadd.f32 %v6856_v25, %v1609_v38  ;;  %v1667_v45 = vmax.f32 %v1643_v37, 0.0 }
 0x338   : > { %v1668_v47 = vmax.f32 %v1644_v39, 0.0 }
 0x339   : > { %v1669_v48 = vmax.f32 %v1645_v40, 0.0  ;;  %v1422_v49 = vpop.f32.mrb[28].mxu1 }
 0x33a   : > { %v1610_v53 = vadd.f32 %v6748_v3, %v1422_v49  ;;  %v1424_v55 = vpop.f32.mrb[29].mxu1  ;;  %v1684_v15 = vpack.c.bf16 %v1668_v47, %v1666_v41 }
 0x33b   : > { %v1611_v20 = vadd.f32 %v6750_v4, %v1424_v55  ;;  %v1426_v24 = vpop.f32.mrb[30].mxu1  ;;  %v1685_v26 = vpack.c.bf16 %v1669_v48, %v1667_v45 }
 0x33c   : > { %v1646_v27 = vadd.f32 %v6853_v23, %v1610_v53  ;;  %v1612_v28 = vadd.f32 %v6752_v5, %v1426_v24  ;;  %v1428_v29 = vpop.f32.mrb[31].mxu1 }
 0x33d   : > { %v1647_v30 = vadd.f32 %v6856_v25, %v1611_v20  ;;  %v1613_v31 = vadd.f32 %v6754_v6, %v1428_v29  ;;  %1956 = vmatprep.mubr.bf16.mxu0 %v1685_v26 }
 0x33e   : > { %v1648_v32 = vadd.f32 %v6853_v23, %v1612_v28  ;;  %1957 = vmatmul.mubr.bf16.gmra.mrb[48].mxu0 %v1684_v15  ;;  %v1670_v34 = vmax.f32 %v1646_v27, 0.0 }
 0x33f   : > { %v1649_v33 = vadd.f32 %v6856_v25, %v1613_v31  ;;  %v1671_v36 = vmax.f32 %v1647_v30, 0.0 }
 0x340   : > { %v1672_v35 = vmax.f32 %v1648_v32, 0.0 }
 0x341   : > { %v1673_v37 = vmax.f32 %v1649_v33, 0.0  ;;  %v1432_v38 = vpop.f32.mrb[32].mxu1  ;;  %v5551_v33 = vld [vmem:[%s7683_s9 + $0xe4] ss:$8 sps:$4 sm:$0xff]  }
 0x342   : > { %v1614_v39 = vadd.f32 %v6756_v8, %v1432_v38  ;;  %v1434_v40 = vpop.f32.mrb[33].mxu1  ;;  %v1686_v41 = vpack.c.bf16 %v1672_v35, %v1670_v34  ;;  %v5549_v34 = vld [vmem:[%s7683_s9 + $0xe0] ss:$8 sps:$4 sm:$0xff]   ;;  %2255 = vmatprep.subr.bf16.mxu1 %v5551_v33  ;;  %v5554_v35 = vld [vmem:[%s7683_s9 + $0xf4] ss:$8 sps:$4 sm:$0xff]  }
 0x343   : > { %v1615_v47 = vadd.f32 %v6758_v9, %v1434_v40  ;;  %v1436_v45 = vpop.f32.mrb[34].mxu1  ;;  %v1687_v48 = vpack.c.bf16 %v1673_v37, %v1671_v36  ;;  %2256 = vmatpush1.bf16.msra.mxu1 %v5549_v34  ;;  %v5552_v36 = vld [vmem:[%s7683_s9 + $0xf0] ss:$8 sps:$4 sm:$0xff]   ;;  %v5555_v37 = vld [vmem:[%s7685_s11 + $0x40] sm:$0xff]   ;;  %v5558_v40 = vld [vmem:[%s7685_s11 + $0x8] sm:$0xff]  }
 0x344   : > { %v1650_v49 = vadd.f32 %v6853_v23, %v1614_v39  ;;  %v1616_v53 = vadd.f32 %v6760_v10, %v1436_v45  ;;  %v1438_v55 = vpop.f32.mrb[35].mxu1  ;;  %2257 = vmatprep.subr.bf16.mxu1 %v5554_v35  ;;  %v5556_v38 = vld [vmem:[%s7685_s11] sm:$0xff]   ;;  %v5557_v39 = vld [vmem:[%s7685_s11 + $0x48] sm:$0xff]   ;;  %4959 = vmatprep.subr.bf16.mxu0 %v5555_v37  ;;  %v5561_v45 = vld [vmem:[%s7685_s11 + $0x58] sm:$0xff]  }
 0x345   : > { %v1651_v15 = vadd.f32 %v6856_v25, %v1615_v47  ;;  %v1617_v20 = vadd.f32 %v6762_v12, %v1438_v55  ;;  %1966 = vmatprep.mubr.bf16.mxu0 %v1687_v48  ;;  %4960 = vmatpush3.bf16.msra.mxu0 %v5556_v38  ;;  %v5560_v47 = vld [vmem:[%s7685_s11 + $0x10] sm:$0xff]   ;;  %v5562_v48 = vld [vmem:[%s7685_s11 + $0x18] sm:$0xff]   ;;  %v5565_v55 = vld [vmem:[%s7685_s11 + $0x68] sm:$0xff]  }
 0x346   : > { %v1652_v24 = vadd.f32 %v6853_v23, %v1616_v53  ;;  %1967 = vmatmul.mubr.bf16.gmra.mrb[52].mxu0 %v1686_v41  ;;  %v1674_v27 = vmax.f32 %v1650_v49, 0.0  ;;  %4961 = vmatprep.subr.bf16.mxu0 %v5557_v39  ;;  %v5559_v41 = vld [vmem:[%s7685_s11 + $0x50] sm:$0xff]   ;;  %v5563_v49 = vld [vmem:[%s7685_s11 + $0x60] sm:$0xff]  }
 0x347   : > { %v1653_v26 = vadd.f32 %v6856_v25, %v1617_v20  ;;  %v1675_v29 = vmax.f32 %v1651_v15, 0.0  ;;  %2258 = vmatpush1.bf16.msra.mxu1 %v5552_v36  ;;  %v5564_v53 = vld [vmem:[%s7685_s11 + $0x20] sm:$0xff]   ;;  %v1722_v15 = vld [vmem:[#allocation9] sm:$0x3] }
 0x348   : > { %v1676_v28 = vmax.f32 %v1652_v24, 0.0  ;;  %v6952_v20 = vrot.slane %v1722_v15, %v6848_v17  ;;  %v6955_v24 = vrot.slane %v1722_v15, %v6850_v22 }
 0x349   : > { %v1677_v30 = vmax.f32 %v1653_v26, 0.0  ;;  %4962 = vmatpush3.bf16.msra.mxu0 %v5558_v40 }
 0x34a   : > { %v1688_v31 = vpack.c.bf16 %v1676_v28, %v1674_v27  ;;  %4963 = vmatprep.subr.bf16.mxu0 %v5559_v41 }
 0x34b   : > { %v1689_v32 = vpack.c.bf16 %v1677_v30, %v1675_v29 }
 0x34d   : > { %1976 = vmatprep.mubr.bf16.mxu0 %v1689_v32  ;;  %4964 = vmatpush3.bf16.msra.mxu0 %v5560_v47 }
 0x34e   : > { %1977 = vmatmul.mubr.bf16.gmra.mrb[56].mxu0 %v1688_v31  ;;  %4965 = vmatprep.subr.bf16.mxu0 %v5561_v45 }
 0x351   : > { %4966 = vmatpush3.bf16.msra.mxu0 %v5562_v48 }
 0x352   : > { %4967 = vmatprep.subr.bf16.mxu0 %v5563_v49 }
 0x355   : > { %4968 = vmatpush3.bf16.msra.mxu0 %v5564_v53 }
 0x356   : > { %4969 = vmatprep.subr.bf16.mxu0 %v5565_v55 }
 0x3f9   : > { %v1928_v26 = vpop.f32.mrb[36].mxu0 }
 0x3fa   : > { %v1929_v27 = vadd.f32 %v1928_v26, %v6952_v20  ;;  %v1930_v28 = vpop.f32.mrb[37].mxu0 }
 0x3fb   : > { %v1931_v29 = vadd.f32 %v1930_v28, %v6955_v24  ;;  %v1932_v30 = vpop.f32.mrb[38].mxu0 }
 0x3fc   : > { %v1933_v31 = vadd.f32 %v1932_v30, %v6952_v20  ;;  %v1934_v32 = vpop.f32.mrb[39].mxu0  ;;  %v1987_v34 = vmax.f32 %v1929_v27, 0.0 }
 0x3fd   : > { %v1935_v33 = vadd.f32 %v1934_v32, %v6955_v24  ;;  %v1988_v36 = vmax.f32 %v1931_v29, 0.0 }
 0x3fe   : > { %v1989_v35 = vmax.f32 %v1933_v31, 0.0 }
 0x3ff   : > { %v1990_v37 = vmax.f32 %v1935_v33, 0.0 }
 0x400   : > { %v2011_v38 = vpack.c.bf16 %v1989_v35, %v1987_v34 }
 0x401   : > { %v2012_v39 = vpack.c.bf16 %v1990_v37, %v1988_v36  ;;  %v1938_v40 = vpop.f32.mrb[40].mxu0 }
 0x402   : > { %v1939_v41 = vadd.f32 %v1938_v40, %v6952_v20  ;;  %v1940_v47 = vpop.f32.mrb[41].mxu0 }
 0x403   : > { %v1941_v45 = vadd.f32 %v1940_v47, %v6955_v24  ;;  %v1942_v48 = vpop.f32.mrb[42].mxu0  ;;  %2259 = vmatprep.mubr.bf16.mxu1 %v2012_v39 }
 0x404   : > { %v1943_v49 = vadd.f32 %v1942_v48, %v6952_v20  ;;  %v1944_v53 = vpop.f32.mrb[43].mxu0  ;;  %2260 = vmatmul.mubr.bf16.vlgmr.msra.gmra.mrb[36].mxu1 %v2011_v38  ;;  %v1991_v15 = vmax.f32 %v1939_v41, 0.0 }
 0x405   : > { %v1945_v55 = vadd.f32 %v1944_v53, %v6955_v24  ;;  %v1992_v27 = vmax.f32 %v1941_v45, 0.0 }
 0x406   : > { %v1993_v26 = vmax.f32 %v1943_v49, 0.0 }
 0x407   : > { %v1994_v28 = vmax.f32 %v1945_v55, 0.0 }
 0x408   : > { %v2013_v29 = vpack.c.bf16 %v1993_v26, %v1991_v15 }
 0x409   : > { %v2014_v30 = vpack.c.bf16 %v1994_v28, %v1992_v27  ;;  %v1948_v31 = vpop.f32.mrb[44].mxu0 }
 0x40a   : > { %v1949_v32 = vadd.f32 %v1948_v31, %v6952_v20  ;;  %v1950_v33 = vpop.f32.mrb[45].mxu0 }
 0x40b   : > { %v1951_v34 = vadd.f32 %v1950_v33, %v6955_v24  ;;  %v1952_v35 = vpop.f32.mrb[46].mxu0  ;;  %2269 = vmatprep.mubr.bf16.mxu1 %v2014_v30 }
 0x40c   : > { %v1953_v36 = vadd.f32 %v1952_v35, %v6952_v20  ;;  %v1954_v37 = vpop.f32.mrb[47].mxu0  ;;  %2270 = vmatmul.mubr.bf16.gmra.mrb[40].mxu1 %v2013_v29  ;;  %v1995_v39 = vmax.f32 %v1949_v32, 0.0 }
 0x40d   : > { %v1955_v38 = vadd.f32 %v1954_v37, %v6955_v24  ;;  %v1996_v41 = vmax.f32 %v1951_v34, 0.0 }
 0x40e   : > { %v1997_v40 = vmax.f32 %v1953_v36, 0.0 }
 0x40f   : > { %v1998_v47 = vmax.f32 %v1955_v38, 0.0 }
 0x410   : > { %v2015_v45 = vpack.c.bf16 %v1997_v40, %v1995_v39 }
 0x411   : > { %v2016_v48 = vpack.c.bf16 %v1998_v47, %v1996_v41  ;;  %v1958_v49 = vpop.f32.mrb[48].mxu0 }
 0x412   : > { %v1959_v53 = vadd.f32 %v1958_v49, %v6952_v20  ;;  %v1960_v55 = vpop.f32.mrb[49].mxu0 }
 0x413   : > { %v1961_v15 = vadd.f32 %v1960_v55, %v6955_v24  ;;  %v1962_v26 = vpop.f32.mrb[50].mxu0  ;;  %2279 = vmatprep.mubr.bf16.mxu1 %v2016_v48 }
 0x414   : > { %v1963_v27 = vadd.f32 %v1962_v26, %v6952_v20  ;;  %v1964_v28 = vpop.f32.mrb[51].mxu0  ;;  %2280 = vmatmul.mubr.bf16.gmra.mrb[44].mxu1 %v2015_v45  ;;  %v1999_v30 = vmax.f32 %v1959_v53, 0.0 }
 0x415   : > { %v1965_v29 = vadd.f32 %v1964_v28, %v6955_v24  ;;  %v2000_v32 = vmax.f32 %v1961_v15, 0.0 }
 0x416   : > { %v2001_v31 = vmax.f32 %v1963_v27, 0.0 }
 0x417   : > { %v2002_v33 = vmax.f32 %v1965_v29, 0.0 }
 0x418   : > { %v2017_v34 = vpack.c.bf16 %v2001_v31, %v1999_v30 }
 0x419   : > { %v2018_v35 = vpack.c.bf16 %v2002_v33, %v2000_v32  ;;  %v1968_v36 = vpop.f32.mrb[52].mxu0 }
 0x41a   : > { %v1969_v37 = vadd.f32 %v1968_v36, %v6952_v20  ;;  %v1970_v38 = vpop.f32.mrb[53].mxu0 }
 0x41b   : > { %v1971_v39 = vadd.f32 %v1970_v38, %v6955_v24  ;;  %v1972_v40 = vpop.f32.mrb[54].mxu0  ;;  %2289 = vmatprep.mubr.bf16.mxu1 %v2018_v35 }
 0x41c   : > { %v1973_v41 = vadd.f32 %v1972_v40, %v6952_v20  ;;  %v1974_v47 = vpop.f32.mrb[55].mxu0  ;;  %2290 = vmatmul.mubr.bf16.gmra.mrb[48].mxu1 %v2017_v34  ;;  %v2003_v48 = vmax.f32 %v1969_v37, 0.0 }
 0x41d   : > { %v1975_v45 = vadd.f32 %v1974_v47, %v6955_v24  ;;  %v2004_v53 = vmax.f32 %v1971_v39, 0.0  ;;  %v5567_v47 = vld [vmem:[%s7685_s11 + $0x70] sm:$0xff]  }
 0x41e   : > { %v2005_v49 = vmax.f32 %v1973_v41, 0.0  ;;  %v5566_v41 = vld [vmem:[%s7685_s11 + $0x28] sm:$0xff]  }
 0x41f   : > { %v2006_v55 = vmax.f32 %v1975_v45, 0.0  ;;  %4970 = vmatpush3.bf16.msra.mxu0 %v5566_v41  ;;  %v5568_v45 = vld [vmem:[%s7685_s11 + $0x30] sm:$0xff]   ;;  %v2055_v41 = vld [vmem:[#allocation10] sm:$0x3] }
 0x420   : > { %v2019_v15 = vpack.c.bf16 %v2005_v49, %v2003_v48  ;;  %4971 = vmatprep.subr.bf16.mxu0 %v5567_v47  ;;  %v5569_v48 = vld [vmem:[%s7685_s11 + $0x78] sm:$0xff]   ;;  %v7003_v47 = vrot.slane %v2055_v41, %v6848_v17 }
 0x421   : > { %v2020_v26 = vpack.c.bf16 %v2006_v55, %v2004_v53  ;;  %v1978_v27 = vpop.f32.mrb[56].mxu0  ;;  %v5570_v49 = vld [vmem:[%s7685_s11 + $0x38] sm:$0xff]   ;;  %v5646_v53 = vld [vmem:[%s6501_s30 + $0x10] sm:$0xff]  }
 0x422   : > { %v1979_v28 = vadd.f32 %v1978_v27, %v6952_v20  ;;  %v1980_v29 = vpop.f32.mrb[57].mxu0  ;;  %v2572_v55 = vunpack.c.l.bf16 %v5646_v53  ;;  %v2573_v27 = vunpack.c.h.bf16 %v5646_v53  ;;  %7733 = vst [vmem:[#allocation25_spill] sm:$0xff] %v7003_v47 }
 0x423   : > { %v1981_v30 = vadd.f32 %v1980_v29, %v6955_v24  ;;  %v1982_v31 = vpop.f32.mrb[58].mxu0  ;;  %2299 = vmatprep.mubr.bf16.mxu1 %v2020_v26  ;;  %4972 = vmatpush3.bf16.msra.mxu0 %v5568_v45  ;;  %v5648_v29 = vld [vmem:[%s6501_s30 + $0x18] sm:$0xff]   ;;  %v7006_v45 = vrot.slane %v2055_v41, %v6850_v22 }
 0x424   : > { %v1983_v32 = vadd.f32 %v1982_v31, %v6952_v20  ;;  %v1984_v33 = vpop.f32.mrb[59].mxu0  ;;  %2300 = vmatmul.mubr.bf16.gmra.mrb[52].mxu1 %v2019_v15  ;;  %v2007_v35 = vmax.f32 %v1979_v28, 0.0  ;;  %4973 = vmatprep.subr.bf16.mxu0 %v5569_v48  ;;  %v5647_v15 = vld [vmem:[%s6501_s30 + $0x30] sm:$0xff]   ;;  %v5649_v31 = vld [vmem:[%s6501_s30 + $0x38] sm:$0xff]  }
 0x425   : > { %v1985_v34 = vadd.f32 %v1984_v33, %v6955_v24  ;;  %v2008_v37 = vmax.f32 %v1981_v30, 0.0  ;;  %v2576_v26 = vunpack.c.l.bf16 %v5647_v15  ;;  %2584 = vxpose.xlu0.b32.start [1/4] (short) (narrow) %v2572_v55, 16  ;;  %v2577_v28 = vunpack.c.h.bf16 %v5647_v15  ;;  %7734 = vst [vmem:[#allocation26_spill] sm:$0xff] %v7006_v45 }
 0x426   : > { %v2009_v36 = vmax.f32 %v1983_v32, 0.0  ;;  %v2574_v30 = vunpack.c.l.bf16 %v5648_v29  ;;  %v2578_v32 = vunpack.c.l.bf16 %v5649_v31  ;;  %v2575_v33 = vunpack.c.h.bf16 %v5648_v29 }
 0x427   : > { %v2010_v38 = vmax.f32 %v1985_v34, 0.0  ;;  %4974 = vmatpush3.bf16.msra.mxu0 %v5570_v49  ;;  %2698 = vxpose.xlu1.b32.start [1/4] (short) (narrow) %v2576_v26, 16  ;;  %v2579_v34 = vunpack.c.h.bf16 %v5649_v31 }
 0x428   : > { %v2021_v39 = vpack.c.bf16 %v2009_v36, %v2007_v35  ;;  %v5650_v35 = vld [vmem:[%s6501_s30 + $0x50] sm:$0xff]  }
 0x429   : > { %v2022_v40 = vpack.c.bf16 %v2010_v38, %v2008_v37  ;;  %2585 = vxpose.xlu0.b32.cont [2/4] (short) (narrow) %v2573_v27, 16  ;;  %v2580_v36 = vunpack.c.l.bf16 %v5650_v35  ;;  %v2581_v37 = vunpack.c.h.bf16 %v5650_v35  ;;  %v5651_v38 = vld [vmem:[%s6501_s30 + $0x58] sm:$0xff]  }
 0x42b   : > { %2309 = vmatprep.mubr.bf16.mxu1 %v2022_v40  ;;  %2699 = vxpose.xlu1.b32.cont [2/4] (short) (narrow) %v2577_v28, 16  ;;  %v2583_v40 = vunpack.c.h.bf16 %v5651_v38 }
 0x42c   : > { %2310 = vmatmul.mubr.bf16.gmra.mrb[56].mxu1 %v2021_v39  ;;  %v2582_v39 = vunpack.c.l.bf16 %v5651_v38 }
 0x42d   : > { %2586 = vxpose.xlu0.b32.cont [3/4] (short) (narrow) %v2574_v30, 16 }
 0x42f   : > { %2700 = vxpose.xlu1.b32.cont [3/4] (short) (narrow) %v2578_v32, 16 }
 0x431   : > { %2587 = vxpose.xlu0.b32.end [4/4] (short) (narrow) %v2575_v33, 16 }
 0x433   : > { %2701 = vxpose.xlu1.b32.end [4/4] (short) (narrow) %v2579_v34, 16 }
 0x435   : > { %2811 = vxpose.xlu0.b32.start [1/4] (short) (narrow) %v2580_v36, 16 }
 0x439   : > { %2812 = vxpose.xlu0.b32.cont [2/4] (short) (narrow) %v2581_v37, 16 }
 0x43d   : > { %2813 = vxpose.xlu0.b32.cont [3/4] (short) (narrow) %v2582_v39, 16 }
 0x441   : > { %2814 = vxpose.xlu0.b32.end [4/4] (short) (narrow) %v2583_v40, 16 }
 0x4d7   : > { %v2261_v48 = vpop.f32.mrb[36].mxu1 }
 0x4d8   : > { %v2262_v49 = vadd.f32 %v2261_v48, %v7003_v47  ;;  %v2263_v53 = vpop.f32.mrb[37].mxu1 }
 0x4d9   : > { %v2264_v55 = vadd.f32 %v2263_v53, %v7006_v45  ;;  %v2265_v15 = vpop.f32.mrb[38].mxu1 }
 0x4da   : > { %v2266_v26 = vadd.f32 %v2265_v15, %v7003_v47  ;;  %v2267_v27 = vpop.f32.mrb[39].mxu1  ;;  %v2320_v29 = vmax.f32 %v2262_v49, 0.0 }
 0x4db   : > { %v2268_v28 = vadd.f32 %v2267_v27, %v7006_v45  ;;  %v2321_v31 = vmax.f32 %v2264_v55, 0.0 }
 0x4dc   : > { %v2322_v30 = vmax.f32 %v2266_v26, 0.0 }
 0x4dd   : > { %v2323_v32 = vmax.f32 %v2268_v28, 0.0 }
 0x4de   : > { %v2344_v33 = vpack.c.bf16 %v2322_v30, %v2320_v29 }
 0x4df   : > { %v2345_v34 = vpack.c.bf16 %v2323_v32, %v2321_v31  ;;  %v2271_v35 = vpop.f32.mrb[40].mxu1 }
 0x4e0   : > { %v2272_v36 = vadd.f32 %v2271_v35, %v7003_v47  ;;  %v2273_v37 = vpop.f32.mrb[41].mxu1 }
 0x4e1   : > { %v2274_v38 = vadd.f32 %v2273_v37, %v7006_v45  ;;  %v2275_v39 = vpop.f32.mrb[42].mxu1  ;;  %2523 = vmatprep.mubr.bf16.mxu0 %v2345_v34 }
 0x4e2   : > { %v2276_v40 = vadd.f32 %v2275_v39, %v7003_v47  ;;  %v2277_v41 = vpop.f32.mrb[43].mxu1  ;;  %2524 = vmatmul.mubr.bf16.vlgmr.msra.gmra.mrb[60].mxu0 %v2344_v33  ;;  %v2324_v49 = vmax.f32 %v2272_v36, 0.0 }
 0x4e3   : > { %v2278_v48 = vadd.f32 %v2277_v41, %v7006_v45  ;;  %v2325_v55 = vmax.f32 %v2274_v38, 0.0 }
 0x4e4   : > { %v2326_v53 = vmax.f32 %v2276_v40, 0.0 }
 0x4e5   : > { %v2327_v15 = vmax.f32 %v2278_v48, 0.0 }
 0x4e6   : > { %v2346_v26 = vpack.c.bf16 %v2326_v53, %v2324_v49 }
 0x4e7   : > { %v2347_v27 = vpack.c.bf16 %v2327_v15, %v2325_v55  ;;  %v2281_v28 = vpop.f32.mrb[44].mxu1 }
 0x4e8   : > { %v2282_v29 = vadd.f32 %v2281_v28, %v7003_v47  ;;  %v2283_v30 = vpop.f32.mrb[45].mxu1 }
 0x4e9   : > { %v2284_v31 = vadd.f32 %v2283_v30, %v7006_v45  ;;  %v2285_v32 = vpop.f32.mrb[46].mxu1  ;;  %2531 = vmatprep.mubr.bf16.mxu0 %v2347_v27 }
 0x4ea   : > { %v2286_v34 = vadd.f32 %v2285_v32, %v7003_v47  ;;  %v2287_v35 = vpop.f32.mrb[47].mxu1  ;;  %2532 = vmatmul.mubr.bf16.gmra.mrb[64].mxu0 %v2346_v26  ;;  %v2328_v36 = vmax.f32 %v2282_v29, 0.0 }
 0x4eb   : > { %v2288_v33 = vadd.f32 %v2287_v35, %v7006_v45  ;;  %v2329_v38 = vmax.f32 %v2284_v31, 0.0 }
 0x4ec   : > { %v2330_v37 = vmax.f32 %v2286_v34, 0.0 }
 0x4ed   : > { %v2331_v39 = vmax.f32 %v2288_v33, 0.0 }
 0x4ee   : > { %v2348_v40 = vpack.c.bf16 %v2330_v37, %v2328_v36 }
 0x4ef   : > { %v2349_v41 = vpack.c.bf16 %v2331_v39, %v2329_v38  ;;  %v2291_v48 = vpop.f32.mrb[48].mxu1 }
 0x4f0   : > { %v2292_v49 = vadd.f32 %v2291_v48, %v7003_v47  ;;  %v2293_v53 = vpop.f32.mrb[49].mxu1 }
 0x4f1   : > { %v2294_v55 = vadd.f32 %v2293_v53, %v7006_v45  ;;  %v2295_v15 = vpop.f32.mrb[50].mxu1  ;;  %2539 = vmatprep.mubr.bf16.mxu0 %v2349_v41 }
 0x4f2   : > { %v2296_v27 = vadd.f32 %v2295_v15, %v7003_v47  ;;  %v2297_v28 = vpop.f32.mrb[51].mxu1  ;;  %2540 = vmatmul.mubr.bf16.gmra.mrb[68].mxu0 %v2348_v40  ;;  %v2332_v29 = vmax.f32 %v2292_v49, 0.0 }
 0x4f3   : > { %v2298_v26 = vadd.f32 %v2297_v28, %v7006_v45  ;;  %v2333_v31 = vmax.f32 %v2294_v55, 0.0 }
 0x4f4   : > { %v2334_v30 = vmax.f32 %v2296_v27, 0.0 }
 0x4f5   : > { %v2335_v32 = vmax.f32 %v2298_v26, 0.0 }
 0x4f6   : > { %v2350_v34 = vpack.c.bf16 %v2334_v30, %v2332_v29 }
 0x4f7   : > { %v2351_v35 = vpack.c.bf16 %v2335_v32, %v2333_v31  ;;  %v2301_v33 = vpop.f32.mrb[52].mxu1 }
 0x4f8   : > { %v2302_v36 = vadd.f32 %v2301_v33, %v7003_v47  ;;  %v2303_v37 = vpop.f32.mrb[53].mxu1 }
 0x4f9   : > { %v2304_v38 = vadd.f32 %v2303_v37, %v7006_v45  ;;  %v2305_v39 = vpop.f32.mrb[54].mxu1  ;;  %2547 = vmatprep.mubr.bf16.mxu0 %v2351_v35 }
 0x4fa   : > { %v2306_v41 = vadd.f32 %v2305_v39, %v7003_v47  ;;  %v2307_v48 = vpop.f32.mrb[55].mxu1  ;;  %2548 = vmatmul.mubr.bf16.gmra.mrb[72].mxu0 %v2350_v34  ;;  %v2336_v49 = vmax.f32 %v2302_v36, 0.0 }
 0x4fb   : > { %v2308_v40 = vadd.f32 %v2307_v48, %v7006_v45  ;;  %v2337_v55 = vmax.f32 %v2304_v38, 0.0 }
 0x4fc   : > { %v2338_v53 = vmax.f32 %v2306_v41, 0.0 }
 0x4fd   : > { %v2339_v15 = vmax.f32 %v2308_v40, 0.0  ;;  %v2600_v40 = vpop.trf.xlu0 }
 0x4fe   : > { %v2352_v27 = vpack.c.bf16 %v2338_v53, %v2336_v49  ;;  %5168 = vmatprep.mubr.msk.f32.mxu1 %vm2616_vm3, %v2600_v40 }
 0x4ff   : > { %v2353_v28 = vpack.c.bf16 %v2339_v15, %v2337_v55  ;;  %v2311_v26 = vpop.f32.mrb[56].mxu1 }
 0x500   : > { %v2312_v29 = vadd.f32 %v2311_v26, %v7003_v47  ;;  %v2313_v30 = vpop.f32.mrb[57].mxu1  ;;  %v7034_v26 = vld [vmem:[#allocation12] ss:$0 sm:$0xff] }
 0x501   : > { %v2314_v31 = vadd.f32 %v2313_v30, %v7006_v45  ;;  %v2315_v32 = vpop.f32.mrb[58].mxu1  ;;  %2555 = vmatprep.mubr.bf16.mxu0 %v2353_v28  ;;  %v2601_v49 = vpop.trf.xlu0 }
 0x502   : > { %v2316_v35 = vadd.f32 %v2315_v32, %v7003_v47  ;;  %v2317_v33 = vpop.f32.mrb[59].mxu1  ;;  %2556 = vmatmul.mubr.bf16.gmra.mrb[76].mxu0 %v2352_v27  ;;  %v2340_v36 = vmax.f32 %v2312_v29, 0.0 }
 0x503   : > { %v2318_v34 = vadd.f32 %v2317_v33, %v7006_v45  ;;  %v2341_v38 = vmax.f32 %v2314_v31, 0.0 }
 0x504   : > { %v2342_v37 = vmax.f32 %v2316_v35, 0.0 }
 0x505   : > { %v2343_v39 = vmax.f32 %v2318_v34, 0.0  ;;  %v2827_v53 = vpop.trf.xlu0 }
 0x506   : > { %v2354_v41 = vpack.c.bf16 %v2342_v37, %v2340_v36 }
 0x507   : > { %v2355_v48 = vpack.c.bf16 %v2343_v39, %v2341_v38 }
 0x509   : > { %2563 = vmatprep.mubr.bf16.mxu0 %v2355_v48 }
 0x50a   : > { %2564 = vmatmul.mubr.bf16.gmra.mrb[80].mxu0 %v2354_v41 }
 0x50b   : > { %5190 = vmatprep.mubr.msk.f32.mxu0 %vm2616_vm3, %v2827_v53 }
 0x5b5   : > { %v4975_v55 = vpop.f32.mrb[60].mxu0 }
 0x5b6   : > { %v4976_v15 = vpop.f32.mrb[61].mxu0 }
 0x5b7   : > { %v4977_v27 = vadd.f32 %v4976_v15, %v4975_v55  ;;  %v4978_v28 = vpop.f32.mrb[62].mxu0 }
 0x5b8   : > { %v4979_v29 = vpop.f32.mrb[63].mxu0 }
 0x5b9   : > { %v4980_v30 = vadd.f32 %v4979_v29, %v4978_v28  ;;  %v2526_v31 = vadd.f32 %v4977_v27, %v7034_v26 }
 0x5bb   : > { %v2529_v32 = vadd.f32 %v4980_v30, %v7034_v26  ;;  %v2714_v30 = vpop.trf.xlu1 }
 0x5bd   : > { %v4981_v35 = vpop.f32.mrb[64].mxu0  ;;  %v5223_v33 = vpack.c.bf16 %v2529_v32, %v2526_v31 }
 0x5be   : > { %v4982_v34 = vpop.f32.mrb[65].mxu0 }
 0x5bf   : > { %v4983_v36 = vadd.f32 %v4982_v34, %v4981_v35  ;;  %v4984_v37 = vpop.f32.mrb[66].mxu0  ;;  %5224 = vmatprep.subr.bf16.mxu1 %v5223_v33 }
 0x5c0   : > { %v4985_v38 = vpop.f32.mrb[67].mxu0  ;;  %5226 = vmatpush3.bf16.msra.mxu1 %v5223_v33 }
 0x5c1   : > { %v4986_v39 = vadd.f32 %v4985_v38, %v4984_v37  ;;  %v2534_v41 = vadd.f32 %v4983_v36, %v7034_v26 }
 0x5c3   : > { %v2537_v48 = vadd.f32 %v4986_v39, %v7034_v26 }
 0x5c5   : > { %v4987_v40 = vpop.f32.mrb[68].mxu0  ;;  %v5227_v53 = vpack.c.bf16 %v2537_v48, %v2534_v41 }
 0x5c6   : > { %v4988_v55 = vpop.f32.mrb[69].mxu0 }
 0x5c7   : > { %v4989_v15 = vadd.f32 %v4988_v55, %v4987_v40  ;;  %v4990_v27 = vpop.f32.mrb[70].mxu0  ;;  %5228 = vmatprep.subr.bf16.mxu1 %v5227_v53 }
 0x5c8   : > { %v4991_v28 = vpop.f32.mrb[71].mxu0  ;;  %5230 = vmatpush3.bf16.msra.mxu1 %v5227_v53 }
 0x5c9   : > { %v4992_v29 = vadd.f32 %v4991_v28, %v4990_v27  ;;  %v2542_v31 = vadd.f32 %v4989_v15, %v7034_v26  ;;  %v2715_v28 = vpop.trf.xlu1 }
 0x5cb   : > { %v2545_v32 = vadd.f32 %v4992_v29, %v7034_v26  ;;  %5169 = vmatmul.mubr.msk.f32.vlgmr.msra.gmra.mrb[60].mxu1 %vm2616_vm3, %v2601_v49 }
 0x5cc   : > { %5179 = vmatprep.mubr.msk.f32.mxu1 %vm2616_vm3, %v2714_v30 }
 0x5cd   : > { %v4993_v35 = vpop.f32.mrb[72].mxu0  ;;  %v5231_v33 = vpack.c.bf16 %v2545_v32, %v2542_v31 }
 0x5ce   : > { %v4994_v34 = vpop.f32.mrb[73].mxu0 }
 0x5cf   : > { %v4995_v36 = vadd.f32 %v4994_v34, %v4993_v35  ;;  %v4996_v37 = vpop.f32.mrb[74].mxu0  ;;  %5232 = vmatprep.subr.bf16.mxu1 %v5231_v33 }
 0x5d0   : > { %v4997_v38 = vpop.f32.mrb[75].mxu0  ;;  %5234 = vmatpush3.bf16.msra.mxu1 %v5231_v33 }
 0x5d1   : > { %v4998_v39 = vadd.f32 %v4997_v38, %v4996_v37  ;;  %v2550_v41 = vadd.f32 %v4995_v36, %v7034_v26 }
 0x5d3   : > { %v2553_v48 = vadd.f32 %v4998_v39, %v7034_v26 }
 0x5d5   : > { %v4999_v40 = vpop.f32.mrb[76].mxu0  ;;  %v5235_v53 = vpack.c.bf16 %v2553_v48, %v2550_v41 }
 0x5d6   : > { %v5000_v55 = vpop.f32.mrb[77].mxu0 }
 0x5d7   : > { %v5001_v15 = vadd.f32 %v5000_v55, %v4999_v40  ;;  %v5002_v49 = vpop.f32.mrb[78].mxu0  ;;  %5236 = vmatprep.subr.bf16.mxu1 %v5235_v53  ;;  %v2828_v40 = vpop.trf.xlu0  ;;  %v5573_v55 = vld [vmem:[#allocation15 + $0x4] ss:$8 sps:$4 sm:$0xff]  }
 0x5d8   : > { %v5003_v27 = vpop.f32.mrb[79].mxu0  ;;  %5238 = vmatpush3.bf16.msra.mxu1 %v5235_v53  ;;  %v5571_v53 = vld [vmem:[#allocation15] ss:$8 sps:$4 sm:$0xff]  }
 0x5d9   : > { %v5004_v29 = vadd.f32 %v5003_v27, %v5002_v49  ;;  %v2558_v30 = vadd.f32 %v5001_v15, %v7034_v26  ;;  %2949 = vmatprep.subr.bf16.mxu1 %v5573_v55  ;;  %v7053_v15 = vld [vmem:[#allocation13] sm:$0xff]  ;;  %v5605_v55 = vld [vmem:[%s7735_s20 + $0x94] ss:$8 sps:$4 sm:$0xff]  }
 0x5da   : > { %v4858_v49 = vcombine.high %v7053_v15, %v7053_v15  ;;  %v5578_v27 = vld [vmem:[%s7735_s20 + $0x4] ss:$8 sps:$4 sm:$0xff]  }
 0x5db   : > { %v2561_v31 = vadd.f32 %v5004_v29, %v7034_v26  ;;  %5180 = vmatmul.mubr.msk.f32.vlgmr.msra.gmra.mrb[62].mxu1 %vm2616_vm3, %v2715_v28  ;;  %v5581_v28 = vld [vmem:[%s7735_s20 + $0x14] ss:$8 sps:$4 sm:$0xff]   ;;  %v5579_v29 = vld [vmem:[%s7735_s20 + $0x10] ss:$8 sps:$4 sm:$0xff]  }
 0x5dc   : > { %2981 = vmatprep.mubr.bf16.mxu1 %v7704_v19  ;;  %2950 = vmatpush1.bf16.msra.mxu1 %v5571_v53  ;;  %v5600_v53 = vld [vmem:[%s7735_s20 + $0x80] ss:$8 sps:$4 sm:$0xff]  }
 0x5dd   : > { %v5005_v32 = vpop.f32.mrb[80].mxu0  ;;  %v5239_v35 = vpack.c.bf16 %v2561_v31, %v2558_v30  ;;  %4859 = vmatprep.subr.msk.bf16.mxu1 %vm1219_vm1, %v4858_v49  ;;  %v5584_v30 = vld [vmem:[%s7735_s20 + $0x24] ss:$8 sps:$4 sm:$0xff]   ;;  %v5582_v31 = vld [vmem:[%s7735_s20 + $0x20] ss:$8 sps:$4 sm:$0xff]  }
 0x5de   : > { %v5006_v33 = vpop.f32.mrb[81].mxu0  ;;  %v5603_v49 = vld [vmem:[%s7735_s20 + $0x90] ss:$8 sps:$4 sm:$0xff]  }
 0x5df   : > { %v5007_v34 = vadd.f32 %v5006_v33, %v5005_v32  ;;  %v5008_v36 = vpop.f32.mrb[82].mxu0  ;;  %5240 = vmatprep.subr.bf16.mxu0 %v5239_v35  ;;  %v5587_v32 = vld [vmem:[%s7735_s20 + $0x34] ss:$8 sps:$4 sm:$0xff]   ;;  %v5590_v33 = vld [vmem:[%s7735_s20 + $0x44] ss:$8 sps:$4 sm:$0xff]  }
 0x5e0   : > { %v5009_v37 = vpop.f32.mrb[83].mxu0  ;;  %5242 = vmatpush3.bf16.msra.mxu0 %v5239_v35  ;;  %v5585_v35 = vld [vmem:[%s7735_s20 + $0x30] ss:$8 sps:$4 sm:$0xff]  }
 0x5e1   : > { %v5010_v38 = vadd.f32 %v5009_v37, %v5008_v36  ;;  %v2566_v39 = vadd.f32 %v5007_v34, %v7034_v26  ;;  %v5588_v34 = vld [vmem:[%s7735_s20 + $0x40] ss:$8 sps:$4 sm:$0xff]   ;;  %v5593_v36 = vld [vmem:[%s7735_s20 + $0x54] ss:$8 sps:$4 sm:$0xff]   ;;  %v5591_v37 = vld [vmem:[%s7735_s20 + $0x50] ss:$8 sps:$4 sm:$0xff]  }
 0x5e3   : > { %v2569_v41 = vadd.f32 %v5010_v38, %v7034_v26  ;;  %v5576_v26 = vld [vmem:[%s7735_s20] ss:$8 sps:$4 sm:$0xff]   ;;  %v5596_v38 = vld [vmem:[%s7735_s20 + $0x64] ss:$8 sps:$4 sm:$0xff]  }
 0x5e5   : > { %v5243_v48 = vpack.c.bf16 %v2569_v41, %v2566_v39  ;;  %v5594_v39 = vld [vmem:[%s7735_s20 + $0x60] ss:$8 sps:$4 sm:$0xff]   ;;  %v5599_v41 = vld [vmem:[%s7735_s20 + $0x74] ss:$8 sps:$4 sm:$0xff]  }
 0x5e7   : > { %5244 = vmatprep.subr.bf16.mxu0 %v5243_v48 }
 0x5e8   : > { %5246 = vmatpush3.bf16.msra.mxu0 %v5243_v48  ;;  %v5597_v48 = vld [vmem:[%s7735_s20 + $0x70] ss:$8 sps:$4 sm:$0xff]  }
 0x5e9   : > { %3341 = vmatprep.subr.bf16.mxu0 %v5578_v27  ;;  %v5606_v27 = vld [vmem:[%s7735_s20 + $0xa0] ss:$8 sps:$4 sm:$0xff]  }
 0x5eb   : > { %5191 = vmatmul.mubr.msk.f32.vlgmr.msra.gmra.mrb[84].mxu0 %vm2616_vm3, %v2828_v40  ;;  %v5602_v40 = vld [vmem:[%s7735_s20 + $0x84] ss:$8 sps:$4 sm:$0xff]  }
 0x5ec   : > { %3342 = vmatpush1.bf16.msra.mxu0 %v5576_v26  ;;  %v5608_v26 = vld [vmem:[%s7735_s20 + $0xa4] ss:$8 sps:$4 sm:$0xff]  }
 0x5ed   : > { %3343 = vmatprep.subr.bf16.mxu0 %v5581_v28  ;;  %v5611_v28 = vld [vmem:[%s7735_s20 + $0xb4] ss:$8 sps:$4 sm:$0xff]  }
 0x5f0   : > { %3344 = vmatpush1.bf16.msra.mxu0 %v5579_v29  ;;  %v5609_v29 = vld [vmem:[%s7735_s20 + $0xb0] ss:$8 sps:$4 sm:$0xff]  }
 0x5f1   : > { %3345 = vmatprep.subr.bf16.mxu0 %v5584_v30  ;;  %v5614_v30 = vld [vmem:[%s7735_s20 + $0xc4] ss:$8 sps:$4 sm:$0xff]  }
 0x5f4   : > { %3346 = vmatpush1.bf16.msra.mxu0 %v5582_v31  ;;  %v5612_v31 = vld [vmem:[%s7735_s20 + $0xc0] ss:$8 sps:$4 sm:$0xff]  }
 0x5f5   : > { %3347 = vmatprep.subr.bf16.mxu0 %v5587_v32  ;;  %v5617_v32 = vld [vmem:[%s7735_s20 + $0xd4] ss:$8 sps:$4 sm:$0xff]  }
 0x5f8   : > { %3348 = vmatpush1.bf16.msra.mxu0 %v5585_v35  ;;  %v5615_v35 = vld [vmem:[%s7735_s20 + $0xd0] ss:$8 sps:$4 sm:$0xff]  }
 0x5f9   : > { %3349 = vmatprep.subr.bf16.mxu0 %v5590_v33  ;;  %v4857_v33 = vcombine.low %v7053_v15, %v7053_v15 }
 0x5fc   : > { %3350 = vmatpush1.bf16.msra.mxu0 %v5588_v34 }
 0x5fd   : > { %3351 = vmatprep.subr.bf16.mxu0 %v5593_v36 }
 0x600   : > { %3352 = vmatpush1.bf16.msra.mxu0 %v5591_v37 }
 0x601   : > { %3353 = vmatprep.subr.bf16.mxu0 %v5596_v38  ;;  %v3027_v38 = vsel %vm1219_vm1, %v4857_v33, 0  ;;  %v5627_v33 = vld [vmem:[%s7736_s28 + $0x8] sm:$0xff]  }
 0x604   : > { %3354 = vmatpush1.bf16.msra.mxu0 %v5594_v39 }
 0x605   : > { %3355 = vmatprep.subr.bf16.mxu0 %v5599_v41 }
 0x608   : > { %3356 = vmatpush1.bf16.msra.mxu0 %v5597_v48 }
 0x609   : > { %3357 = vmatprep.subr.bf16.mxu0 %v5602_v40 }
 0x60c   : > { %3358 = vmatpush1.bf16.msra.mxu0 %v5600_v53 }
 0x60d   : > { %3359 = vmatprep.subr.bf16.mxu0 %v5605_v55  ;;  %v5652_v55 = vld [vmem:[%s6494_s29] sm:$0xff]  }
 0x610   : > { %3360 = vmatpush1.bf16.msra.mxu0 %v5603_v49  ;;  %v5653_v49 = vld [vmem:[%s6494_s29 + $0x8] sm:$0xff]  }
 0x611   : > { %3361 = vmatprep.subr.bf16.mxu0 %v5608_v26  ;;  %v5654_v26 = vld [vmem:[%s6494_s29 + $0x10] sm:$0xff]  }
 0x614   : > { %3362 = vmatpush1.bf16.msra.mxu0 %v5606_v27  ;;  %v5620_v27 = vld [vmem:[%s7735_s20 + $0xe4] ss:$8 sps:$4 sm:$0xff]  }
 0x615   : > { %3363 = vmatprep.subr.bf16.mxu0 %v5611_v28  ;;  %v5618_v28 = vld [vmem:[%s7735_s20 + $0xe0] ss:$8 sps:$4 sm:$0xff]  }
 0x618   : > { %3364 = vmatpush1.bf16.msra.mxu0 %v5609_v29  ;;  %v5623_v29 = vld [vmem:[%s7735_s20 + $0xf4] ss:$8 sps:$4 sm:$0xff]  }
 0x619   : > { %3365 = vmatprep.subr.bf16.mxu0 %v5614_v30  ;;  %v5621_v30 = vld [vmem:[%s7735_s20 + $0xf0] ss:$8 sps:$4 sm:$0xff]  }
 0x61c   : > { %3366 = vmatpush1.bf16.msra.mxu0 %v5612_v31  ;;  %v5624_v31 = vld [vmem:[%s7736_s28 + $0x40] sm:$0xff]  }
 0x61d   : > { %3367 = vmatprep.subr.bf16.mxu0 %v5617_v32  ;;  %v5625_v32 = vld [vmem:[%s7736_s28] sm:$0xff]  }
 0x620   : > { %3368 = vmatpush1.bf16.msra.mxu0 %v5615_v35  ;;  %v5626_v35 = vld [vmem:[%s7736_s28 + $0x48] sm:$0xff]  }
 0x621   : > { %3369 = vmatprep.subr.bf16.mxu0 %v5620_v27 }
 0x624   : > { %3370 = vmatpush1.bf16.msra.mxu0 %v5618_v28 }
 0x625   : > { %3371 = vmatprep.subr.bf16.mxu0 %v5623_v29 }
 0x628   : > { %3372 = vmatpush1.bf16.msra.mxu0 %v5621_v30 }
 0x69e   : > { %v5170_v34 = vpop.f32.mrb[60].mxu1 }
 0x69f   : > { %v2689_v36 = vpop.f32.mrb[61].mxu1 }
 0x6a0   : > { %v2924_v37 = vpack.c.bf16 %v5170_v34, %v2689_v36  ;;  %v5628_v34 = vld [vmem:[%s7736_s28 + $0x50] sm:$0xff]  }
 0x6a1   : > { %v5629_v36 = vld [vmem:[%s7736_s28 + $0x10] sm:$0xff]  }
 0x6a2   : > { %4854 = vmatmul.mubr.msk.bf16.vlgmr.msra.gmra.mrb[64].mxu1 %vm897_vm0, %v2924_v37  ;;  %v5630_v37 = vld [vmem:[%s7736_s28 + $0x58] sm:$0xff]  }
 0x6a3   : > { %2991 = vmatprep.mubr.bf16.mxu1 %v7704_v19  ;;  %3033 = vmatpush1.bf16.msra.mxu1 %v3027_v38  ;;  %v5631_v38 = vld [vmem:[%s7736_s28 + $0x18] sm:$0xff]  }
 0x6a4   : > { %5029 = vmatprep.subr.bf16.mxu1 %v5624_v31 }
 0x6ae   : > { %v5181_v39 = vpop.f32.mrb[62].mxu1 }
 0x6af   : > { %v2802_v41 = vpop.f32.mrb[63].mxu1 }
 0x6b0   : > { %v2925_v48 = vpack.c.bf16 %v5181_v39, %v2802_v41  ;;  %v5632_v39 = vld [vmem:[%s7736_s28 + $0x60] sm:$0xff]  }
 0x6b1   : > { %v5633_v41 = vld [vmem:[%s7736_s28 + $0x20] sm:$0xff]  }
 0x6b2   : > { %4855 = vmatmul.mubr.msk.bf16.gmra.mrb[68].mxu1 %vm897_vm0, %v2925_v48  ;;  %v5634_v48 = vld [vmem:[%s7736_s28 + $0x68] sm:$0xff]  }
 0x6b3   : > { %3001 = vmatprep.mubr.bf16.mxu1 %v7704_v19 }
 0x6be   : > { %v5192_v15 = vpop.f32.mrb[84].mxu0 }
 0x6bf   : > { %v2915_v40 = vpop.f32.mrb[85].mxu0 }
 0x6c0   : > { %v2926_v53 = vpack.c.bf16 %v5192_v15, %v2915_v40  ;;  %v3095_v15 = vld [vmem:[#allocation16] sm:$0x3] }
 0x6c1   : > { %v3100_v40 = vrot.slane %v3095_v15, %v6848_v17 }
 0x6c2   : > { %4856 = vmatmul.mubr.msk.bf16.gmra.mrb[72].mxu1 %vm897_vm0, %v2926_v53  ;;  %v3104_v53 = vrot.slane %v3095_v15, %v6850_v22 }
 0x6c3   : > { %3064 = vmatprep.mubr.bf16.mxu1 %v7704_v19 }
 0x6ca   : > { %4860 = vmatmul.mubr.msk.bf16.vlgmr.msra.gmra.mrb[64].mxu1 %vm1200_vm2, %v5652_v55 }
 0x6cb   : > { %3074 = vmatprep.mubr.bf16.mxu1 %v7704_v19  ;;  %5030 = vmatpush3.bf16.msra.mxu1 %v5625_v32 }
 0x6cc   : > { %5031 = vmatprep.subr.bf16.mxu1 %v5626_v35 }
 0x6cf   : > { %5032 = vmatpush3.bf16.msra.mxu1 %v5627_v33 }
 0x6d0   : > { %5033 = vmatprep.subr.bf16.mxu1 %v5628_v34 }
 0x6d2   : > { %4861 = vmatmul.mubr.msk.bf16.gmra.mrb[68].mxu1 %vm1200_vm2, %v5653_v49 }
 0x6d3   : > { %3084 = vmatprep.mubr.bf16.mxu1 %v7704_v19  ;;  %5034 = vmatpush3.bf16.msra.mxu1 %v5629_v36 }
 0x6d4   : > { %5035 = vmatprep.subr.bf16.mxu1 %v5630_v37 }
 0x6d7   : > { %5036 = vmatpush3.bf16.msra.mxu1 %v5631_v38 }
 0x6d8   : > { %5037 = vmatprep.subr.bf16.mxu1 %v5632_v39 }
 0x6da   : > { %4862 = vmatmul.mubr.msk.bf16.gmra.mrb[72].mxu1 %vm1200_vm2, %v5654_v26 }
 0x6db   : > { %5038 = vmatpush3.bf16.msra.mxu1 %v5633_v41 }
 0x6dc   : > { %5039 = vmatprep.subr.bf16.mxu1 %v5634_v48 }
 0x79d   : > { %v3066_v55 = vpop.f32.mrb[64].mxu1 }
 0x79e   : > { %v3107_v49 = vadd.f32 %v3100_v40, %v3066_v55  ;;  %v3068_v26 = vpop.f32.mrb[65].mxu1 }
 0x79f   : > { %v3108_v27 = vadd.f32 %v3104_v53, %v3068_v26  ;;  %v3070_v28 = vpop.f32.mrb[66].mxu1 }
 0x7a0   : > { %v3109_v29 = vadd.f32 %v3100_v40, %v3070_v28  ;;  %v3072_v30 = vpop.f32.mrb[67].mxu1  ;;  %v3119_v32 = vmax.f32 %v3107_v49, 0.0 }
 0x7a1   : > { %v3110_v31 = vadd.f32 %v3104_v53, %v3072_v30  ;;  %v3120_v33 = vmax.f32 %v3108_v27, 0.0 }
 0x7a2   : > { %v3121_v35 = vmax.f32 %v3109_v29, 0.0 }
 0x7a3   : > { %v3122_v34 = vmax.f32 %v3110_v31, 0.0 }
 0x7a4   : > { %v3131_v36 = vpack.c.bf16 %v3121_v35, %v3119_v32 }
 0x7a5   : > { %v3132_v37 = vpack.c.bf16 %v3122_v34, %v3120_v33  ;;  %v3076_v38 = vpop.f32.mrb[68].mxu1 }
 0x7a6   : > { %v3111_v39 = vadd.f32 %v3100_v40, %v3076_v38  ;;  %v3078_v41 = vpop.f32.mrb[69].mxu1 }
 0x7a7   : > { %v3112_v48 = vadd.f32 %v3104_v53, %v3078_v41  ;;  %v3080_v19 = vpop.f32.mrb[70].mxu1  ;;  %3373 = vmatprep.mubr.bf16.mxu0 %v3132_v37 }
 0x7a8   : > { %v3113_v15 = vadd.f32 %v3100_v40, %v3080_v19  ;;  %v3082_v55 = vpop.f32.mrb[71].mxu1  ;;  %3374 = vmatmul.mubr.bf16.vlgmr.msra.gmra.mrb[88].mxu0 %v3131_v36  ;;  %v3123_v45 = vmax.f32 %v3111_v39, 0.0 }
 0x7a9   : > { %v3114_v26 = vadd.f32 %v3104_v53, %v3082_v55  ;;  %v3124_v47 = vmax.f32 %v3112_v48, 0.0  ;;  %v5638_v55 = vld [vmem:[%s7736_s28 + $0x78] sm:$0xff]  }
 0x7aa   : > { %v3125_v28 = vmax.f32 %v3113_v15, 0.0 }
 0x7ab   : > { %v3126_v30 = vmax.f32 %v3114_v26, 0.0  ;;  %v5639_v26 = vld [vmem:[%s7736_s28 + $0x38] sm:$0xff]  }
 0x7ac   : > { %v3133_v49 = vpack.c.bf16 %v3125_v28, %v3123_v45  ;;  %v5635_v45 = vld [vmem:[%s7736_s28 + $0x28] sm:$0xff]   ;;  %v3169_v28 = vld [vmem:[#allocation18] sm:$0x3] }
 0x7ad   : > { %v3134_v29 = vpack.c.bf16 %v3126_v30, %v3124_v47  ;;  %v3086_v27 = vpop.f32.mrb[72].mxu1  ;;  %v5655_v47 = vld [vmem:[%s6501_s30 + $0x20] sm:$0xff]   ;;  %5040 = vmatpush3.bf16.msra.mxu1 %v5635_v45  ;;  %v3174_v30 = vrot.slane %v3169_v28, %v6848_v17 }
 0x7ae   : > { %v3115_v31 = vadd.f32 %v3100_v40, %v3086_v27  ;;  %v3088_v32 = vpop.f32.mrb[73].mxu1 }
 0x7af   : > { %v3116_v35 = vadd.f32 %v3104_v53, %v3088_v32  ;;  %v3090_v33 = vpop.f32.mrb[74].mxu1  ;;  %3383 = vmatprep.mubr.bf16.mxu0 %v3134_v29 }
 0x7b0   : > { %v3117_v34 = vadd.f32 %v3100_v40, %v3090_v33  ;;  %v3092_v38 = vpop.f32.mrb[75].mxu1  ;;  %3384 = vmatmul.mubr.bf16.gmra.mrb[92].mxu0 %v3133_v49  ;;  %v3127_v37 = vmax.f32 %v3115_v31, 0.0  ;;  %v5636_v40 = vld [vmem:[%s7736_s28 + $0x70] sm:$0xff]   ;;  %v3178_v49 = vrot.slane %v3169_v28, %v6850_v22 }
 0x7b1   : > { %v3118_v19 = vadd.f32 %v3104_v53, %v3092_v38  ;;  %v3128_v41 = vmax.f32 %v3116_v35, 0.0  ;;  %v5637_v53 = vld [vmem:[%s7736_s28 + $0x30] sm:$0xff]   ;;  %5041 = vmatprep.subr.bf16.mxu1 %v5636_v40 }
 0x7b2   : > { %v3129_v36 = vmax.f32 %v3117_v34, 0.0  ;;  %5042 = vmatpush3.bf16.msra.mxu1 %v5637_v53 }
 0x7b3   : > { %v3130_v39 = vmax.f32 %v3118_v19, 0.0  ;;  %5043 = vmatprep.subr.bf16.mxu1 %v5638_v55 }
 0x7b4   : > { %v3135_v15 = vpack.c.bf16 %v3129_v36, %v3127_v37 }
 0x7b5   : > { %v3136_v48 = vpack.c.bf16 %v3130_v39, %v3128_v41 }
 0x7b6   : > { %5044 = vmatpush3.bf16.msra.mxu1 %v5639_v26 }
 0x7b7   : > { %3393 = vmatprep.mubr.bf16.mxu0 %v3136_v48 }
 0x7b8   : > { %3394 = vmatmul.mubr.bf16.gmra.mrb[96].mxu0 %v3135_v15 }
 0x7b9   : > { %5205 = vmatprep.mubr.msk.bf16.mxu0 %vm897_vm0, %v5655_v47 }
 0x87b   : > { %v3375_v29 = vpop.f32.mrb[88].mxu0 }
 0x87c   : > { %v3376_v27 = vadd.f32 %v3375_v29, %v3174_v30  ;;  %v3377_v31 = vpop.f32.mrb[89].mxu0 }
 0x87d   : > { %v3378_v32 = vadd.f32 %v3377_v31, %v3178_v49  ;;  %v3379_v35 = vpop.f32.mrb[90].mxu0 }
 0x87e   : > { %v3380_v33 = vadd.f32 %v3379_v35, %v3174_v30  ;;  %v3381_v34 = vpop.f32.mrb[91].mxu0  ;;  %v3404_v19 = vmax.f32 %v3376_v27, 0.0 }
 0x87f   : > { %v3382_v38 = vadd.f32 %v3381_v34, %v3178_v49  ;;  %v3405_v36 = vmax.f32 %v3378_v32, 0.0 }
 0x880   : > { %v3406_v37 = vmax.f32 %v3380_v33, 0.0 }
 0x881   : > { %v3407_v41 = vmax.f32 %v3382_v38, 0.0 }
 0x882   : > { %v3416_v39 = vpack.c.bf16 %v3406_v37, %v3404_v19 }
 0x883   : > { %v3417_v15 = vpack.c.bf16 %v3407_v41, %v3405_v36  ;;  %v3385_v48 = vpop.f32.mrb[92].mxu0 }
 0x884   : > { %v3386_v47 = vadd.f32 %v3385_v48, %v3174_v30  ;;  %v3387_v45 = vpop.f32.mrb[93].mxu0 }
 0x885   : > { %v3388_v17 = vadd.f32 %v3387_v45, %v3178_v49  ;;  %v3389_v40 = vpop.f32.mrb[94].mxu0  ;;  %3589 = vmatprep.mubr.bf16.mxu1 %v3417_v15 }
 0x886   : > { %v3390_v22 = vadd.f32 %v3389_v40, %v3174_v30  ;;  %v3391_v53 = vpop.f32.mrb[95].mxu0  ;;  %3590 = vmatmul.mubr.bf16.vlgmr.msra.gmra.mrb[76].mxu1 %v3416_v39  ;;  %v3408_v26 = vmax.f32 %v3386_v47, 0.0  ;;  %v5656_v40 = vld [vmem:[%s6501_s30] sm:$0xff]  }
 0x887   : > { %v3392_v55 = vadd.f32 %v3391_v53, %v3178_v49  ;;  %v3409_v29 = vmax.f32 %v3388_v17, 0.0 }
 0x888   : > { %v3410_v28 = vmax.f32 %v3390_v22, 0.0 }
 0x889   : > { %v3411_v31 = vmax.f32 %v3392_v55, 0.0 }
 0x88a   : > { %v3418_v27 = vpack.c.bf16 %v3410_v28, %v3408_v26 }
 0x88b   : > { %v3419_v35 = vpack.c.bf16 %v3411_v31, %v3409_v29  ;;  %v3395_v32 = vpop.f32.mrb[96].mxu0 }
 0x88c   : > { %v3396_v33 = vadd.f32 %v3395_v32, %v3174_v30  ;;  %v3397_v34 = vpop.f32.mrb[97].mxu0 }
 0x88d   : > { %v3398_v38 = vadd.f32 %v3397_v34, %v3178_v49  ;;  %v3399_v19 = vpop.f32.mrb[98].mxu0  ;;  %3597 = vmatprep.mubr.bf16.mxu1 %v3419_v35 }
 0x88e   : > { %v3400_v37 = vadd.f32 %v3399_v19, %v3174_v30  ;;  %v3401_v36 = vpop.f32.mrb[99].mxu0  ;;  %3598 = vmatmul.mubr.bf16.gmra.mrb[80].mxu1 %v3418_v27  ;;  %v3412_v15 = vmax.f32 %v3396_v33, 0.0  ;;  %v4895_v30 = vld [vmem:[%s7737_s19] ss:$0 sm:$0xff] }
 0x88f   : > { %v3402_v41 = vadd.f32 %v3401_v36, %v3178_v49  ;;  %v3413_v48 = vmax.f32 %v3398_v38, 0.0 }
 0x890   : > { %v3414_v39 = vmax.f32 %v3400_v37, 0.0 }
 0x891   : > { %v3415_v47 = vmax.f32 %v3402_v41, 0.0  ;;  %v5657_v41 = vld [vmem:[%s6501_s30 + $0x8] sm:$0xff]  }
 0x892   : > { %v3420_v45 = vpack.c.bf16 %v3414_v39, %v3412_v15 }
 0x893   : > { %v3421_v17 = vpack.c.bf16 %v3415_v47, %v3413_v48 }
 0x895   : > { %3605 = vmatprep.mubr.bf16.mxu1 %v3421_v17 }
 0x896   : > { %3606 = vmatmul.mubr.bf16.gmra.mrb[84].mxu1 %v3420_v45 }
 0x897   : > { %5195 = vmatprep.mubr.msk.bf16.mxu1 %vm897_vm0, %v5656_v40 }
 0x959   : > { %v5045_v22 = vpop.f32.mrb[76].mxu1 }
 0x95a   : > { %v5046_v53 = vpop.f32.mrb[77].mxu1 }
 0x95b   : > { %v5047_v55 = vadd.f32 %v5046_v53, %v5045_v22  ;;  %v5048_v26 = vpop.f32.mrb[78].mxu1 }
 0x95c   : > { %v5049_v49 = vpop.f32.mrb[79].mxu1 }
 0x95d   : > { %v5050_v28 = vadd.f32 %v5049_v49, %v5048_v26  ;;  %v3592_v29 = vadd.f32 %v5047_v55, %v4895_v30  ;;  %v5659_v55 = vld [vmem:[%s6501_s30 + $0x40] sm:$0xff]   ;;  %v5667_v49 = vld [vmem:[%s7681_s7 + $0x34] ss:$8 sps:$4 sm:$0xff]  }
 0x95f   : > { %v3595_v31 = vadd.f32 %v5050_v28, %v4895_v30  ;;  %v5668_v28 = vld [vmem:[%s7681_s7 + $0x30] ss:$8 sps:$4 sm:$0xff]  }
 0x961   : > { %v5051_v27 = vpop.f32.mrb[80].mxu1  ;;  %v3614_v35 = vpack.c.bf16 %v3595_v31, %v3592_v29  ;;  %v5669_v29 = vld [vmem:[%s7681_s7 + $0x44] ss:$8 sps:$4 sm:$0xff]   ;;  %v5671_v31 = vld [vmem:[%s7681_s7 + $0x54] ss:$8 sps:$4 sm:$0xff]  }
 0x962   : > { %v5052_v32 = vpop.f32.mrb[81].mxu1 }
 0x963   : > { %v5053_v33 = vadd.f32 %v5052_v32, %v5051_v27  ;;  %v5054_v34 = vpop.f32.mrb[82].mxu1  ;;  %5193 = vmatprep.subr.bf16.mxu1 %v3614_v35  ;;  %v5672_v27 = vld [vmem:[%s7681_s7 + $0x50] ss:$8 sps:$4 sm:$0xff]   ;;  %v5674_v32 = vld [vmem:[%s7681_s7 + $0x60] ss:$8 sps:$4 sm:$0xff]  }
 0x964   : > { %v5055_v38 = vpop.f32.mrb[83].mxu1  ;;  %5194 = vmatpush3.bf16.msra.mxu1 %v3614_v35  ;;  %v5673_v35 = vld [vmem:[%s7681_s7 + $0x64] ss:$8 sps:$4 sm:$0xff]  }
 0x965   : > { %v5056_v19 = vadd.f32 %v5055_v38, %v5054_v34  ;;  %v3600_v37 = vadd.f32 %v5053_v33, %v4895_v30  ;;  %v5675_v33 = vld [vmem:[%s7681_s7 + $0x74] ss:$8 sps:$4 sm:$0xff]   ;;  %v5676_v34 = vld [vmem:[%s7681_s7 + $0x70] ss:$8 sps:$4 sm:$0xff]   ;;  %v5677_v38 = vld [vmem:[%s7681_s7 + $0x84] ss:$8 sps:$4 sm:$0xff]  }
 0x967   : > { %v3603_v36 = vadd.f32 %v5056_v19, %v4895_v30  ;;  %5196 = vmatmul.mubr.msk.bf16.vlgmr.msra.gmra.mrb[88].mxu1 %vm897_vm0, %v5657_v41  ;;  %v5678_v19 = vld [vmem:[%s7681_s7 + $0x80] ss:$8 sps:$4 sm:$0xff]   ;;  %v5681_v41 = vld [vmem:[%s7681_s7 + $0xa4] ss:$8 sps:$4 sm:$0xff]  }
 0x968   : > { %5199 = vmatprep.mubr.msk.bf16.mxu1 %vm897_vm0, %v6505_v1  ;;  %v5658_v1 = vld [vmem:[%s6501_s30 + $0x28] sm:$0xff]  }
 0x969   : > { %v5057_v15 = vpop.f32.mrb[84].mxu1  ;;  %v3615_v39 = vpack.c.bf16 %v3603_v36, %v3600_v37  ;;  %v5679_v37 = vld [vmem:[%s7681_s7 + $0x94] ss:$8 sps:$4 sm:$0xff]   ;;  %v5680_v36 = vld [vmem:[%s7681_s7 + $0x90] ss:$8 sps:$4 sm:$0xff]  }
 0x96a   : > { %v5058_v48 = vpop.f32.mrb[85].mxu1 }
 0x96b   : > { %v5059_v47 = vadd.f32 %v5058_v48, %v5057_v15  ;;  %v5060_v45 = vpop.f32.mrb[86].mxu1  ;;  %5203 = vmatprep.subr.bf16.mxu0 %v3615_v39  ;;  %v5682_v15 = vld [vmem:[%s7681_s7 + $0xa0] ss:$8 sps:$4 sm:$0xff]   ;;  %v5684_v48 = vld [vmem:[%s7681_s7 + $0xb0] ss:$8 sps:$4 sm:$0xff]  }
 0x96c   : > { %v5061_v17 = vpop.f32.mrb[87].mxu1  ;;  %5204 = vmatpush3.bf16.msra.mxu0 %v3615_v39  ;;  %v5683_v39 = vld [vmem:[%s7681_s7 + $0xb4] ss:$8 sps:$4 sm:$0xff]  }
 0x96d   : > { %v5062_v40 = vadd.f32 %v5061_v17, %v5060_v45  ;;  %4924 = vmatprep.subr.msk.bf16.mxu0 %vm1219_vm1, %v6554_v16  ;;  %v3608_v22 = vadd.f32 %v5059_v47, %v4895_v30  ;;  %v7738_v16 = vmov 0   ;;  %v5685_v47 = vld [vmem:[%s7681_s7 + $0xc4] ss:$8 sps:$4 sm:$0xff]   ;;  %v5686_v45 = vld [vmem:[%s7681_s7 + $0xc0] ss:$8 sps:$4 sm:$0xff]  }
 0x96e   : > { %v5687_v17 = vld [vmem:[%s7681_s7 + $0xd4] ss:$8 sps:$4 sm:$0xff]  }
 0x96f   : > { %v3611_v53 = vadd.f32 %v5062_v40, %v4895_v30  ;;  %5200 = vmatmul.mubr.msk.bf16.gmra.mrb[92].mxu1 %vm897_vm0, %v6508_v2  ;;  %5206 = vmatmul.mubr.msk.bf16.vlgmr.msra.gmra.mrb[100].mxu0 %vm897_vm0, %v5658_v1  ;;  %v5660_v2 = vld [vmem:[%s7681_s7 + $0x4] ss:$8 sps:$4 sm:$0xff]   ;;  %v5666_v30 = vld [vmem:[%s7681_s7 + $0x20] ss:$8 sps:$4 sm:$0xff]   ;;  %v5688_v40 = vld [vmem:[%s7681_s7 + $0xd0] ss:$8 sps:$4 sm:$0xff]  }
 0x970   : > { %5209 = vmatprep.mubr.msk.bf16.mxu0 %vm897_vm0, %v6521_v7  ;;  %5215 = vmatprep.mubr.msk.bf16.mxu1 %vm897_vm0, %v5659_v55  ;;  %v5661_v7 = vld [vmem:[%s6501_s30 + $0x48] sm:$0xff]   ;;  %v5691_v1 = vld [vmem:[%s7681_s7 + $0xf4] ss:$8 sps:$4 sm:$0xff]   ;;  %v5692_v55 = vld [vmem:[%s7681_s7 + $0xf0] ss:$8 sps:$4 sm:$0xff]   ;;  %s7741_s30 = sld [smem:[#allocation36_spill]] }
 0x971   : > { %v3616_v26 = vpack.c.bf16 %v3611_v53, %v3608_v22  ;;  %3843 = vmatpush1.bf16.msra.mxu0 %v6559_v18  ;;  %v5662_v18 = vld [vmem:[%s7681_s7] ss:$8 sps:$4 sm:$0xff]   ;;  %v5689_v22 = vld [vmem:[%s7681_s7 + $0xe4] ss:$8 sps:$4 sm:$0xff]  }
 0x972   : > { %4931 = vmatprep.subr.msk.bf16.mxu0 %vm1219_vm1, %v6568_v21  ;;  %v5663_v21 = vld [vmem:[%s7681_s7 + $0x14] ss:$8 sps:$4 sm:$0xff]   ;;  %v5690_v53 = vld [vmem:[%s7681_s7 + $0xe0] ss:$8 sps:$4 sm:$0xff]  }
 0x973   : > { %5213 = vmatprep.subr.bf16.mxu1 %v3616_v26 }
 0x974   : > { %5214 = vmatpush3.bf16.msra.mxu1 %v3616_v26  ;;  %v5693_v26 = vld [vmem:[%s7685_s11 + $0x40] sm:$0xff]  }
 0x975   : > { %4130 = vmatprep.subr.bf16.mxu1 %v5660_v2 }
 0x976   : > { %s7645_s18 = scalar_lea.vmem %s7741_s30, %s4941_s0 }
 0x977   : > { %5210 = vmatmul.mubr.msk.bf16.gmra.mrb[104].mxu0 %vm897_vm0, %v6539_v13  ;;  %5216 = vmatmul.mubr.msk.bf16.vlgmr.msra.gmra.mrb[96].mxu1 %vm897_vm0, %v5661_v7  ;;  %v5664_v13 = vld [vmem:[%s7681_s7 + $0x10] ss:$8 sps:$4 sm:$0xff]  }
 0x978   : > { %5219 = vmatprep.mubr.msk.bf16.mxu1 %vm897_vm0, %v6534_v11  ;;  %3874 = vmatprep.mubr.bf16.mxu0 %v7738_v16  ;;  %v5665_v11 = vld [vmem:[%s7681_s7 + $0x24] ss:$8 sps:$4 sm:$0xff]  }
 0x979   : > { %4131 = vmatpush1.bf16.msra.mxu1 %v5662_v18 }
 0x97a   : > { %4132 = vmatprep.subr.bf16.mxu1 %v5663_v21 }
 0x97d   : > { %4133 = vmatpush1.bf16.msra.mxu1 %v5664_v13 }
 0x97e   : > { %4134 = vmatprep.subr.bf16.mxu1 %v5665_v11 }
 0x97f   : > { %5220 = vmatmul.mubr.msk.bf16.gmra.mrb[100].mxu1 %vm897_vm0, %v6545_v14  ;;  %v5670_v14 = vld [vmem:[%s7681_s7 + $0x40] ss:$8 sps:$4 sm:$0xff]  }
 0x981   : > { %4135 = vmatpush1.bf16.msra.mxu1 %v5666_v30 }
 0x982   : > { %4136 = vmatprep.subr.bf16.mxu1 %v5667_v49 }
 0x985   : > { %4137 = vmatpush1.bf16.msra.mxu1 %v5668_v28 }
 0x986   : > { %4138 = vmatprep.subr.bf16.mxu1 %v5669_v29 }
 0x989   : > { %4139 = vmatpush1.bf16.msra.mxu1 %v5670_v14 }
 0x98a   : > { %4140 = vmatprep.subr.bf16.mxu1 %v5671_v31 }
 0x98d   : > { %4141 = vmatpush1.bf16.msra.mxu1 %v5672_v27 }
 0x98e   : > { %4142 = vmatprep.subr.bf16.mxu1 %v5673_v35 }
 0x991   : > { %4143 = vmatpush1.bf16.msra.mxu1 %v5674_v32 }
 0x992   : > { %4144 = vmatprep.subr.bf16.mxu1 %v5675_v33 }
 0x995   : > { %4145 = vmatpush1.bf16.msra.mxu1 %v5676_v34 }
 0x996   : > { %4146 = vmatprep.subr.bf16.mxu1 %v5677_v38 }
 0x999   : > { %4147 = vmatpush1.bf16.msra.mxu1 %v5678_v19 }
 0x99a   : > { %4148 = vmatprep.subr.bf16.mxu1 %v5679_v37 }
 0x99d   : > { %4149 = vmatpush1.bf16.msra.mxu1 %v5680_v36  ;;  %v5694_v36 = vld [vmem:[%s7683_s9 + $0x4] ss:$8 sps:$4 sm:$0xff]  }
 0x99e   : > { %4150 = vmatprep.subr.bf16.mxu1 %v5681_v41 }
 0x9a1   : > { %4151 = vmatpush1.bf16.msra.mxu1 %v5682_v15 }
 0x9a2   : > { %4152 = vmatprep.subr.bf16.mxu1 %v5683_v39 }
 0x9a5   : > { %4153 = vmatpush1.bf16.msra.mxu1 %v5684_v48 }
 0x9a6   : > { %4154 = vmatprep.subr.bf16.mxu1 %v5685_v47 }
 0x9a9   : > { %4155 = vmatpush1.bf16.msra.mxu1 %v5686_v45 }
 0x9aa   : > { %4156 = vmatprep.subr.bf16.mxu1 %v5687_v17 }
 0x9ad   : > { %4157 = vmatpush1.bf16.msra.mxu1 %v5688_v40 }
 0x9ae   : > { %4158 = vmatprep.subr.bf16.mxu1 %v5689_v22 }
 0x9b1   : > { %4159 = vmatpush1.bf16.msra.mxu1 %v5690_v53 }
 0x9b2   : > { %4160 = vmatprep.subr.bf16.mxu1 %v5691_v1 }
 0x9b5   : > { %4161 = vmatpush1.bf16.msra.mxu1 %v5692_v55 }
 0x9b6   : > { %5078 = vmatprep.subr.bf16.mxu1 %v5693_v26 }
 0xa3a   : > { %v5197_v2 = vpop.f32.mrb[88].mxu1 }
 0xa3b   : > { %v3651_v7 = vpop.f32.mrb[89].mxu1 }
 0xa3c   : > { %v5198_v18 = vpop.f32.mrb[90].mxu1 }
 0xa3d   : > { %v3813_v21 = vpack.c.bf16 %v5198_v18, %v5197_v2  ;;  %v3654_v13 = vpop.f32.mrb[91].mxu1  ;;  %v5695_v18 = vld [vmem:[%s7683_s9] ss:$8 sps:$4 sm:$0xff]  }
 0xa3e   : > { %v3812_v11 = vpack.c.bf16 %v3654_v13, %v3651_v7  ;;  %v5696_v13 = vld [vmem:[%s7683_s9 + $0x14] ss:$8 sps:$4 sm:$0xff]  }
 0xa42   : > { %v5201_v30 = vpop.f32.mrb[92].mxu1  ;;  %v7355_v49 = vpop.f32.mrb[100].mxu0 }
 0xa43   : > { %v3667_v28 = vpop.f32.mrb[93].mxu1  ;;  %v7357_v29 = vpop.f32.mrb[101].mxu0 }
 0xa44   : > { %v5202_v14 = vpop.f32.mrb[94].mxu1  ;;  %v7359_v31 = vpop.f32.mrb[102].mxu0 }
 0xa45   : > { %v3815_v27 = vpack.c.bf16 %v5202_v14, %v5201_v30  ;;  %v3670_v35 = vpop.f32.mrb[95].mxu1  ;;  %v3817_v32 = vpack.c.bf16 %v7359_v31, %v7355_v49  ;;  %v3719_v33 = vpop.f32.mrb[103].mxu0  ;;  %v5697_v30 = vld [vmem:[%s7683_s9 + $0x10] ss:$8 sps:$4 sm:$0xff]   ;;  %v5710_v49 = vld [vmem:[%s7683_s9 + $0x84] ss:$8 sps:$4 sm:$0xff]  }
 0xa46   : > { %v3814_v34 = vpack.c.bf16 %v3670_v35, %v3667_v28  ;;  %v3816_v38 = vpack.c.bf16 %v3719_v33, %v7357_v29  ;;  %v5699_v28 = vld [vmem:[%s7683_s9 + $0x20] ss:$8 sps:$4 sm:$0xff]   ;;  %v5700_v29 = vld [vmem:[%s7683_s9 + $0x34] ss:$8 sps:$4 sm:$0xff]   ;;  %v5701_v14 = vld [vmem:[%s7683_s9 + $0x30] ss:$8 sps:$4 sm:$0xff]  }
 0xa47   : > { %v5704_v35 = vld [vmem:[%s7683_s9 + $0x54] ss:$8 sps:$4 sm:$0xff]   ;;  %v5705_v33 = vld [vmem:[%s7683_s9 + $0x50] ss:$8 sps:$4 sm:$0xff]   ;;  %v5711_v31 = vld [vmem:[%s7683_s9 + $0x80] ss:$8 sps:$4 sm:$0xff]  }
 0xa48   : > { %4925 = vmatmul.mubr.msk.bf16.vlgmr.msra.gmra.mrb[108].mxu0 %vm1200_vm2, %v3814_v34  ;;  %v5706_v34 = vld [vmem:[%s7683_s9 + $0x64] ss:$8 sps:$4 sm:$0xff]  }
 0xa49   : > { %3884 = vmatprep.mubr.bf16.mxu0 %v7738_v16  ;;  %3954 = vmatpush1.bf16.msra.mxu0 %v6657_v62 }
 0xa4a   : > { %v5211_v19 = vpop.f32.mrb[104].mxu0  ;;  %v7367_v37 = vpop.f32.mrb[96].mxu1  ;;  %4259 = vmatprep.subr.bf16.mxu0 %v5694_v36  ;;  %v5709_v36 = vld [vmem:[%s7683_s9 + $0x70] ss:$8 sps:$4 sm:$0xff]  }
 0xa4b   : > { %v3732_v41 = vpop.f32.mrb[105].mxu0  ;;  %v7372_v15 = vpop.f32.mrb[97].mxu1 }
 0xa4c   : > { %v5212_v39 = vpop.f32.mrb[106].mxu0  ;;  %v7374_v48 = vpop.f32.mrb[98].mxu1 }
 0xa4d   : > { %v3819_v47 = vpack.c.bf16 %v5212_v39, %v5211_v19  ;;  %v3735_v45 = vpop.f32.mrb[107].mxu0  ;;  %v3821_v17 = vpack.c.bf16 %v7374_v48, %v7367_v37  ;;  %v3784_v62 = vpop.f32.mrb[99].mxu1  ;;  %v5708_v19 = vld [vmem:[%s7683_s9 + $0x74] ss:$8 sps:$4 sm:$0xff]   ;;  %v5718_v37 = vld [vmem:[%s7683_s9 + $0xc4] ss:$8 sps:$4 sm:$0xff]  }
 0xa4e   : > { %v3818_v40 = vpack.c.bf16 %v3735_v45, %v3732_v41  ;;  %v3820_v22 = vpack.c.bf16 %v3784_v62, %v7372_v15  ;;  %v5713_v41 = vld [vmem:[%s7683_s9 + $0x90] ss:$8 sps:$4 sm:$0xff]   ;;  %v5714_v15 = vld [vmem:[%s7683_s9 + $0xa4] ss:$8 sps:$4 sm:$0xff]   ;;  %v5716_v39 = vld [vmem:[%s7683_s9 + $0xb4] ss:$8 sps:$4 sm:$0xff]  }
 0xa4f   : > { %v5719_v48 = vld [vmem:[%s7683_s9 + $0xc0] ss:$8 sps:$4 sm:$0xff]   ;;  %v5720_v45 = vld [vmem:[%s7683_s9 + $0xd4] ss:$8 sps:$4 sm:$0xff]   ;;  %v5722_v62 = vld [vmem:[%s7683_s9 + $0xe4] ss:$8 sps:$4 sm:$0xff]  }
 0xa50   : > { %4926 = vmatmul.mubr.msk.bf16.gmra.mrb[112].mxu0 %vm1200_vm2, %v3815_v27  ;;  %v5703_v27 = vld [vmem:[%s7683_s9 + $0x40] ss:$8 sps:$4 sm:$0xff]  }
 0xa51   : > { %3894 = vmatprep.mubr.bf16.mxu0 %v7738_v16 }
 0xa52   : > { %v5221_v53 = vpop.f32.mrb[100].mxu1 }
 0xa53   : > { %v3797_v1 = vpop.f32.mrb[101].mxu1 }
 0xa54   : > { %v5222_v55 = vpop.f32.mrb[102].mxu1 }
 0xa55   : > { %v3823_v26 = vpack.c.bf16 %v5222_v55, %v5221_v53  ;;  %v3800_v2 = vpop.f32.mrb[103].mxu1  ;;  %v5725_v53 = vld [vmem:[%s7683_s9 + $0xf0] ss:$8 sps:$4 sm:$0xff]  }
 0xa56   : > { %v3822_v7 = vpack.c.bf16 %v3800_v2, %v3797_v1 }
 0xa58   : > { %4927 = vmatmul.mubr.msk.bf16.gmra.mrb[116].mxu0 %vm1200_vm2, %v3818_v40  ;;  %v5723_v40 = vld [vmem:[%s7683_s9 + $0xe0] ss:$8 sps:$4 sm:$0xff]  }
 0xa59   : > { %3904 = vmatprep.mubr.bf16.mxu0 %v7738_v16 }
 0xa60   : > { %4928 = vmatmul.mubr.msk.bf16.gmra.mrb[120].mxu0 %vm1200_vm2, %v3819_v47  ;;  %v5717_v47 = vld [vmem:[%s7683_s9 + $0xb0] ss:$8 sps:$4 sm:$0xff]  }
 0xa61   : > { %3914 = vmatprep.mubr.bf16.mxu0 %v7738_v16 }
 0xa68   : > { %4929 = vmatmul.mubr.msk.bf16.gmra.mrb[124].mxu0 %vm1200_vm2, %v3822_v7 }
 0xa69   : > { %3924 = vmatprep.mubr.bf16.mxu0 %v7738_v16 }
 0xa70   : > { %4930 = vmatmul.mubr.msk.bf16.gmra.mrb[128].mxu0 %vm1200_vm2, %v3823_v26 }
 0xa71   : > { %3985 = vmatprep.mubr.bf16.mxu0 %v7738_v16 }
 0xa78   : > { %4932 = vmatmul.mubr.msk.bf16.vlgmr.msra.gmra.mrb[108].mxu0 %vm1200_vm2, %v3812_v11  ;;  %v5698_v11 = vld [vmem:[%s7683_s9 + $0x24] ss:$8 sps:$4 sm:$0xff]  }
 0xa79   : > { %3995 = vmatprep.mubr.bf16.mxu0 %v7738_v16  ;;  %4260 = vmatpush1.bf16.msra.mxu0 %v5695_v18 }
 0xa7a   : > { %4261 = vmatprep.subr.bf16.mxu0 %v5696_v13 }
 0xa7d   : > { %4262 = vmatpush1.bf16.msra.mxu0 %v5697_v30 }
 0xa7e   : > { %4263 = vmatprep.subr.bf16.mxu0 %v5698_v11 }
 0xa80   : > { %4933 = vmatmul.mubr.msk.bf16.gmra.mrb[112].mxu0 %vm1200_vm2, %v3813_v21  ;;  %v5702_v21 = vld [vmem:[%s7683_s9 + $0x44] ss:$8 sps:$4 sm:$0xff]  }
 0xa81   : > { %4005 = vmatprep.mubr.bf16.mxu0 %v7738_v16  ;;  %4264 = vmatpush1.bf16.msra.mxu0 %v5699_v28 }
 0xa82   : > { %4265 = vmatprep.subr.bf16.mxu0 %v5700_v29 }
 0xa85   : > { %4266 = vmatpush1.bf16.msra.mxu0 %v5701_v14 }
 0xa86   : > { %4267 = vmatprep.subr.bf16.mxu0 %v5702_v21 }
 0xa88   : > { %4934 = vmatmul.mubr.msk.bf16.gmra.mrb[116].mxu0 %vm1200_vm2, %v3816_v38  ;;  %v5707_v38 = vld [vmem:[%s7683_s9 + $0x60] ss:$8 sps:$4 sm:$0xff]  }
 0xa89   : > { %4015 = vmatprep.mubr.bf16.mxu0 %v7738_v16  ;;  %4268 = vmatpush1.bf16.msra.mxu0 %v5703_v27 }
 0xa8a   : > { %4269 = vmatprep.subr.bf16.mxu0 %v5704_v35 }
 0xa8d   : > { %4270 = vmatpush1.bf16.msra.mxu0 %v5705_v33 }
 0xa8e   : > { %4271 = vmatprep.subr.bf16.mxu0 %v5706_v34 }
 0xa90   : > { %4935 = vmatmul.mubr.msk.bf16.gmra.mrb[120].mxu0 %vm1200_vm2, %v3817_v32  ;;  %v5712_v32 = vld [vmem:[%s7683_s9 + $0x94] ss:$8 sps:$4 sm:$0xff]  }
 0xa91   : > { %4025 = vmatprep.mubr.bf16.mxu0 %v7738_v16  ;;  %4272 = vmatpush1.bf16.msra.mxu0 %v5707_v38 }
 0xa92   : > { %4273 = vmatprep.subr.bf16.mxu0 %v5708_v19 }
 0xa95   : > { %4274 = vmatpush1.bf16.msra.mxu0 %v5709_v36 }
 0xa96   : > { %4275 = vmatprep.subr.bf16.mxu0 %v5710_v49 }
 0xa98   : > { %4936 = vmatmul.mubr.msk.bf16.gmra.mrb[124].mxu0 %vm1200_vm2, %v3820_v22  ;;  %v5724_v22 = vld [vmem:[%s7683_s9 + $0xf4] ss:$8 sps:$4 sm:$0xff]  }
 0xa99   : > { %4035 = vmatprep.mubr.bf16.mxu0 %v7738_v16  ;;  %4276 = vmatpush1.bf16.msra.mxu0 %v5711_v31  ;;  %v5715_v16 = vld [vmem:[%s7683_s9 + $0xa0] ss:$8 sps:$4 sm:$0xff]  }
 0xa9a   : > { %4277 = vmatprep.subr.bf16.mxu0 %v5712_v32 }
 0xa9d   : > { %4278 = vmatpush1.bf16.msra.mxu0 %v5713_v41 }
 0xa9e   : > { %4279 = vmatprep.subr.bf16.mxu0 %v5714_v15 }
 0xaa0   : > { %4937 = vmatmul.mubr.msk.bf16.gmra.mrb[128].mxu0 %vm1200_vm2, %v3821_v17  ;;  %v5721_v17 = vld [vmem:[%s7683_s9 + $0xd0] ss:$8 sps:$4 sm:$0xff]  }
 0xaa1   : > { %4280 = vmatpush1.bf16.msra.mxu0 %v5715_v16 }
 0xaa2   : > { %4281 = vmatprep.subr.bf16.mxu0 %v5716_v39 }
 0xaa5   : > { %4282 = vmatpush1.bf16.msra.mxu0 %v5717_v47 }
 0xaa6   : > { %4283 = vmatprep.subr.bf16.mxu0 %v5718_v37 }
 0xaa9   : > { %4284 = vmatpush1.bf16.msra.mxu0 %v5719_v48 }
 0xaaa   : > { %4285 = vmatprep.subr.bf16.mxu0 %v5720_v45 }
 0xaad   : > { %4286 = vmatpush1.bf16.msra.mxu0 %v5721_v17 }
 0xaae   : > { %4287 = vmatprep.subr.bf16.mxu0 %v5722_v62 }
 0xab1   : > { %4288 = vmatpush1.bf16.msra.mxu0 %v5723_v40 }
 0xab2   : > { %4289 = vmatprep.subr.bf16.mxu0 %v5724_v22 }
 0xab5   : > { %4290 = vmatpush1.bf16.msra.mxu0 %v5725_v53  ;;  %v5728_v53 = vld [vmem:[%s7685_s11 + $0x8] sm:$0xff]  }
 0xb4b   : > { %v3987_v1 = vpop.f32.mrb[108].mxu0 }
 0xb4c   : > { %v4046_v55 = vadd.f32 %v3987_v1, %v6698_v42  ;;  %v3989_v26 = vpop.f32.mrb[109].mxu0 }
 0xb4d   : > { %v4047_v2 = vadd.f32 %v3989_v26, %v6700_v43  ;;  %v3991_v7 = vpop.f32.mrb[110].mxu0 }
 0xb4e   : > { %v4070_v18 = vadd.f32 %v4046_v55, %v6853_v23  ;;  %v4048_v13 = vadd.f32 %v3991_v7, %v6702_v44  ;;  %v3993_v30 = vpop.f32.mrb[111].mxu0 }
 0xb4f   : > { %v4071_v11 = vadd.f32 %v4047_v2, %v6856_v25  ;;  %v4049_v28 = vadd.f32 %v3993_v30, %v6707_v46 }
 0xb50   : > { %v4072_v29 = vadd.f32 %v4048_v13, %v6853_v23  ;;  %v4094_v21 = vmax.f32 %v4070_v18, 0.0 }
 0xb51   : > { %v4073_v14 = vadd.f32 %v4049_v28, %v6856_v25  ;;  %v4095_v42 = vmax.f32 %v4071_v11, 0.0  ;;  %v5731_v11 = vld [vmem:[%s7685_s11 + $0x58] sm:$0xff]  }
 0xb52   : > { %v4096_v27 = vmax.f32 %v4072_v29, 0.0 }
 0xb53   : > { %v4097_v35 = vmax.f32 %v4073_v14, 0.0  ;;  %v3997_v33 = vpop.f32.mrb[112].mxu0 }
 0xb54   : > { %v4118_v43 = vpack.c.bf16 %v4096_v27, %v4094_v21  ;;  %v4050_v34 = vadd.f32 %v3997_v33, %v6718_v50  ;;  %v3999_v38 = vpop.f32.mrb[113].mxu0 }
 0xb55   : > { %v4051_v44 = vadd.f32 %v3999_v38, %v6720_v51  ;;  %v4001_v19 = vpop.f32.mrb[114].mxu0  ;;  %v4119_v36 = vpack.c.bf16 %v4097_v35, %v4095_v42  ;;  %v5726_v51 = vld [vmem:[%s7685_s11] sm:$0xff]  }
 0xb56   : > { %v4074_v49 = vadd.f32 %v4050_v34, %v6853_v23  ;;  %v4052_v46 = vadd.f32 %v4001_v19, %v6722_v52  ;;  %v4003_v31 = vpop.f32.mrb[115].mxu0  ;;  %v5727_v52 = vld [vmem:[%s7685_s11 + $0x48] sm:$0xff]  }
 0xb57   : > { %v4075_v32 = vadd.f32 %v4051_v44, %v6856_v25  ;;  %v4053_v41 = vadd.f32 %v4003_v31, %v6727_v54  ;;  %4162 = vmatprep.mubr.bf16.mxu1 %v4119_v36 }
 0xb58   : > { %v4076_v15 = vadd.f32 %v4052_v46, %v6853_v23  ;;  %4163 = vmatmul.mubr.bf16.vlgmr.msra.gmra.mrb[104].mxu1 %v4118_v43  ;;  %v4098_v16 = vmax.f32 %v4074_v49, 0.0  ;;  %v5732_v43 = vld [vmem:[%s7685_s11 + $0x18] sm:$0xff]  }
 0xb59   : > { %v4077_v50 = vadd.f32 %v4053_v41, %v6856_v25  ;;  %5079 = vmatpush3.bf16.msra.mxu1 %v5726_v51  ;;  %v4099_v47 = vmax.f32 %v4075_v32, 0.0  ;;  %v5735_v32 = vld [vmem:[%s7685_s11 + $0x68] sm:$0xff]  }
 0xb5a   : > { %v4100_v39 = vmax.f32 %v4076_v15, 0.0  ;;  %5080 = vmatprep.subr.bf16.mxu1 %v5727_v52 }
 0xb5b   : > { %v4101_v54 = vmax.f32 %v4077_v50, 0.0  ;;  %v4007_v37 = vpop.f32.mrb[116].mxu0 }
 0xb5c   : > { %v4054_v48 = vadd.f32 %v4007_v37, %v6732_v56  ;;  %v4009_v45 = vpop.f32.mrb[117].mxu0  ;;  %v4120_v17 = vpack.c.bf16 %v4100_v39, %v4098_v16  ;;  %v5729_v56 = vld [vmem:[%s7685_s11 + $0x50] sm:$0xff]  }
 0xb5d   : > { %v4055_v62 = vadd.f32 %v4009_v45, %v6734_v57  ;;  %v4011_v40 = vpop.f32.mrb[118].mxu0  ;;  %v4121_v22 = vpack.c.bf16 %v4101_v54, %v4099_v47  ;;  %5081 = vmatpush3.bf16.msra.mxu1 %v5728_v53  ;;  %v5736_v54 = vld [vmem:[%s7685_s11 + $0x28] sm:$0xff]  }
 0xb5e   : > { %v4078_v1 = vadd.f32 %v4054_v48, %v6853_v23  ;;  %v4056_v55 = vadd.f32 %v4011_v40, %v6736_v58  ;;  %v4013_v26 = vpop.f32.mrb[119].mxu0  ;;  %5082 = vmatprep.subr.bf16.mxu1 %v5729_v56  ;;  %v5730_v58 = vld [vmem:[%s7685_s11 + $0x10] sm:$0xff]  }
 0xb5f   : > { %v4079_v2 = vadd.f32 %v4055_v62, %v6856_v25  ;;  %v4057_v57 = vadd.f32 %v4013_v26, %v6738_v59  ;;  %4172 = vmatprep.mubr.bf16.mxu1 %v4121_v22 }
 0xb60   : > { %v4080_v7 = vadd.f32 %v4056_v55, %v6853_v23  ;;  %4173 = vmatmul.mubr.bf16.gmra.mrb[108].mxu1 %v4120_v17  ;;  %v4102_v13 = vmax.f32 %v4078_v1, 0.0  ;;  %v5739_v1 = vld [vmem:[%s7685_s11 + $0x78] sm:$0xff]  }
 0xb61   : > { %v4081_v18 = vadd.f32 %v4057_v57, %v6856_v25  ;;  %5083 = vmatpush3.bf16.msra.mxu1 %v5730_v58  ;;  %v4103_v28 = vmax.f32 %v4079_v2, 0.0 }
 0xb62   : > { %v4104_v30 = vmax.f32 %v4080_v7, 0.0  ;;  %5084 = vmatprep.subr.bf16.mxu1 %v5731_v11 }
 0xb63   : > { %v4105_v59 = vmax.f32 %v4081_v18, 0.0  ;;  %v4017_v29 = vpop.f32.mrb[120].mxu0 }
 0xb64   : > { %v4058_v14 = vadd.f32 %v4017_v29, %v6740_v60  ;;  %v4019_v21 = vpop.f32.mrb[121].mxu0  ;;  %v4122_v27 = vpack.c.bf16 %v4104_v30, %v4102_v13  ;;  %v5733_v60 = vld [vmem:[%s7685_s11 + $0x60] sm:$0xff]   ;;  %v5740_v13 = vld [vmem:[%s7685_s11 + $0x38] sm:$0xff]  }
 0xb65   : > { %v4059_v42 = vadd.f32 %v4019_v21, %v6742_v61  ;;  %v4021_v35 = vpop.f32.mrb[122].mxu0  ;;  %v4123_v33 = vpack.c.bf16 %v4105_v59, %v4103_v28  ;;  %5085 = vmatpush3.bf16.msra.mxu1 %v5732_v43 }
 0xb66   : > { %v4082_v34 = vadd.f32 %v4058_v14, %v6853_v23  ;;  %v4060_v38 = vadd.f32 %v4021_v35, %v6744_v63  ;;  %v4023_v44 = vpop.f32.mrb[123].mxu0  ;;  %5086 = vmatprep.subr.bf16.mxu1 %v5733_v60  ;;  %v5734_v63 = vld [vmem:[%s7685_s11 + $0x20] sm:$0xff]  }
 0xb67   : > { %v4083_v19 = vadd.f32 %v4059_v42, %v6856_v25  ;;  %v4061_v61 = vadd.f32 %v4023_v44, %v6746_v0  ;;  %4182 = vmatprep.mubr.bf16.mxu1 %v4123_v33 }
 0xb68   : > { %v4084_v36 = vadd.f32 %v4060_v38, %v6853_v23  ;;  %4183 = vmatmul.mubr.bf16.gmra.mrb[112].mxu1 %v4122_v27  ;;  %v4106_v46 = vmax.f32 %v4082_v34, 0.0 }
 0xb69   : > { %v4085_v49 = vadd.f32 %v4061_v61, %v6856_v25  ;;  %5087 = vmatpush3.bf16.msra.mxu1 %v5734_v63  ;;  %v4107_v41 = vmax.f32 %v4083_v19, 0.0 }
 0xb6a   : > { %v4108_v31 = vmax.f32 %v4084_v36, 0.0  ;;  %5088 = vmatprep.subr.bf16.mxu1 %v5735_v32 }
 0xb6b   : > { %v4109_v0 = vmax.f32 %v4085_v49, 0.0  ;;  %v4027_v15 = vpop.f32.mrb[124].mxu0 }
 0xb6c   : > { %v4062_v50 = vadd.f32 %v4027_v15, %v6748_v3  ;;  %v4029_v51 = vpop.f32.mrb[125].mxu0  ;;  %v4124_v16 = vpack.c.bf16 %v4108_v31, %v4106_v46  ;;  %v5737_v3 = vld [vmem:[%s7685_s11 + $0x70] sm:$0xff]  }
 0xb6d   : > { %v4063_v39 = vadd.f32 %v4029_v51, %v6750_v4  ;;  %v4031_v52 = vpop.f32.mrb[126].mxu0  ;;  %v4125_v47 = vpack.c.bf16 %v4109_v0, %v4107_v41  ;;  %5089 = vmatpush3.bf16.msra.mxu1 %v5736_v54 }
 0xb6e   : > { %v4086_v37 = vadd.f32 %v4062_v50, %v6853_v23  ;;  %v4064_v48 = vadd.f32 %v4031_v52, %v6752_v5  ;;  %v4033_v45 = vpop.f32.mrb[127].mxu0  ;;  %5090 = vmatprep.subr.bf16.mxu1 %v5737_v3  ;;  %v5738_v5 = vld [vmem:[%s7685_s11 + $0x30] sm:$0xff]  }
 0xb6f   : > { %v4087_v17 = vadd.f32 %v4063_v39, %v6856_v25  ;;  %v4065_v4 = vadd.f32 %v4033_v45, %v6754_v6  ;;  %4192 = vmatprep.mubr.bf16.mxu1 %v4125_v47 }
 0xb70   : > { %v4088_v62 = vadd.f32 %v4064_v48, %v6853_v23  ;;  %4193 = vmatmul.mubr.bf16.gmra.mrb[116].mxu1 %v4124_v16  ;;  %v4110_v22 = vmax.f32 %v4086_v37, 0.0 }
 0xb71   : > { %v4089_v40 = vadd.f32 %v4065_v4, %v6856_v25  ;;  %5091 = vmatpush3.bf16.msra.mxu1 %v5738_v5  ;;  %v4111_v55 = vmax.f32 %v4087_v17, 0.0 }
 0xb72   : > { %v4112_v53 = vmax.f32 %v4088_v62, 0.0  ;;  %5092 = vmatprep.subr.bf16.mxu1 %v5739_v1 }
 0xb73   : > { %v4113_v6 = vmax.f32 %v4089_v40, 0.0  ;;  %v4037_v26 = vpop.f32.mrb[128].mxu0 }
 0xb74   : > { %v4066_v56 = vadd.f32 %v4037_v26, %v6756_v8  ;;  %v4039_v2 = vpop.f32.mrb[129].mxu0  ;;  %v4126_v57 = vpack.c.bf16 %v4112_v53, %v4110_v22 }
 0xb75   : > { %v4067_v7 = vadd.f32 %v4039_v2, %v6758_v9  ;;  %v4041_v18 = vpop.f32.mrb[130].mxu0  ;;  %v4127_v58 = vpack.c.bf16 %v4113_v6, %v4111_v55  ;;  %5093 = vmatpush3.bf16.msra.mxu1 %v5740_v13 }
 0xb76   : > { %v4090_v30 = vadd.f32 %v4066_v56, %v6853_v23  ;;  %v4068_v11 = vadd.f32 %v4041_v18, %v6760_v10  ;;  %v4043_v28 = vpop.f32.mrb[131].mxu0 }
 0xb77   : > { %v4091_v59 = vadd.f32 %v4067_v7, %v6856_v25  ;;  %v4069_v8 = vadd.f32 %v4043_v28, %v6762_v12  ;;  %4202 = vmatprep.mubr.bf16.mxu1 %v4127_v58 }
 0xb78   : > { %v4092_v29 = vadd.f32 %v4068_v11, %v6853_v23  ;;  %4203 = vmatmul.mubr.bf16.gmra.mrb[120].mxu1 %v4126_v57  ;;  %v4114_v14 = vmax.f32 %v4090_v30, 0.0 }
 0xb79   : > { %v4093_v9 = vadd.f32 %v4069_v8, %v6856_v25  ;;  %v4115_v27 = vmax.f32 %v4091_v59, 0.0 }
 0xb7a   : > { %v4116_v21 = vmax.f32 %v4092_v29, 0.0 }
 0xb7b   : > { %v4117_v42 = vmax.f32 %v4093_v9, 0.0 }
 0xb7c   : > { %v4128_v35 = vpack.c.bf16 %v4116_v21, %v4114_v14 }
 0xb7d   : > { %v4129_v33 = vpack.c.bf16 %v4117_v42, %v4115_v27 }
 0xb7f   : > { %4212 = vmatprep.mubr.bf16.mxu1 %v4129_v33 }
 0xb80   : > { %4213 = vmatmul.mubr.bf16.gmra.mrb[124].mxu1 %v4128_v35 }
 0xc2b   : > { %v4164_v10 = vpop.f32.mrb[104].mxu1 }
 0xc2c   : > { %v4165_v43 = vadd.f32 %v4164_v10, %v6952_v20  ;;  %v4166_v34 = vpop.f32.mrb[105].mxu1 }
 0xc2d   : > { %v4167_v12 = vadd.f32 %v4166_v34, %v6955_v24  ;;  %v4168_v38 = vpop.f32.mrb[106].mxu1 }
 0xc2e   : > { %v4169_v23 = vadd.f32 %v4168_v38, %v6952_v20  ;;  %v4170_v44 = vpop.f32.mrb[107].mxu1  ;;  %v4223_v60 = vmax.f32 %v4165_v43, 0.0 }
 0xc2f   : > { %v4171_v25 = vadd.f32 %v4170_v44, %v6955_v24  ;;  %v4224_v61 = vmax.f32 %v4167_v12, 0.0 }
 0xc30   : > { %v4225_v19 = vmax.f32 %v4169_v23, 0.0 }
 0xc31   : > { %v4226_v36 = vmax.f32 %v4171_v25, 0.0 }
 0xc32   : > { %v4247_v49 = vpack.c.bf16 %v4225_v19, %v4223_v60 }
 0xc33   : > { %v4248_v63 = vpack.c.bf16 %v4226_v36, %v4224_v61  ;;  %v4174_v46 = vpop.f32.mrb[108].mxu1 }
 0xc34   : > { %v4175_v31 = vadd.f32 %v4174_v46, %v6952_v20  ;;  %v4176_v32 = vpop.f32.mrb[109].mxu1 }
 0xc35   : > { %v4177_v41 = vadd.f32 %v4176_v32, %v6955_v24  ;;  %v4178_v0 = vpop.f32.mrb[110].mxu1  ;;  %4291 = vmatprep.mubr.bf16.mxu0 %v4248_v63 }
 0xc36   : > { %v4179_v15 = vadd.f32 %v4178_v0, %v6952_v20  ;;  %v4180_v50 = vpop.f32.mrb[111].mxu1  ;;  %4292 = vmatmul.mubr.bf16.vlgmr.msra.gmra.mrb[132].mxu0 %v4247_v49  ;;  %v4227_v16 = vmax.f32 %v4175_v31, 0.0 }
 0xc37   : > { %v4181_v51 = vadd.f32 %v4180_v50, %v6955_v24  ;;  %v4228_v52 = vmax.f32 %v4177_v41, 0.0 }
 0xc38   : > { %v4229_v39 = vmax.f32 %v4179_v15, 0.0 }
 0xc39   : > { %v4230_v47 = vmax.f32 %v4181_v51, 0.0 }
 0xc3a   : > { %v4249_v54 = vpack.c.bf16 %v4229_v39, %v4227_v16  ;;  %v7739_v39 = vld [vmem:[#allocation25_spill] sm:$0xff] }
 0xc3b   : > { %v4250_v37 = vpack.c.bf16 %v4230_v47, %v4228_v52  ;;  %v4184_v48 = vpop.f32.mrb[112].mxu1 }
 0xc3c   : > { %v4185_v45 = vadd.f32 %v4184_v48, %v6952_v20  ;;  %v4186_v3 = vpop.f32.mrb[113].mxu1 }
 0xc3d   : > { %v4187_v17 = vadd.f32 %v4186_v3, %v6955_v24  ;;  %v4188_v4 = vpop.f32.mrb[114].mxu1  ;;  %4301 = vmatprep.mubr.bf16.mxu0 %v4250_v37 }
 0xc3e   : > { %v4189_v62 = vadd.f32 %v4188_v4, %v6952_v20  ;;  %v4190_v40 = vpop.f32.mrb[115].mxu1  ;;  %4302 = vmatmul.mubr.bf16.gmra.mrb[136].mxu0 %v4249_v54  ;;  %v4231_v22 = vmax.f32 %v4185_v45, 0.0  ;;  %v7740_v54 = vld [vmem:[#allocation26_spill] sm:$0xff] }
 0xc3f   : > { %v4191_v5 = vadd.f32 %v4190_v40, %v6955_v24  ;;  %v4232_v1 = vmax.f32 %v4187_v17, 0.0 }
 0xc40   : > { %v4233_v53 = vmax.f32 %v4189_v62, 0.0 }
 0xc41   : > { %v4234_v55 = vmax.f32 %v4191_v5, 0.0 }
 0xc42   : > { %v4251_v6 = vpack.c.bf16 %v4233_v53, %v4231_v22 }
 0xc43   : > { %v4252_v26 = vpack.c.bf16 %v4234_v55, %v4232_v1  ;;  %v4194_v56 = vpop.f32.mrb[116].mxu1 }
 0xc44   : > { %v4195_v2 = vadd.f32 %v4194_v56, %v6952_v20  ;;  %v4196_v57 = vpop.f32.mrb[117].mxu1 }
 0xc45   : > { %v4197_v7 = vadd.f32 %v4196_v57, %v6955_v24  ;;  %v4198_v18 = vpop.f32.mrb[118].mxu1  ;;  %4311 = vmatprep.mubr.bf16.mxu0 %v4252_v26 }
 0xc46   : > { %v4199_v58 = vadd.f32 %v4198_v18, %v6952_v20  ;;  %v4200_v13 = vpop.f32.mrb[119].mxu1  ;;  %4312 = vmatmul.mubr.bf16.gmra.mrb[140].mxu0 %v4251_v6  ;;  %v4235_v11 = vmax.f32 %v4195_v2, 0.0 }
 0xc47   : > { %v4201_v30 = vadd.f32 %v4200_v13, %v6955_v24  ;;  %v4236_v59 = vmax.f32 %v4197_v7, 0.0 }
 0xc48   : > { %v4237_v28 = vmax.f32 %v4199_v58, 0.0 }
 0xc49   : > { %v4238_v8 = vmax.f32 %v4201_v30, 0.0 }
 0xc4a   : > { %v4253_v29 = vpack.c.bf16 %v4237_v28, %v4235_v11 }
 0xc4b   : > { %v4254_v9 = vpack.c.bf16 %v4238_v8, %v4236_v59  ;;  %v4204_v14 = vpop.f32.mrb[120].mxu1 }
 0xc4c   : > { %v4205_v21 = vadd.f32 %v4204_v14, %v6952_v20  ;;  %v4206_v27 = vpop.f32.mrb[121].mxu1 }
 0xc4d   : > { %v4207_v42 = vadd.f32 %v4206_v27, %v6955_v24  ;;  %v4208_v35 = vpop.f32.mrb[122].mxu1  ;;  %4321 = vmatprep.mubr.bf16.mxu0 %v4254_v9 }
 0xc4e   : > { %v4209_v33 = vadd.f32 %v4208_v35, %v6952_v20  ;;  %v4210_v10 = vpop.f32.mrb[123].mxu1  ;;  %4322 = vmatmul.mubr.bf16.gmra.mrb[144].mxu0 %v4253_v29  ;;  %v4239_v34 = vmax.f32 %v4205_v21, 0.0 }
 0xc4f   : > { %v4211_v43 = vadd.f32 %v4210_v10, %v6955_v24  ;;  %v4240_v38 = vmax.f32 %v4207_v42, 0.0 }
 0xc50   : > { %v4241_v12 = vmax.f32 %v4209_v33, 0.0 }
 0xc51   : > { %v4242_v23 = vmax.f32 %v4211_v43, 0.0 }
 0xc52   : > { %v4255_v44 = vpack.c.bf16 %v4241_v12, %v4239_v34 }
 0xc53   : > { %v4256_v25 = vpack.c.bf16 %v4242_v23, %v4240_v38  ;;  %v4214_v60 = vpop.f32.mrb[124].mxu1 }
 0xc54   : > { %v4215_v19 = vadd.f32 %v4214_v60, %v6952_v20  ;;  %v4216_v61 = vpop.f32.mrb[125].mxu1 }
 0xc55   : > { %v4217_v36 = vadd.f32 %v4216_v61, %v6955_v24  ;;  %v4218_v49 = vpop.f32.mrb[126].mxu1  ;;  %4331 = vmatprep.mubr.bf16.mxu0 %v4256_v25 }
 0xc56   : > { %v4219_v63 = vadd.f32 %v4218_v49, %v6952_v20  ;;  %v4220_v46 = vpop.f32.mrb[127].mxu1  ;;  %4332 = vmatmul.mubr.bf16.gmra.mrb[148].mxu0 %v4255_v44  ;;  %v4243_v32 = vmax.f32 %v4215_v19, 0.0 }
 0xc57   : > { %v4221_v31 = vadd.f32 %v4220_v46, %v6955_v24  ;;  %v4244_v0 = vmax.f32 %v4217_v36, 0.0 }
 0xc58   : > { %v4245_v41 = vmax.f32 %v4219_v63, 0.0 }
 0xc59   : > { %v4246_v15 = vmax.f32 %v4221_v31, 0.0 }
 0xc5a   : > { %v4257_v50 = vpack.c.bf16 %v4245_v41, %v4243_v32 }
 0xc5b   : > { %v4258_v51 = vpack.c.bf16 %v4246_v15, %v4244_v0 }
 0xc5d   : > { %4341 = vmatprep.mubr.bf16.mxu0 %v4258_v51 }
 0xc5e   : > { %4342 = vmatmul.mubr.bf16.gmra.mrb[152].mxu0 %v4257_v50 }
 0xd09   : > { %v4293_v16 = vpop.f32.mrb[132].mxu0 }
 0xd0a   : > { %v4294_v52 = vadd.f32 %v4293_v16, %v7739_v39  ;;  %v4295_v47 = vpop.f32.mrb[133].mxu0 }
 0xd0b   : > { %v4296_v37 = vadd.f32 %v4295_v47, %v7740_v54  ;;  %v4297_v48 = vpop.f32.mrb[134].mxu0 }
 0xd0c   : > { %v4298_v20 = vadd.f32 %v4297_v48, %v7739_v39  ;;  %v4299_v45 = vpop.f32.mrb[135].mxu0  ;;  %v4352_v3 = vmax.f32 %v4294_v52, 0.0 }
 0xd0d   : > { %v4300_v24 = vadd.f32 %v4299_v45, %v7740_v54  ;;  %v4353_v4 = vmax.f32 %v4296_v37, 0.0 }
 0xd0e   : > { %v4354_v17 = vmax.f32 %v4298_v20, 0.0 }
 0xd0f   : > { %v4355_v62 = vmax.f32 %v4300_v24, 0.0 }
 0xd10   : > { %v4376_v40 = vpack.c.bf16 %v4354_v17, %v4352_v3 }
 0xd11   : > { %v4377_v5 = vpack.c.bf16 %v4355_v62, %v4353_v4  ;;  %v4303_v22 = vpop.f32.mrb[136].mxu0 }
 0xd12   : > { %v4304_v53 = vadd.f32 %v4303_v22, %v7739_v39  ;;  %v4305_v1 = vpop.f32.mrb[137].mxu0 }
 0xd13   : > { %v4306_v55 = vadd.f32 %v4305_v1, %v7740_v54  ;;  %v4307_v6 = vpop.f32.mrb[138].mxu0  ;;  %4420 = vmatprep.mubr.bf16.mxu1 %v4377_v5 }
 0xd14   : > { %v4308_v26 = vadd.f32 %v4307_v6, %v7739_v39  ;;  %v4309_v56 = vpop.f32.mrb[139].mxu0  ;;  %4421 = vmatmul.mubr.bf16.vlgmr.msra.gmra.mrb[128].mxu1 %v4376_v40  ;;  %v4356_v57 = vmax.f32 %v4304_v53, 0.0 }
 0xd15   : > { %v4310_v2 = vadd.f32 %v4309_v56, %v7740_v54  ;;  %v4357_v18 = vmax.f32 %v4306_v55, 0.0 }
 0xd16   : > { %v4358_v7 = vmax.f32 %v4308_v26, 0.0 }
 0xd17   : > { %v4359_v58 = vmax.f32 %v4310_v2, 0.0 }
 0xd18   : > { %v4378_v13 = vpack.c.bf16 %v4358_v7, %v4356_v57 }
 0xd19   : > { %v4379_v30 = vpack.c.bf16 %v4359_v58, %v4357_v18  ;;  %v4313_v11 = vpop.f32.mrb[140].mxu0 }
 0xd1a   : > { %v4314_v28 = vadd.f32 %v4313_v11, %v7739_v39  ;;  %v4315_v59 = vpop.f32.mrb[141].mxu0 }
 0xd1b   : > { %v4316_v8 = vadd.f32 %v4315_v59, %v7740_v54  ;;  %v4317_v29 = vpop.f32.mrb[142].mxu0  ;;  %4428 = vmatprep.mubr.bf16.mxu1 %v4379_v30 }
 0xd1c   : > { %v4318_v9 = vadd.f32 %v4317_v29, %v7739_v39  ;;  %v4319_v14 = vpop.f32.mrb[143].mxu0  ;;  %4429 = vmatmul.mubr.bf16.gmra.mrb[132].mxu1 %v4378_v13  ;;  %v4360_v27 = vmax.f32 %v4314_v28, 0.0 }
 0xd1d   : > { %v4320_v21 = vadd.f32 %v4319_v14, %v7740_v54  ;;  %v4361_v35 = vmax.f32 %v4316_v8, 0.0 }
 0xd1e   : > { %v4362_v42 = vmax.f32 %v4318_v9, 0.0 }
 0xd1f   : > { %v4363_v33 = vmax.f32 %v4320_v21, 0.0 }
 0xd20   : > { %v4380_v10 = vpack.c.bf16 %v4362_v42, %v4360_v27 }
 0xd21   : > { %v4381_v43 = vpack.c.bf16 %v4363_v33, %v4361_v35  ;;  %v4323_v34 = vpop.f32.mrb[144].mxu0 }
 0xd22   : > { %v4324_v12 = vadd.f32 %v4323_v34, %v7739_v39  ;;  %v4325_v38 = vpop.f32.mrb[145].mxu0 }
 0xd23   : > { %v4326_v23 = vadd.f32 %v4325_v38, %v7740_v54  ;;  %v4327_v44 = vpop.f32.mrb[146].mxu0  ;;  %4436 = vmatprep.mubr.bf16.mxu1 %v4381_v43 }
 0xd24   : > { %v4328_v25 = vadd.f32 %v4327_v44, %v7739_v39  ;;  %v4329_v60 = vpop.f32.mrb[147].mxu0  ;;  %4437 = vmatmul.mubr.bf16.gmra.mrb[136].mxu1 %v4380_v10  ;;  %v4364_v61 = vmax.f32 %v4324_v12, 0.0 }
 0xd25   : > { %v4330_v19 = vadd.f32 %v4329_v60, %v7740_v54  ;;  %v4365_v49 = vmax.f32 %v4326_v23, 0.0 }
 0xd26   : > { %v4366_v36 = vmax.f32 %v4328_v25, 0.0 }
 0xd27   : > { %v4367_v63 = vmax.f32 %v4330_v19, 0.0 }
 0xd28   : > { %v4382_v46 = vpack.c.bf16 %v4366_v36, %v4364_v61 }
 0xd29   : > { %v4383_v31 = vpack.c.bf16 %v4367_v63, %v4365_v49  ;;  %v4333_v32 = vpop.f32.mrb[148].mxu0 }
 0xd2a   : > { %v4334_v41 = vadd.f32 %v4333_v32, %v7739_v39  ;;  %v4335_v0 = vpop.f32.mrb[149].mxu0 }
 0xd2b   : > { %v4336_v15 = vadd.f32 %v4335_v0, %v7740_v54  ;;  %v4337_v50 = vpop.f32.mrb[150].mxu0  ;;  %4444 = vmatprep.mubr.bf16.mxu1 %v4383_v31 }
 0xd2c   : > { %v4338_v51 = vadd.f32 %v4337_v50, %v7739_v39  ;;  %v4339_v16 = vpop.f32.mrb[151].mxu0  ;;  %4445 = vmatmul.mubr.bf16.gmra.mrb[140].mxu1 %v4382_v46  ;;  %v4368_v47 = vmax.f32 %v4334_v41, 0.0 }
 0xd2d   : > { %v4340_v52 = vadd.f32 %v4339_v16, %v7740_v54  ;;  %v4369_v48 = vmax.f32 %v4336_v15, 0.0 }
 0xd2e   : > { %v4370_v37 = vmax.f32 %v4338_v51, 0.0 }
 0xd2f   : > { %v4371_v20 = vmax.f32 %v4340_v52, 0.0 }
 0xd30   : > { %v4384_v45 = vpack.c.bf16 %v4370_v37, %v4368_v47 }
 0xd31   : > { %v4385_v24 = vpack.c.bf16 %v4371_v20, %v4369_v48  ;;  %v4343_v3 = vpop.f32.mrb[152].mxu0 }
 0xd32   : > { %v4344_v17 = vadd.f32 %v4343_v3, %v7739_v39  ;;  %v4345_v4 = vpop.f32.mrb[153].mxu0 }
 0xd33   : > { %v4346_v62 = vadd.f32 %v4345_v4, %v7740_v54  ;;  %v4347_v40 = vpop.f32.mrb[154].mxu0  ;;  %4452 = vmatprep.mubr.bf16.mxu1 %v4385_v24 }
 0xd34   : > { %v4348_v5 = vadd.f32 %v4347_v40, %v7739_v39  ;;  %v4349_v22 = vpop.f32.mrb[155].mxu0  ;;  %4453 = vmatmul.mubr.bf16.gmra.mrb[144].mxu1 %v4384_v45  ;;  %v4372_v1 = vmax.f32 %v4344_v17, 0.0 }
 0xd35   : > { %v4350_v53 = vadd.f32 %v4349_v22, %v7740_v54  ;;  %v4373_v6 = vmax.f32 %v4346_v62, 0.0  ;;  %v5741_v54 = vld [vmem:[#allocation12] ss:$0 sm:$0xff] }
 0xd36   : > { %v4374_v55 = vmax.f32 %v4348_v5, 0.0 }
 0xd37   : > { %v4375_v26 = vmax.f32 %v4350_v53, 0.0 }
 0xd38   : > { %v4386_v56 = vpack.c.bf16 %v4374_v55, %v4372_v1 }
 0xd39   : > { %v4387_v2 = vpack.c.bf16 %v4375_v26, %v4373_v6 }
 0xd3b   : > { %4460 = vmatprep.mubr.bf16.mxu1 %v4387_v2 }
 0xd3c   : > { %4461 = vmatmul.mubr.bf16.gmra.mrb[148].mxu1 %v4386_v56 }
 0xde7   : > { %v5094_v57 = vpop.f32.mrb[128].mxu1 }
 0xde8   : > { %v5095_v7 = vpop.f32.mrb[129].mxu1 }
 0xde9   : > { %v5096_v18 = vadd.f32 %v5095_v7, %v5094_v57  ;;  %v5097_v58 = vpop.f32.mrb[130].mxu1 }
 0xdea   : > { %v5098_v39 = vpop.f32.mrb[131].mxu1 }
 0xdeb   : > { %v4423_v13 = vadd.f32 %v5741_v54, %v5096_v18  ;;  %v5099_v30 = vadd.f32 %v5098_v39, %v5097_v58 }
 0xded   : > { %4469 = vst.msk [vmem:[%s7645_s18] sm:$0xff] %vm897_vm0, %v4423_v13  ;;  %v4426_v11 = vadd.f32 %v5741_v54, %v5099_v30 }
 0xdef   : > { %4470 = vst.msk [vmem:[%s7645_s18 + $0x8] sm:$0xff] %vm897_vm0, %v4426_v11  ;;  %v5100_v28 = vpop.f32.mrb[132].mxu1 }
 0xdf0   : > { %v5101_v59 = vpop.f32.mrb[133].mxu1 }
 0xdf1   : > { %v5102_v8 = vadd.f32 %v5101_v59, %v5100_v28  ;;  %v5103_v29 = vpop.f32.mrb[134].mxu1 }
 0xdf2   : > { %v5104_v9 = vpop.f32.mrb[135].mxu1 }
 0xdf3   : > { %v4431_v14 = vadd.f32 %v5741_v54, %v5102_v8  ;;  %v5105_v21 = vadd.f32 %v5104_v9, %v5103_v29 }
 0xdf5   : > { %4471 = vst.msk [vmem:[%s7645_s18 + $0x10] sm:$0xff] %vm897_vm0, %v4431_v14  ;;  %v4434_v27 = vadd.f32 %v5741_v54, %v5105_v21 }
 0xdf7   : > { %4472 = vst.msk [vmem:[%s7645_s18 + $0x18] sm:$0xff] %vm897_vm0, %v4434_v27  ;;  %v5106_v42 = vpop.f32.mrb[136].mxu1 }
 0xdf8   : > { %v5107_v35 = vpop.f32.mrb[137].mxu1 }
 0xdf9   : > { %v5108_v33 = vadd.f32 %v5107_v35, %v5106_v42  ;;  %v5109_v10 = vpop.f32.mrb[138].mxu1 }
 0xdfa   : > { %v5110_v43 = vpop.f32.mrb[139].mxu1 }
 0xdfb   : > { %v4439_v34 = vadd.f32 %v5741_v54, %v5108_v33  ;;  %v5111_v12 = vadd.f32 %v5110_v43, %v5109_v10 }
 0xdfd   : > { %4473 = vst.msk [vmem:[%s7645_s18 + $0x20] sm:$0xff] %vm897_vm0, %v4439_v34  ;;  %v4442_v38 = vadd.f32 %v5741_v54, %v5111_v12 }
 0xdff   : > { %4474 = vst.msk [vmem:[%s7645_s18 + $0x28] sm:$0xff] %vm897_vm0, %v4442_v38  ;;  %v5112_v23 = vpop.f32.mrb[140].mxu1 }
 0xe00   : > { %v5113_v44 = vpop.f32.mrb[141].mxu1 }
 0xe01   : > { %v5114_v25 = vadd.f32 %v5113_v44, %v5112_v23  ;;  %v5115_v60 = vpop.f32.mrb[142].mxu1 }
 0xe02   : > { %v5116_v19 = vpop.f32.mrb[143].mxu1 }
 0xe03   : > { %v4447_v61 = vadd.f32 %v5741_v54, %v5114_v25  ;;  %v5117_v36 = vadd.f32 %v5116_v19, %v5115_v60 }
 0xe05   : > { %4475 = vst.msk [vmem:[%s7645_s18 + $0x30] sm:$0xff] %vm897_vm0, %v4447_v61  ;;  %v4450_v49 = vadd.f32 %v5741_v54, %v5117_v36 }
 0xe07   : > { %4476 = vst.msk [vmem:[%s7645_s18 + $0x38] sm:$0xff] %vm897_vm0, %v4450_v49  ;;  %v5118_v63 = vpop.f32.mrb[144].mxu1 }
 0xe08   : > { %v5119_v46 = vpop.f32.mrb[145].mxu1 }
 0xe09   : > { %v5120_v31 = vadd.f32 %v5119_v46, %v5118_v63  ;;  %v5121_v32 = vpop.f32.mrb[146].mxu1 }
 0xe0a   : > { %v5122_v41 = vpop.f32.mrb[147].mxu1 }
 0xe0b   : > { %v4455_v0 = vadd.f32 %v5741_v54, %v5120_v31  ;;  %v5123_v15 = vadd.f32 %v5122_v41, %v5121_v32 }
 0xe0d   : > { %4477 = vst.msk [vmem:[%s7645_s18 + $0x40] sm:$0xff] %vm897_vm0, %v4455_v0  ;;  %v4458_v50 = vadd.f32 %v5741_v54, %v5123_v15 }
 0xe0f   : > { %4478 = vst.msk [vmem:[%s7645_s18 + $0x48] sm:$0xff] %vm897_vm0, %v4458_v50  ;;  %v5124_v51 = vpop.f32.mrb[148].mxu1 }
 0xe10   : > { %v5125_v16 = vpop.f32.mrb[149].mxu1 }
 0xe11   : > { %v5126_v52 = vadd.f32 %v5125_v16, %v5124_v51  ;;  %v5127_v47 = vpop.f32.mrb[150].mxu1 }
 0xe12   : > { %v5128_v37 = vpop.f32.mrb[151].mxu1 }
 0xe13   : > { %v4463_v48 = vadd.f32 %v5741_v54, %v5126_v52  ;;  %v5129_v20 = vadd.f32 %v5128_v37, %v5127_v47 }
 0xe15   : > { %4479 = vst.msk [vmem:[%s7645_s18 + $0x50] sm:$0xff] %vm897_vm0, %v4463_v48  ;;  %v4466_v45 = vadd.f32 %v5741_v54, %v5129_v20 }
 0xe17   : > { %4480 = vst.msk [vmem:[%s7645_s18 + $0x58] sm:$0xff] %vm897_vm0, %v4466_v45 }
 0xe18 PF: > { %s36_s1 = sadd.s32 1, %s6080_s1  }
 0xe19   : > { %p33_p7 = scmp.ge.s32.totalorder %s36_s1, 4  }
 0xe1b   :  { %35 = sbr.rel (!%p33_p7) target bundleno = 17 (0x11), region = 181 }
 0xe22   :  { %4505 = vsyncpa [#allocation3], 1 }
 0xe23   :  { %4507 = vsyncpa [#allocation3 + $0x1], 1 }
 0xe24   :  { %4508 = vsyncpa [#allocation5], 1 }
 0xe25   :  { %4509 = vsyncpa [#allocation8], 1 }
 0xe26   :  { %4510 = vsyncpa [#allocation11], 1 }
 0xe27   :  { %4511 = vsyncpa [#allocation14], 1 }
 0xe28   :  { %4512 = vsyncpa [#allocation17], 1 }

</bundles_post_ra>
